<compile_context>
chip_gen: v6e
topology: v6e:2x2x1
jax: 0.10.0
libtpu: 0.0.40
codegen_flags: <defaults>
</compile_context>

<pallas_src>
import jax
import jax.numpy as jnp
from jax.experimental import pallas as pl
from jax.experimental.pallas import tpu as pltpu


# ----------------------------------------------------------------------------
# Single fused kernel: whole forward pass for one batch element per grid step
# ----------------------------------------------------------------------------

def _fused_kernel(x1_ref,                      # (4, P1, 8)  phase-grouped conv1 im2col, f32
                  w1_ref, s1_ref, t1_ref,      # (8, 64) f32, (1, 64) f32 x2
                  w2_ref, s2_ref, t2_ref,      # (512, 128) bf16, (1, 128) f32 x2
                  w3_ref, s3_ref, t3_ref,      # (1024, 256) bf16, (1, 256) f32 x2
                  hw1_ref, hb1_ref,            # merged head stage-1: (256, 192), (1, 192) f32
                  cw2_ref, cb2_ref, cw3_ref, cb3_ref,   # classifier stage 2/3 (f32)
                  vw2_ref, vb2_ref,            # vad stage 2 (f32)
                  out_ref,                     # (8, 128) packed output slab, f32
                  pad1_ref, pad2_ref):         # VMEM scratch: padded pooled activations (f32)
    f32 = jnp.float32
    bf16 = jnp.bfloat16

    # Static geometry derived from ref shapes.
    P1 = x1_ref.shape[1]                 # pool1 output length
    K = x1_ref.shape[2]                  # conv kernel size (8)
    C1 = pad1_ref.shape[1]               # 64
    P2 = pad2_ref.shape[0] - 16          # pool2 output length
    C2 = pad2_ref.shape[1]               # 128
    L3 = P2 // 2 + 1                     # conv3 output length

    # ---- Conv1 (1->64) + BN + ReLU + MaxPool(4,4): one MXU dot per pool phase ----
    w1 = w1_ref[...]
    s1 = s1_ref[...]
    t1 = t1_ref[...]
    pooled1 = None
    for p in range(4):                                        # static unroll
        a = jnp.dot(x1_ref[p], w1, preferred_element_type=f32)      # (P1, 64)
        a = jnp.maximum(a * s1 + t1, 0.0)
        pooled1 = a if pooled1 is None else jnp.maximum(pooled1, a)

    # Padded pooled-1 buffer: zero only the 8 head / 8 tail rows, data at row 8.
    pad1_ref[0:8, :] = jnp.zeros((8, C1), f32)
    pad1_ref[8:8 + P1, :] = pooled1
    pad1_ref[8 + P1:16 + P1, :] = jnp.zeros((8, C1), f32)

    # ---- Conv2 (64->128) + BN + ReLU + MaxPool(4,4): one deep matmul per phase ----
    # Conv2 row i reads buffer rows 4 + 2*i + k; phase-grouped (i = 4*r + p) the tap k
    # of phase p is the stride-8 slice starting at 4 + 2*p + k.
    w2 = w2_ref[...]
    s2 = s2_ref[...]
    t2 = t2_ref[...]
    pooled2 = None
    for p in range(4):
        taps = [pad1_ref[pl.ds(4 + 2 * p + k, P2, stride=8), :] for k in range(K)]
        a = jnp.concatenate(taps, axis=1).astype(bf16)               # (P2, K*C1)
        h = jnp.dot(a, w2, preferred_element_type=f32)               # (P2, 128)
        h = jnp.maximum(h * s2 + t2, 0.0)
        pooled2 = h if pooled2 is None else jnp.maximum(pooled2, h)

    pad2_ref[0:8, :] = jnp.zeros((8, C2), f32)
    pad2_ref[8:8 + P2, :] = pooled2
    pad2_ref[8 + P2:16 + P2, :] = jnp.zeros((8, C2), f32)

    # ---- Conv3 (128->256) + BN + ReLU + AdaptiveAvgPool1d(1): one deep matmul ----
    taps3 = [pad2_ref[pl.ds(4 + k, L3, stride=2), :] for k in range(K)]
    a3 = jnp.concatenate(taps3, axis=1).astype(bf16)                 # (L3, K*C2)
    h3 = jnp.dot(a3, w3_ref[...], preferred_element_type=f32)        # (L3, 256)
    h3 = jnp.maximum(h3 * s3_ref[...] + t3_ref[...], 0.0)
    feat = jnp.mean(h3, axis=0, keepdims=True)                       # (1, 256)

    # ---- Heads (Dropout = identity at inference); fused stage-1 matmul ------------
    hw = jnp.dot(feat, hw1_ref[...], preferred_element_type=f32) + hb1_ref[...]
    hw = jnp.maximum(hw, 0.0)                                        # (1, 128+64)
    H1 = cw2_ref.shape[0]
    h_cls = hw[:, :H1]
    g_vad = hw[:, H1:]

    h2 = jnp.maximum(jnp.dot(h_cls, cw2_ref[...], preferred_element_type=f32)
                     + cb2_ref[...], 0.0)                            # (1, 64)
    logits = jnp.dot(h2, cw3_ref[...], preferred_element_type=f32) + cb3_ref[...]
    m = jnp.max(logits, axis=1, keepdims=True)
    e = jnp.exp(logits - m)
    probs = e * pl.reciprocal(jnp.sum(e, axis=1, keepdims=True))     # exact: sum == 1

    z = jnp.dot(g_vad, vw2_ref[...], preferred_element_type=f32) + vb2_ref[...]
    vad = 1.0 / (1.0 + jnp.exp(-z))                                  # exact sigmoid

    # ---- Lane-dense packed output: [probs | vad | zeros], broadcast to 8 sublanes --
    ne = probs.shape[1]
    pieces = [probs, vad]
    if ne + 1 < 128:
        pieces.append(jnp.zeros((1, 128 - ne - 1), f32))
    vec = jnp.concatenate(pieces, axis=1)                            # (1, 128)
    out_ref[...] = jnp.broadcast_to(vec, (8, 128))


# ----------------------------------------------------------------------------
# Wrapper: geometry, parameter folding, conv1 im2col, single pallas_call
# ----------------------------------------------------------------------------

def _const_spec(a):
    nd = a.ndim
    return pl.BlockSpec(a.shape, lambda b, nd=nd: (0,) * nd)


def forward(x, params):
    # Replicate the PyTorch dim handling.
    if x.ndim == 2:
        x = x[:, None, :]                       # (B, 1, L)
    elif x.ndim == 3 and x.shape[1] != 1:
        x = jnp.swapaxes(x, 1, 2)
    elif x.ndim == 4:
        x = jnp.squeeze(x, 2)
    x = x.astype(jnp.float32)
    B, _, L = x.shape

    # Static conv/pool geometry (Conv1d k=8, s=2, p=4; MaxPool k=4, s=4).
    K, S, PAD = 8, 2, 4
    Lp1 = L + 2 * PAD
    L1 = (Lp1 - K) // S + 1
    P1 = (L1 - 4) // 4 + 1
    U1 = 4 * P1                                  # conv1 rows consumed by pool1
    L2 = (P1 + 2 * PAD - K) // S + 1
    P2 = (L2 - 4) // 4 + 1
    L3 = (P2 + 2 * PAD - K) // S + 1
    assert P1 >= 8 and P2 >= 1 and L3 >= 1
    # In-kernel strided-read bounds on the padded scratch buffers.
    assert 4 + 6 + (K - 1) + 8 * (P2 - 1) < P1 + 16
    assert 4 + (K - 1) + 2 * (L3 - 1) < P2 + 16

    # Phase-grouped conv1 im2col: x_ic[b, p, r, k] = x_pad[b, 8*r + 2*p + k]
    # (conv1 output row 4*r + p reads padded samples 2*(4r+p) + k).  ~16 KB / element.
    x_pad = jnp.pad(x[:, 0, :], ((0, 0), (PAD, PAD + 8)))            # extra tail zeros: slice safety
    taps = [x_pad[:, k:k + 2 * U1:2] for k in range(K)]              # each (B, U1)
    x_ic = jnp.stack(taps, axis=-1)                                  # (B, U1, K)
    x_ic = x_ic.reshape(B, P1, 4, K).transpose(0, 2, 1, 3)           # (B, 4, P1, K)

    # Fold conv bias + eval-mode BatchNorm into per-channel scale/shift.
    eps = 1e-5

    def fold(bn, conv_b):
        s = bn["gamma"] * jax.lax.rsqrt(bn["var"] + eps)
        t = bn["beta"] - bn["mean"] * s + conv_b * s
        return (s.reshape(1, -1).astype(jnp.float32),
                t.reshape(1, -1).astype(jnp.float32))

    s1, t1 = fold(params["bn1"], params["conv1_b"])
    s2, t2 = fold(params["bn2"], params["conv2_b"])
    s3, t3 = fold(params["bn3"], params["conv3_b"])

    C1 = params["conv1_w"].shape[0]
    C2 = params["conv2_w"].shape[0]
    C3 = params["conv3_w"].shape[0]

    # Conv weights flattened tap-major to match the in-kernel lane concatenation:
    # contraction index = k*C_in + c.  conv2/conv3 in bf16 for the MXU (f32 accumulate).
    W1 = jnp.transpose(params["conv1_w"], (2, 1, 0)).reshape(K, C1).astype(jnp.float32)
    W2 = jnp.transpose(params["conv2_w"], (2, 1, 0)).reshape(K * C1, C2).astype(jnp.bfloat16)
    W3 = jnp.transpose(params["conv3_w"], (2, 1, 0)).reshape(K * C2, C3).astype(jnp.bfloat16)

    # Merged head stage-1 weight: [classifier fc1 (256,128) | vad fc1 (256,64)].
    # NOTE: weights here are stored (in, out); transpose when loading a PyTorch
    # nn.Linear state dict (which is (out, in)).
    HW1 = jnp.concatenate([params["cls_w1"], params["vad_w1"]], axis=1).astype(jnp.float32)
    HB1 = jnp.concatenate([params["cls_b1"], params["vad_b1"]]).reshape(1, -1).astype(jnp.float32)

    cw2 = params["cls_w2"].astype(jnp.float32)
    cb2 = params["cls_b2"].reshape(1, -1).astype(jnp.float32)
    cw3 = params["cls_w3"].astype(jnp.float32)
    cb3 = params["cls_b3"].reshape(1, -1).astype(jnp.float32)
    vw2 = params["vad_w2"].astype(jnp.float32)
    vb2 = params["vad_b2"].reshape(1, -1).astype(jnp.float32)
    NE = cw3.shape[1]
    assert NE + 1 <= 128, "packed output slab assumes num_emotions + 1 <= 128"

    consts = (W1, s1, t1, W2, s2, t2, W3, s3, t3,
              HW1, HB1, cw2, cb2, cw3, cb3, vw2, vb2)

    out = pl.pallas_call(
        _fused_kernel,
        out_shape=jax.ShapeDtypeStruct((B, 8, 128), jnp.float32),
        grid=(B,),
        in_specs=[pl.BlockSpec((None, 4, P1, K), lambda b: (b, 0, 0, 0))]
                 + [_const_spec(a) for a in consts],
        out_specs=pl.BlockSpec((None, 8, 128), lambda b: (b, 0, 0)),
        scratch_shapes=[pltpu.VMEM((P1 + 16, C1), jnp.float32),      # padded pooled-1
                        pltpu.VMEM((P2 + 16, C2), jnp.float32)],     # padded pooled-2
        compiler_params=pltpu.CompilerParams(
            dimension_semantics=("parallel",)),                      # batch across TCs (v7x)
    )(x_ic, *consts)

    emotion_probs = out[:, 0, :NE]
    vad_probs = out[:, 0, NE:NE + 1]
    return emotion_probs, vad_probs


# ----------------------------------------------------------------------------
# Parameter construction (matches the PyTorch module's shapes)
# ----------------------------------------------------------------------------

def init_params(key, num_emotions=7):
    ks = jax.random.split(key, 16)

    def rnd(k, shape, scale=0.05):
        return jax.random.normal(k, shape, jnp.float32) * scale

    def bn_params(c):
        return {"gamma": jnp.ones((c,), jnp.float32),
                "beta": jnp.zeros((c,), jnp.float32),
                "mean": jnp.zeros((c,), jnp.float32),
                "var": jnp.ones((c,), jnp.float32)}

    return {
        "conv1_w": rnd(ks[0], (64, 1, 8)),    "conv1_b": rnd(ks[1], (64,)),   "bn1": bn_params(64),
        "conv2_w": rnd(ks[2], (128, 64, 8)),  "conv2_b": rnd(ks[3], (128,)),  "bn2": bn_params(128),
        "conv3_w": rnd(ks[4], (256, 128, 8)), "conv3_b": rnd(ks[5], (256,)),  "bn3": bn_params(256),
        "cls_w1": rnd(ks[6], (256, 128)),  "cls_b1": rnd(ks[7], (128,)),
        "cls_w2": rnd(ks[8], (128, 64)),   "cls_b2": rnd(ks[9], (64,)),
        "cls_w3": rnd(ks[10], (64, num_emotions)), "cls_b3": rnd(ks[11], (num_emotions,)),
        "vad_w1": rnd(ks[12], (256, 64)),  "vad_b1": rnd(ks[13], (64,)),
        "vad_w2": rnd(ks[14], (64, 1)),    "vad_b2": rnd(ks[15], (1,)),
    }


if __name__ == "__main__":
    key = jax.random.PRNGKey(0)
    pkey, xkey = jax.random.split(key)
    params = init_params(pkey, num_emotions=7)
    x = jax.random.normal(xkey, (2, 1024), jnp.float32)      # (batch, waveform_len)

    fwd = jax.jit(forward)
    probs, vad = fwd(x, params)
    probs = jax.block_until_ready(probs)
    vad = jax.block_until_ready(vad)

    assert probs.shape == (2, 7) and vad.shape == (2, 1)
    assert bool(jnp.all(jnp.isfinite(probs))) and bool(jnp.all(jnp.isfinite(vad)))
    assert bool(jnp.allclose(jnp.sum(probs, axis=1), 1.0, atol=1e-5))
    assert bool(jnp.all(vad >= 0.0)) and bool(jnp.all(vad <= 1.0))
    print("KERNEL_OK")
</pallas_src>

<mosaic_0001>
module attributes {stable_mosaic.version = 11 : i64} {
  func.func @_fused_kernel(%arg0: i32, %arg1: memref<1x4x128x8xf32, #tpu.memory_space<vmem>>, %arg2: memref<8x64xf32, #tpu.memory_space<vmem>>, %arg3: memref<1x64xf32, #tpu.memory_space<vmem>>, %arg4: memref<1x64xf32, #tpu.memory_space<vmem>>, %arg5: memref<512x128xbf16, #tpu.memory_space<vmem>>, %arg6: memref<1x128xf32, #tpu.memory_space<vmem>>, %arg7: memref<1x128xf32, #tpu.memory_space<vmem>>, %arg8: memref<1024x256xbf16, #tpu.memory_space<vmem>>, %arg9: memref<1x256xf32, #tpu.memory_space<vmem>>, %arg10: memref<1x256xf32, #tpu.memory_space<vmem>>, %arg11: memref<256x192xf32, #tpu.memory_space<vmem>>, %arg12: memref<1x192xf32, #tpu.memory_space<vmem>>, %arg13: memref<128x64xf32, #tpu.memory_space<vmem>>, %arg14: memref<1x64xf32, #tpu.memory_space<vmem>>, %arg15: memref<64x7xf32, #tpu.memory_space<vmem>>, %arg16: memref<1x7xf32, #tpu.memory_space<vmem>>, %arg17: memref<64x1xf32, #tpu.memory_space<vmem>>, %arg18: memref<1x1xf32, #tpu.memory_space<vmem>>, %arg19: memref<1x8x128xf32, #tpu.memory_space<vmem>>, %arg20: memref<144x64xf32, #tpu.memory_space<vmem>>, %arg21: memref<32x128xf32, #tpu.memory_space<vmem>>) attributes {dimension_semantics = [#tpu.dimension_semantics<parallel>], iteration_bounds = array<i64: 2>, scalar_prefetch = 0 : i64, scratch_operands = 2 : i64, tpu.core_type = #tpu.core_type<tc>, window_params = [{transform_indices = @transform_0, window_bounds = array<i64: 1, 4, 128, 8>}, {pipeline_mode = #tpu.pipeline_mode<synchronous>, transform_indices = @transform_1, window_bounds = array<i64: 8, 64>}, {pipeline_mode = #tpu.pipeline_mode<synchronous>, transform_indices = @transform_2, window_bounds = array<i64: 1, 64>}, {pipeline_mode = #tpu.pipeline_mode<synchronous>, transform_indices = @transform_3, window_bounds = array<i64: 1, 64>}, {pipeline_mode = #tpu.pipeline_mode<synchronous>, transform_indices = @transform_4, window_bounds = array<i64: 512, 128>}, {pipeline_mode = #tpu.pipeline_mode<synchronous>, transform_indices = @transform_5, window_bounds = array<i64: 1, 128>}, {pipeline_mode = #tpu.pipeline_mode<synchronous>, transform_indices = @transform_6, window_bounds = array<i64: 1, 128>}, {pipeline_mode = #tpu.pipeline_mode<synchronous>, transform_indices = @transform_7, window_bounds = array<i64: 1024, 256>}, {pipeline_mode = #tpu.pipeline_mode<synchronous>, transform_indices = @transform_8, window_bounds = array<i64: 1, 256>}, {pipeline_mode = #tpu.pipeline_mode<synchronous>, transform_indices = @transform_9, window_bounds = array<i64: 1, 256>}, {pipeline_mode = #tpu.pipeline_mode<synchronous>, transform_indices = @transform_10, window_bounds = array<i64: 256, 192>}, {pipeline_mode = #tpu.pipeline_mode<synchronous>, transform_indices = @transform_11, window_bounds = array<i64: 1, 192>}, {pipeline_mode = #tpu.pipeline_mode<synchronous>, transform_indices = @transform_12, window_bounds = array<i64: 128, 64>}, {pipeline_mode = #tpu.pipeline_mode<synchronous>, transform_indices = @transform_13, window_bounds = array<i64: 1, 64>}, {pipeline_mode = #tpu.pipeline_mode<synchronous>, transform_indices = @transform_14, window_bounds = array<i64: 64, 7>}, {pipeline_mode = #tpu.pipeline_mode<synchronous>, transform_indices = @transform_15, window_bounds = array<i64: 1, 7>}, {pipeline_mode = #tpu.pipeline_mode<synchronous>, transform_indices = @transform_16, window_bounds = array<i64: 64, 1>}, {pipeline_mode = #tpu.pipeline_mode<synchronous>, transform_indices = @transform_17, window_bounds = array<i64: 1, 1>}, {transform_indices = @transform_18, window_bounds = array<i64: 1, 8, 128>}]} {
    %c0 = arith.constant 0 : index
    %c0_0 = arith.constant 0 : index
    %0 = vector.load %arg2[%c0, %c0_0] : memref<8x64xf32, #tpu.memory_space<vmem>>, vector<8x64xf32>
    %c0_1 = arith.constant 0 : index
    %c0_2 = arith.constant 0 : index
    %1 = vector.load %arg3[%c0_1, %c0_2] : memref<1x64xf32, #tpu.memory_space<vmem>>, vector<1x64xf32>
    %c0_3 = arith.constant 0 : index
    %c0_4 = arith.constant 0 : index
    %2 = vector.load %arg4[%c0_3, %c0_4] : memref<1x64xf32, #tpu.memory_space<vmem>>, vector<1x64xf32>
    %c0_5 = arith.constant 0 : index
    %c0_6 = arith.constant 0 : index
    %c0_7 = arith.constant 0 : index
    %c0_8 = arith.constant 0 : index
    %3 = vector.load %arg1[%c0_5, %c0_6, %c0_7, %c0_8] : memref<1x4x128x8xf32, #tpu.memory_space<vmem>>, vector<1x1x128x8xf32>
    %4 = vector.shape_cast %3 : vector<1x1x128x8xf32> to vector<128x8xf32>
    %cst = arith.constant dense<0.000000e+00> : vector<128x64xf32>
    %5 = tpu.matmul %4, %0, %cst {dimension_numbers = #tpu.dot_dimension_numbers<[1], [0], [0], [1], [0, 0, 1, 1], [], []>} : vector<128x8xf32>, vector<8x64xf32>, vector<128x64xf32> -> vector<128x64xf32>
    %6 = vector.broadcast %1 : vector<1x64xf32> to vector<128x64xf32>
    %7 = arith.mulf %5, %6 : vector<128x64xf32>
    %8 = vector.broadcast %2 : vector<1x64xf32> to vector<128x64xf32>
    %9 = arith.addf %7, %8 : vector<128x64xf32>
    %cst_9 = arith.constant 0.000000e+00 : f32
    %10 = vector.broadcast %cst_9 : f32 to vector<128x64xf32>
    %11 = arith.maximumf %9, %10 : vector<128x64xf32>
    %c0_10 = arith.constant 0 : index
    %c1 = arith.constant 1 : index
    %c0_11 = arith.constant 0 : index
    %c0_12 = arith.constant 0 : index
    %12 = vector.load %arg1[%c0_10, %c1, %c0_11, %c0_12] : memref<1x4x128x8xf32, #tpu.memory_space<vmem>>, vector<1x1x128x8xf32>
    %13 = vector.shape_cast %12 : vector<1x1x128x8xf32> to vector<128x8xf32>
    %cst_13 = arith.constant dense<0.000000e+00> : vector<128x64xf32>
    %14 = tpu.matmul %13, %0, %cst_13 {dimension_numbers = #tpu.dot_dimension_numbers<[1], [0], [0], [1], [0, 0, 1, 1], [], []>} : vector<128x8xf32>, vector<8x64xf32>, vector<128x64xf32> -> vector<128x64xf32>
    %15 = vector.broadcast %1 : vector<1x64xf32> to vector<128x64xf32>
    %16 = arith.mulf %14, %15 : vector<128x64xf32>
    %17 = vector.broadcast %2 : vector<1x64xf32> to vector<128x64xf32>
    %18 = arith.addf %16, %17 : vector<128x64xf32>
    %cst_14 = arith.constant 0.000000e+00 : f32
    %19 = vector.broadcast %cst_14 : f32 to vector<128x64xf32>
    %20 = arith.maximumf %18, %19 : vector<128x64xf32>
    %21 = arith.maximumf %11, %20 : vector<128x64xf32>
    %c0_15 = arith.constant 0 : index
    %c2 = arith.constant 2 : index
    %c0_16 = arith.constant 0 : index
    %c0_17 = arith.constant 0 : index
    %22 = vector.load %arg1[%c0_15, %c2, %c0_16, %c0_17] : memref<1x4x128x8xf32, #tpu.memory_space<vmem>>, vector<1x1x128x8xf32>
    %23 = vector.shape_cast %22 : vector<1x1x128x8xf32> to vector<128x8xf32>
    %cst_18 = arith.constant dense<0.000000e+00> : vector<128x64xf32>
    %24 = tpu.matmul %23, %0, %cst_18 {dimension_numbers = #tpu.dot_dimension_numbers<[1], [0], [0], [1], [0, 0, 1, 1], [], []>} : vector<128x8xf32>, vector<8x64xf32>, vector<128x64xf32> -> vector<128x64xf32>
    %25 = vector.broadcast %1 : vector<1x64xf32> to vector<128x64xf32>
    %26 = arith.mulf %24, %25 : vector<128x64xf32>
    %27 = vector.broadcast %2 : vector<1x64xf32> to vector<128x64xf32>
    %28 = arith.addf %26, %27 : vector<128x64xf32>
    %cst_19 = arith.constant 0.000000e+00 : f32
    %29 = vector.broadcast %cst_19 : f32 to vector<128x64xf32>
    %30 = arith.maximumf %28, %29 : vector<128x64xf32>
    %31 = arith.maximumf %21, %30 : vector<128x64xf32>
    %c0_20 = arith.constant 0 : index
    %c3 = arith.constant 3 : index
    %c0_21 = arith.constant 0 : index
    %c0_22 = arith.constant 0 : index
    %32 = vector.load %arg1[%c0_20, %c3, %c0_21, %c0_22] : memref<1x4x128x8xf32, #tpu.memory_space<vmem>>, vector<1x1x128x8xf32>
    %33 = vector.shape_cast %32 : vector<1x1x128x8xf32> to vector<128x8xf32>
    %cst_23 = arith.constant dense<0.000000e+00> : vector<128x64xf32>
    %34 = tpu.matmul %33, %0, %cst_23 {dimension_numbers = #tpu.dot_dimension_numbers<[1], [0], [0], [1], [0, 0, 1, 1], [], []>} : vector<128x8xf32>, vector<8x64xf32>, vector<128x64xf32> -> vector<128x64xf32>
    %35 = vector.broadcast %1 : vector<1x64xf32> to vector<128x64xf32>
    %36 = arith.mulf %34, %35 : vector<128x64xf32>
    %37 = vector.broadcast %2 : vector<1x64xf32> to vector<128x64xf32>
    %38 = arith.addf %36, %37 : vector<128x64xf32>
    %cst_24 = arith.constant 0.000000e+00 : f32
    %39 = vector.broadcast %cst_24 : f32 to vector<128x64xf32>
    %40 = arith.maximumf %38, %39 : vector<128x64xf32>
    %41 = arith.maximumf %31, %40 : vector<128x64xf32>
    %cst_25 = arith.constant 0.000000e+00 : f32
    %42 = vector.broadcast %cst_25 : f32 to vector<8x64xf32>
    %c0_26 = arith.constant 0 : index
    %c0_27 = arith.constant 0 : index
    %43 = vector.load %arg20[%c0_26, %c0_27] : memref<144x64xf32, #tpu.memory_space<vmem>>, vector<8x64xf32>
    tpu.vector_store %arg20[%c0_26, %c0_27], %42 {strides = array<i32>} : memref<144x64xf32, #tpu.memory_space<vmem>>, vector<8x64xf32>,
    %c8 = arith.constant 8 : index
    %c0_28 = arith.constant 0 : index
    %44 = vector.load %arg20[%c8, %c0_28] : memref<144x64xf32, #tpu.memory_space<vmem>>, vector<128x64xf32>
    tpu.vector_store %arg20[%c8, %c0_28], %41 {strides = array<i32>} : memref<144x64xf32, #tpu.memory_space<vmem>>, vector<128x64xf32>,
    %cst_29 = arith.constant 0.000000e+00 : f32
    %45 = vector.broadcast %cst_29 : f32 to vector<8x64xf32>
    %c136 = arith.constant 136 : index
    %c0_30 = arith.constant 0 : index
    %46 = vector.load %arg20[%c136, %c0_30] : memref<144x64xf32, #tpu.memory_space<vmem>>, vector<8x64xf32>
    tpu.vector_store %arg20[%c136, %c0_30], %45 {strides = array<i32>} : memref<144x64xf32, #tpu.memory_space<vmem>>, vector<8x64xf32>,
    %c0_31 = arith.constant 0 : index
    %c0_32 = arith.constant 0 : index
    %47 = vector.load %arg5[%c0_31, %c0_32] : memref<512x128xbf16, #tpu.memory_space<vmem>>, vector<512x128xbf16>
    %c0_33 = arith.constant 0 : index
    %c0_34 = arith.constant 0 : index
    %48 = vector.load %arg6[%c0_33, %c0_34] : memref<1x128xf32, #tpu.memory_space<vmem>>, vector<1x128xf32>
    %c0_35 = arith.constant 0 : index
    %c0_36 = arith.constant 0 : index
    %49 = vector.load %arg7[%c0_35, %c0_36] : memref<1x128xf32, #tpu.memory_space<vmem>>, vector<1x128xf32>
    %c4 = arith.constant 4 : index
    %c0_37 = arith.constant 0 : index
    %50 = tpu.strided_load %arg20[%c4, %c0_37] {strides = array<i32: 8, 1>} : memref<144x64xf32, #tpu.memory_space<vmem>>, vector<16x64xf32>
    %c5 = arith.constant 5 : index
    %c0_38 = arith.constant 0 : index
    %51 = tpu.strided_load %arg20[%c5, %c0_38] {strides = array<i32: 8, 1>} : memref<144x64xf32, #tpu.memory_space<vmem>>, vector<16x64xf32>
    %c6 = arith.constant 6 : index
    %c0_39 = arith.constant 0 : index
    %52 = tpu.strided_load %arg20[%c6, %c0_39] {strides = array<i32: 8, 1>} : memref<144x64xf32, #tpu.memory_space<vmem>>, vector<16x64xf32>
    %c7 = arith.constant 7 : index
    %c0_40 = arith.constant 0 : index
    %53 = tpu.strided_load %arg20[%c7, %c0_40] {strides = array<i32: 8, 1>} : memref<144x64xf32, #tpu.memory_space<vmem>>, vector<16x64xf32>
    %c8_41 = arith.constant 8 : index
    %c0_42 = arith.constant 0 : index
    %54 = tpu.strided_load %arg20[%c8_41, %c0_42] {strides = array<i32: 8, 1>} : memref<144x64xf32, #tpu.memory_space<vmem>>, vector<16x64xf32>
    %c9 = arith.constant 9 : index
    %c0_43 = arith.constant 0 : index
    %55 = tpu.strided_load %arg20[%c9, %c0_43] {strides = array<i32: 8, 1>} : memref<144x64xf32, #tpu.memory_space<vmem>>, vector<16x64xf32>
    %c10 = arith.constant 10 : index
    %c0_44 = arith.constant 0 : index
    %56 = tpu.strided_load %arg20[%c10, %c0_44] {strides = array<i32: 8, 1>} : memref<144x64xf32, #tpu.memory_space<vmem>>, vector<16x64xf32>
    %c11 = arith.constant 11 : index
    %c0_45 = arith.constant 0 : index
    %57 = tpu.strided_load %arg20[%c11, %c0_45] {strides = array<i32: 8, 1>} : memref<144x64xf32, #tpu.memory_space<vmem>>, vector<16x64xf32>
    %58 = tpu.concatenate %50, %51, %52, %53, %54, %55, %56, %57 in 1 : vector<16x64xf32>, vector<16x64xf32>, vector<16x64xf32>, vector<16x64xf32>, vector<16x64xf32>, vector<16x64xf32>, vector<16x64xf32>, vector<16x64xf32> -> vector<16x512xf32>
    %59 = arith.truncf %58 : vector<16x512xf32> to vector<16x512xbf16>
    %cst_46 = arith.constant dense<0.000000e+00> : vector<16x128xf32>
    %60 = tpu.matmul %59, %47, %cst_46 {dimension_numbers = #tpu.dot_dimension_numbers<[1], [0], [0], [1], [0, 0, 1, 1], [], []>} : vector<16x512xbf16>, vector<512x128xbf16>, vector<16x128xf32> -> vector<16x128xf32>
    %61 = vector.broadcast %48 : vector<1x128xf32> to vector<16x128xf32>
    %62 = arith.mulf %60, %61 : vector<16x128xf32>
    %63 = vector.broadcast %49 : vector<1x128xf32> to vector<16x128xf32>
    %64 = arith.addf %62, %63 : vector<16x128xf32>
    %cst_47 = arith.constant 0.000000e+00 : f32
    %65 = vector.broadcast %cst_47 : f32 to vector<16x128xf32>
    %66 = arith.maximumf %64, %65 : vector<16x128xf32>
    %c6_48 = arith.constant 6 : index
    %c0_49 = arith.constant 0 : index
    %67 = tpu.strided_load %arg20[%c6_48, %c0_49] {strides = array<i32: 8, 1>} : memref<144x64xf32, #tpu.memory_space<vmem>>, vector<16x64xf32>
    %c7_50 = arith.constant 7 : index
    %c0_51 = arith.constant 0 : index
    %68 = tpu.strided_load %arg20[%c7_50, %c0_51] {strides = array<i32: 8, 1>} : memref<144x64xf32, #tpu.memory_space<vmem>>, vector<16x64xf32>
    %c8_52 = arith.constant 8 : index
    %c0_53 = arith.constant 0 : index
    %69 = tpu.strided_load %arg20[%c8_52, %c0_53] {strides = array<i32: 8, 1>} : memref<144x64xf32, #tpu.memory_space<vmem>>, vector<16x64xf32>
    %c9_54 = arith.constant 9 : index
    %c0_55 = arith.constant 0 : index
    %70 = tpu.strided_load %arg20[%c9_54, %c0_55] {strides = array<i32: 8, 1>} : memref<144x64xf32, #tpu.memory_space<vmem>>, vector<16x64xf32>
    %c10_56 = arith.constant 10 : index
    %c0_57 = arith.constant 0 : index
    %71 = tpu.strided_load %arg20[%c10_56, %c0_57] {strides = array<i32: 8, 1>} : memref<144x64xf32, #tpu.memory_space<vmem>>, vector<16x64xf32>
    %c11_58 = arith.constant 11 : index
    %c0_59 = arith.constant 0 : index
    %72 = tpu.strided_load %arg20[%c11_58, %c0_59] {strides = array<i32: 8, 1>} : memref<144x64xf32, #tpu.memory_space<vmem>>, vector<16x64xf32>
    %c12 = arith.constant 12 : index
    %c0_60 = arith.constant 0 : index
    %73 = tpu.strided_load %arg20[%c12, %c0_60] {strides = array<i32: 8, 1>} : memref<144x64xf32, #tpu.memory_space<vmem>>, vector<16x64xf32>
    %c13 = arith.constant 13 : index
    %c0_61 = arith.constant 0 : index
    %74 = tpu.strided_load %arg20[%c13, %c0_61] {strides = array<i32: 8, 1>} : memref<144x64xf32, #tpu.memory_space<vmem>>, vector<16x64xf32>
    %75 = tpu.concatenate %67, %68, %69, %70, %71, %72, %73, %74 in 1 : vector<16x64xf32>, vector<16x64xf32>, vector<16x64xf32>, vector<16x64xf32>, vector<16x64xf32>, vector<16x64xf32>, vector<16x64xf32>, vector<16x64xf32> -> vector<16x512xf32>
    %76 = arith.truncf %75 : vector<16x512xf32> to vector<16x512xbf16>
    %cst_62 = arith.constant dense<0.000000e+00> : vector<16x128xf32>
    %77 = tpu.matmul %76, %47, %cst_62 {dimension_numbers = #tpu.dot_dimension_numbers<[1], [0], [0], [1], [0, 0, 1, 1], [], []>} : vector<16x512xbf16>, vector<512x128xbf16>, vector<16x128xf32> -> vector<16x128xf32>
    %78 = vector.broadcast %48 : vector<1x128xf32> to vector<16x128xf32>
    %79 = arith.mulf %77, %78 : vector<16x128xf32>
    %80 = vector.broadcast %49 : vector<1x128xf32> to vector<16x128xf32>
    %81 = arith.addf %79, %80 : vector<16x128xf32>
    %cst_63 = arith.constant 0.000000e+00 : f32
    %82 = vector.broadcast %cst_63 : f32 to vector<16x128xf32>
    %83 = arith.maximumf %81, %82 : vector<16x128xf32>
    %84 = arith.maximumf %66, %83 : vector<16x128xf32>
    %c8_64 = arith.constant 8 : index
    %c0_65 = arith.constant 0 : index
    %85 = tpu.strided_load %arg20[%c8_64, %c0_65] {strides = array<i32: 8, 1>} : memref<144x64xf32, #tpu.memory_space<vmem>>, vector<16x64xf32>
    %c9_66 = arith.constant 9 : index
    %c0_67 = arith.constant 0 : index
    %86 = tpu.strided_load %arg20[%c9_66, %c0_67] {strides = array<i32: 8, 1>} : memref<144x64xf32, #tpu.memory_space<vmem>>, vector<16x64xf32>
    %c10_68 = arith.constant 10 : index
    %c0_69 = arith.constant 0 : index
    %87 = tpu.strided_load %arg20[%c10_68, %c0_69] {strides = array<i32: 8, 1>} : memref<144x64xf32, #tpu.memory_space<vmem>>, vector<16x64xf32>
    %c11_70 = arith.constant 11 : index
    %c0_71 = arith.constant 0 : index
    %88 = tpu.strided_load %arg20[%c11_70, %c0_71] {strides = array<i32: 8, 1>} : memref<144x64xf32, #tpu.memory_space<vmem>>, vector<16x64xf32>
    %c12_72 = arith.constant 12 : index
    %c0_73 = arith.constant 0 : index
    %89 = tpu.strided_load %arg20[%c12_72, %c0_73] {strides = array<i32: 8, 1>} : memref<144x64xf32, #tpu.memory_space<vmem>>, vector<16x64xf32>
    %c13_74 = arith.constant 13 : index
    %c0_75 = arith.constant 0 : index
    %90 = tpu.strided_load %arg20[%c13_74, %c0_75] {strides = array<i32: 8, 1>} : memref<144x64xf32, #tpu.memory_space<vmem>>, vector<16x64xf32>
    %c14 = arith.constant 14 : index
    %c0_76 = arith.constant 0 : index
    %91 = tpu.strided_load %arg20[%c14, %c0_76] {strides = array<i32: 8, 1>} : memref<144x64xf32, #tpu.memory_space<vmem>>, vector<16x64xf32>
    %c15 = arith.constant 15 : index
    %c0_77 = arith.constant 0 : index
    %92 = tpu.strided_load %arg20[%c15, %c0_77] {strides = array<i32: 8, 1>} : memref<144x64xf32, #tpu.memory_space<vmem>>, vector<16x64xf32>
    %93 = tpu.concatenate %85, %86, %87, %88, %89, %90, %91, %92 in 1 : vector<16x64xf32>, vector<16x64xf32>, vector<16x64xf32>, vector<16x64xf32>, vector<16x64xf32>, vector<16x64xf32>, vector<16x64xf32>, vector<16x64xf32> -> vector<16x512xf32>
    %94 = arith.truncf %93 : vector<16x512xf32> to vector<16x512xbf16>
    %cst_78 = arith.constant dense<0.000000e+00> : vector<16x128xf32>
    %95 = tpu.matmul %94, %47, %cst_78 {dimension_numbers = #tpu.dot_dimension_numbers<[1], [0], [0], [1], [0, 0, 1, 1], [], []>} : vector<16x512xbf16>, vector<512x128xbf16>, vector<16x128xf32> -> vector<16x128xf32>
    %96 = vector.broadcast %48 : vector<1x128xf32> to vector<16x128xf32>
    %97 = arith.mulf %95, %96 : vector<16x128xf32>
    %98 = vector.broadcast %49 : vector<1x128xf32> to vector<16x128xf32>
    %99 = arith.addf %97, %98 : vector<16x128xf32>
    %cst_79 = arith.constant 0.000000e+00 : f32
    %100 = vector.broadcast %cst_79 : f32 to vector<16x128xf32>
    %101 = arith.maximumf %99, %100 : vector<16x128xf32>
    %102 = arith.maximumf %84, %101 : vector<16x128xf32>
    %c10_80 = arith.constant 10 : index
    %c0_81 = arith.constant 0 : index
    %103 = tpu.strided_load %arg20[%c10_80, %c0_81] {strides = array<i32: 8, 1>} : memref<144x64xf32, #tpu.memory_space<vmem>>, vector<16x64xf32>
    %c11_82 = arith.constant 11 : index
    %c0_83 = arith.constant 0 : index
    %104 = tpu.strided_load %arg20[%c11_82, %c0_83] {strides = array<i32: 8, 1>} : memref<144x64xf32, #tpu.memory_space<vmem>>, vector<16x64xf32>
    %c12_84 = arith.constant 12 : index
    %c0_85 = arith.constant 0 : index
    %105 = tpu.strided_load %arg20[%c12_84, %c0_85] {strides = array<i32: 8, 1>} : memref<144x64xf32, #tpu.memory_space<vmem>>, vector<16x64xf32>
    %c13_86 = arith.constant 13 : index
    %c0_87 = arith.constant 0 : index
    %106 = tpu.strided_load %arg20[%c13_86, %c0_87] {strides = array<i32: 8, 1>} : memref<144x64xf32, #tpu.memory_space<vmem>>, vector<16x64xf32>
    %c14_88 = arith.constant 14 : index
    %c0_89 = arith.constant 0 : index
    %107 = tpu.strided_load %arg20[%c14_88, %c0_89] {strides = array<i32: 8, 1>} : memref<144x64xf32, #tpu.memory_space<vmem>>, vector<16x64xf32>
    %c15_90 = arith.constant 15 : index
    %c0_91 = arith.constant 0 : index
    %108 = tpu.strided_load %arg20[%c15_90, %c0_91] {strides = array<i32: 8, 1>} : memref<144x64xf32, #tpu.memory_space<vmem>>, vector<16x64xf32>
    %c16 = arith.constant 16 : index
    %c0_92 = arith.constant 0 : index
    %109 = tpu.strided_load %arg20[%c16, %c0_92] {strides = array<i32: 8, 1>} : memref<144x64xf32, #tpu.memory_space<vmem>>, vector<16x64xf32>
    %c17 = arith.constant 17 : index
    %c0_93 = arith.constant 0 : index
    %110 = tpu.strided_load %arg20[%c17, %c0_93] {strides = array<i32: 8, 1>} : memref<144x64xf32, #tpu.memory_space<vmem>>, vector<16x64xf32>
    %111 = tpu.concatenate %103, %104, %105, %106, %107, %108, %109, %110 in 1 : vector<16x64xf32>, vector<16x64xf32>, vector<16x64xf32>, vector<16x64xf32>, vector<16x64xf32>, vector<16x64xf32>, vector<16x64xf32>, vector<16x64xf32> -> vector<16x512xf32>
    %112 = arith.truncf %111 : vector<16x512xf32> to vector<16x512xbf16>
    %cst_94 = arith.constant dense<0.000000e+00> : vector<16x128xf32>
    %113 = tpu.matmul %112, %47, %cst_94 {dimension_numbers = #tpu.dot_dimension_numbers<[1], [0], [0], [1], [0, 0, 1, 1], [], []>} : vector<16x512xbf16>, vector<512x128xbf16>, vector<16x128xf32> -> vector<16x128xf32>
    %114 = vector.broadcast %48 : vector<1x128xf32> to vector<16x128xf32>
    %115 = arith.mulf %113, %114 : vector<16x128xf32>
    %116 = vector.broadcast %49 : vector<1x128xf32> to vector<16x128xf32>
    %117 = arith.addf %115, %116 : vector<16x128xf32>
    %cst_95 = arith.constant 0.000000e+00 : f32
    %118 = vector.broadcast %cst_95 : f32 to vector<16x128xf32>
    %119 = arith.maximumf %117, %118 : vector<16x128xf32>
    %120 = arith.maximumf %102, %119 : vector<16x128xf32>
    %cst_96 = arith.constant 0.000000e+00 : f32
    %121 = vector.broadcast %cst_96 : f32 to vector<8x128xf32>
    %c0_97 = arith.constant 0 : index
    %c0_98 = arith.constant 0 : index
    %122 = vector.load %arg21[%c0_97, %c0_98] : memref<32x128xf32, #tpu.memory_space<vmem>>, vector<8x128xf32>
    tpu.vector_store %arg21[%c0_97, %c0_98], %121 {strides = array<i32>} : memref<32x128xf32, #tpu.memory_space<vmem>>, vector<8x128xf32>,
    %c8_99 = arith.constant 8 : index
    %c0_100 = arith.constant 0 : index
    %123 = vector.load %arg21[%c8_99, %c0_100] : memref<32x128xf32, #tpu.memory_space<vmem>>, vector<16x128xf32>
    tpu.vector_store %arg21[%c8_99, %c0_100], %120 {strides = array<i32>} : memref<32x128xf32, #tpu.memory_space<vmem>>, vector<16x128xf32>,
    %cst_101 = arith.constant 0.000000e+00 : f32
    %124 = vector.broadcast %cst_101 : f32 to vector<8x128xf32>
    %c24 = arith.constant 24 : index
    %c0_102 = arith.constant 0 : index
    %125 = vector.load %arg21[%c24, %c0_102] : memref<32x128xf32, #tpu.memory_space<vmem>>, vector<8x128xf32>
    tpu.vector_store %arg21[%c24, %c0_102], %124 {strides = array<i32>} : memref<32x128xf32, #tpu.memory_space<vmem>>, vector<8x128xf32>,
    %c4_103 = arith.constant 4 : index
    %c0_104 = arith.constant 0 : index
    %126 = tpu.strided_load %arg21[%c4_103, %c0_104] {strides = array<i32: 2, 1>} : memref<32x128xf32, #tpu.memory_space<vmem>>, vector<9x128xf32>
    %c5_105 = arith.constant 5 : index
    %c0_106 = arith.constant 0 : index
    %127 = tpu.strided_load %arg21[%c5_105, %c0_106] {strides = array<i32: 2, 1>} : memref<32x128xf32, #tpu.memory_space<vmem>>, vector<9x128xf32>
    %c6_107 = arith.constant 6 : index
    %c0_108 = arith.constant 0 : index
    %128 = tpu.strided_load %arg21[%c6_107, %c0_108] {strides = array<i32: 2, 1>} : memref<32x128xf32, #tpu.memory_space<vmem>>, vector<9x128xf32>
    %c7_109 = arith.constant 7 : index
    %c0_110 = arith.constant 0 : index
    %129 = tpu.strided_load %arg21[%c7_109, %c0_110] {strides = array<i32: 2, 1>} : memref<32x128xf32, #tpu.memory_space<vmem>>, vector<9x128xf32>
    %c8_111 = arith.constant 8 : index
    %c0_112 = arith.constant 0 : index
    %130 = tpu.strided_load %arg21[%c8_111, %c0_112] {strides = array<i32: 2, 1>} : memref<32x128xf32, #tpu.memory_space<vmem>>, vector<9x128xf32>
    %c9_113 = arith.constant 9 : index
    %c0_114 = arith.constant 0 : index
    %131 = tpu.strided_load %arg21[%c9_113, %c0_114] {strides = array<i32: 2, 1>} : memref<32x128xf32, #tpu.memory_space<vmem>>, vector<9x128xf32>
    %c10_115 = arith.constant 10 : index
    %c0_116 = arith.constant 0 : index
    %132 = tpu.strided_load %arg21[%c10_115, %c0_116] {strides = array<i32: 2, 1>} : memref<32x128xf32, #tpu.memory_space<vmem>>, vector<9x128xf32>
    %c11_117 = arith.constant 11 : index
    %c0_118 = arith.constant 0 : index
    %133 = tpu.strided_load %arg21[%c11_117, %c0_118] {strides = array<i32: 2, 1>} : memref<32x128xf32, #tpu.memory_space<vmem>>, vector<9x128xf32>
    %134 = tpu.concatenate %126, %127, %128, %129, %130, %131, %132, %133 in 1 : vector<9x128xf32>, vector<9x128xf32>, vector<9x128xf32>, vector<9x128xf32>, vector<9x128xf32>, vector<9x128xf32>, vector<9x128xf32>, vector<9x128xf32> -> vector<9x1024xf32>
    %135 = arith.truncf %134 : vector<9x1024xf32> to vector<9x1024xbf16>
    %c0_119 = arith.constant 0 : index
    %c0_120 = arith.constant 0 : index
    %136 = vector.load %arg8[%c0_119, %c0_120] : memref<1024x256xbf16, #tpu.memory_space<vmem>>, vector<1024x256xbf16>
    %cst_121 = arith.constant dense<0.000000e+00> : vector<9x256xf32>
    %137 = tpu.matmul %135, %136, %cst_121 {dimension_numbers = #tpu.dot_dimension_numbers<[1], [0], [0], [1], [0, 0, 1, 1], [], []>} : vector<9x1024xbf16>, vector<1024x256xbf16>, vector<9x256xf32> -> vector<9x256xf32>
    %c0_122 = arith.constant 0 : index
    %c0_123 = arith.constant 0 : index
    %138 = vector.load %arg9[%c0_122, %c0_123] : memref<1x256xf32, #tpu.memory_space<vmem>>, vector<1x256xf32>
    %139 = vector.broadcast %138 : vector<1x256xf32> to vector<9x256xf32>
    %140 = arith.mulf %137, %139 : vector<9x256xf32>
    %c0_124 = arith.constant 0 : index
    %c0_125 = arith.constant 0 : index
    %141 = vector.load %arg10[%c0_124, %c0_125] : memref<1x256xf32, #tpu.memory_space<vmem>>, vector<1x256xf32>
    %142 = vector.broadcast %141 : vector<1x256xf32> to vector<9x256xf32>
    %143 = arith.addf %140, %142 : vector<9x256xf32>
    %cst_126 = arith.constant 0.000000e+00 : f32
    %144 = vector.broadcast %cst_126 : f32 to vector<9x256xf32>
    %145 = arith.maximumf %143, %144 : vector<9x256xf32>
    %cst_127 = arith.constant dense<0.000000e+00> : vector<256xf32>
    %146 = vector.multi_reduction <add>, %145, %cst_127 [0] : vector<9x256xf32> to vector<256xf32>
    %147 = vector.shape_cast %146 : vector<256xf32> to vector<1x256xf32>
    %cst_128 = arith.constant 9.000000e+00 : f32
    %148 = vector.broadcast %cst_128 : f32 to vector<1x256xf32>
    %149 = arith.divf %147, %148 : vector<1x256xf32>
    %c0_129 = arith.constant 0 : index
    %c0_130 = arith.constant 0 : index
    %150 = vector.load %arg11[%c0_129, %c0_130] : memref<256x192xf32, #tpu.memory_space<vmem>>, vector<256x192xf32>
    %cst_131 = arith.constant dense<0.000000e+00> : vector<1x192xf32>
    %151 = tpu.matmul %149, %150, %cst_131 {dimension_numbers = #tpu.dot_dimension_numbers<[1], [0], [0], [1], [0, 0, 1, 1], [], []>} : vector<1x256xf32>, vector<256x192xf32>, vector<1x192xf32> -> vector<1x192xf32>
    %c0_132 = arith.constant 0 : index
    %c0_133 = arith.constant 0 : index
    %152 = vector.load %arg12[%c0_132, %c0_133] : memref<1x192xf32, #tpu.memory_space<vmem>>, vector<1x192xf32>
    %153 = arith.addf %151, %152 : vector<1x192xf32>
    %cst_134 = arith.constant 0.000000e+00 : f32
    %154 = vector.broadcast %cst_134 : f32 to vector<1x192xf32>
    %155 = arith.maximumf %153, %154 : vector<1x192xf32>
    %156 = vector.extract_strided_slice %155 {offsets = [0, 0], sizes = [1, 128], strides = [1, 1]} : vector<1x192xf32> to vector<1x128xf32>
    %157 = vector.extract_strided_slice %155 {offsets = [0, 128], sizes = [1, 64], strides = [1, 1]} : vector<1x192xf32> to vector<1x64xf32>
    %c0_135 = arith.constant 0 : index
    %c0_136 = arith.constant 0 : index
    %158 = vector.load %arg13[%c0_135, %c0_136] : memref<128x64xf32, #tpu.memory_space<vmem>>, vector<128x64xf32>
    %cst_137 = arith.constant dense<0.000000e+00> : vector<1x64xf32>
    %159 = tpu.matmul %156, %158, %cst_137 {dimension_numbers = #tpu.dot_dimension_numbers<[1], [0], [0], [1], [0, 0, 1, 1], [], []>} : vector<1x128xf32>, vector<128x64xf32>, vector<1x64xf32> -> vector<1x64xf32>
    %c0_138 = arith.constant 0 : index
    %c0_139 = arith.constant 0 : index
    %160 = vector.load %arg14[%c0_138, %c0_139] : memref<1x64xf32, #tpu.memory_space<vmem>>, vector<1x64xf32>
    %161 = arith.addf %159, %160 : vector<1x64xf32>
    %cst_140 = arith.constant 0.000000e+00 : f32
    %162 = vector.broadcast %cst_140 : f32 to vector<1x64xf32>
    %163 = arith.maximumf %161, %162 : vector<1x64xf32>
    %c0_141 = arith.constant 0 : index
    %c0_142 = arith.constant 0 : index
    %164 = vector.load %arg15[%c0_141, %c0_142] : memref<64x7xf32, #tpu.memory_space<vmem>>, vector<64x7xf32>
    %cst_143 = arith.constant dense<0.000000e+00> : vector<1x7xf32>
    %165 = tpu.matmul %163, %164, %cst_143 {dimension_numbers = #tpu.dot_dimension_numbers<[1], [0], [0], [1], [0, 0, 1, 1], [], []>} : vector<1x64xf32>, vector<64x7xf32>, vector<1x7xf32> -> vector<1x7xf32>
    %c0_144 = arith.constant 0 : index
    %c0_145 = arith.constant 0 : index
    %166 = vector.load %arg16[%c0_144, %c0_145] : memref<1x7xf32, #tpu.memory_space<vmem>>, vector<1x7xf32>
    %167 = arith.addf %165, %166 : vector<1x7xf32>
    %cst_146 = arith.constant dense<0xFF800000> : vector<1xf32>
    %168 = vector.multi_reduction <maximumf>, %167, %cst_146 [1] : vector<1x7xf32> to vector<1xf32>
    %169 = vector.shape_cast %168 : vector<1xf32> to vector<1x1xf32>
    %170 = vector.broadcast %169 : vector<1x1xf32> to vector<1x7xf32>
    %171 = arith.subf %167, %170 : vector<1x7xf32>
    %172 = math.exp %171 : vector<1x7xf32>
    %cst_147 = arith.constant dense<0.000000e+00> : vector<1xf32>
    %173 = vector.multi_reduction <add>, %172, %cst_147 [1] : vector<1x7xf32> to vector<1xf32>
    %174 = vector.shape_cast %173 : vector<1xf32> to vector<1x1xf32>
    %175 = tpu.reciprocal %174 : vector<1x1xf32> -> vector<1x1xf32>
    %176 = vector.broadcast %175 : vector<1x1xf32> to vector<1x7xf32>
    %177 = arith.mulf %172, %176 : vector<1x7xf32>
    %c0_148 = arith.constant 0 : index
    %c0_149 = arith.constant 0 : index
    %178 = vector.load %arg17[%c0_148, %c0_149] : memref<64x1xf32, #tpu.memory_space<vmem>>, vector<64x1xf32>
    %cst_150 = arith.constant dense<0.000000e+00> : vector<1x1xf32>
    %179 = tpu.matmul %157, %178, %cst_150 {dimension_numbers = #tpu.dot_dimension_numbers<[1], [0], [0], [1], [0, 0, 1, 1], [], []>} : vector<1x64xf32>, vector<64x1xf32>, vector<1x1xf32> -> vector<1x1xf32>
    %c0_151 = arith.constant 0 : index
    %c0_152 = arith.constant 0 : index
    %180 = vector.load %arg18[%c0_151, %c0_152] : memref<1x1xf32, #tpu.memory_space<vmem>>, vector<1x1xf32>
    %181 = arith.addf %179, %180 : vector<1x1xf32>
    %cst_153 = arith.constant 0.000000e+00 : f32
    %182 = vector.broadcast %cst_153 : f32 to vector<1x1xf32>
    %183 = arith.subf %182, %181 : vector<1x1xf32>
    %184 = math.exp %183 : vector<1x1xf32>
    %cst_154 = arith.constant 1.000000e+00 : f32
    %185 = vector.broadcast %cst_154 : f32 to vector<1x1xf32>
    %186 = arith.addf %185, %184 : vector<1x1xf32>
    %cst_155 = arith.constant 1.000000e+00 : f32
    %187 = vector.broadcast %cst_155 : f32 to vector<1x1xf32>
    %188 = arith.divf %187, %186 : vector<1x1xf32>
    %cst_156 = arith.constant 0.000000e+00 : f32
    %189 = vector.broadcast %cst_156 : f32 to vector<1x120xf32>
    %190 = tpu.concatenate %177, %188, %189 in 1 : vector<1x7xf32>, vector<1x1xf32>, vector<1x120xf32> -> vector<1x128xf32>
    %191 = vector.shape_cast %190 : vector<1x128xf32> to vector<1x128xf32>
    %192 = vector.broadcast %191 : vector<1x128xf32> to vector<8x128xf32>
    %c0_157 = arith.constant 0 : index
    %c0_158 = arith.constant 0 : index
    %c0_159 = arith.constant 0 : index
    %193 = vector.load %arg19[%c0_157, %c0_158, %c0_159] : memref<1x8x128xf32, #tpu.memory_space<vmem>>, vector<1x8x128xf32>
    %194 = vector.shape_cast %193 : vector<1x8x128xf32> to vector<8x128xf32>
    %195 = vector.shape_cast %192 : vector<8x128xf32> to vector<1x8x128xf32>
    tpu.vector_store %arg19[%c0_157, %c0_158, %c0_159], %195 {strides = array<i32>} : memref<1x8x128xf32, #tpu.memory_space<vmem>>, vector<1x8x128xf32>,
    return
  }
  func.func @transform_0(%arg0: i32) -> (i32, i32, i32, i32) {
    %c0_i32 = arith.constant 0 : i32
    %c0_i32_0 = arith.constant 0 : i32
    %c0_i32_1 = arith.constant 0 : i32
    %c0_i32_2 = arith.constant 0 : i32
    return %arg0, %c0_i32, %c0_i32_0, %c0_i32_1 : i32, i32, i32, i32
  }
  func.func @transform_1(%arg0: i32) -> (i32, i32) {
    %c0_i32 = arith.constant 0 : i32
    %c0_i32_0 = arith.constant 0 : i32
    %c0_i32_1 = arith.constant 0 : i32
    return %c0_i32, %c0_i32_0 : i32, i32
  }
  func.func @transform_2(%arg0: i32) -> (i32, i32) {
    %c0_i32 = arith.constant 0 : i32
    %c0_i32_0 = arith.constant 0 : i32
    %c0_i32_1 = arith.constant 0 : i32
    return %c0_i32, %c0_i32_0 : i32, i32
  }
  func.func @transform_3(%arg0: i32) -> (i32, i32) {
    %c0_i32 = arith.constant 0 : i32
    %c0_i32_0 = arith.constant 0 : i32
    %c0_i32_1 = arith.constant 0 : i32
    return %c0_i32, %c0_i32_0 : i32, i32
  }
  func.func @transform_4(%arg0: i32) -> (i32, i32) {
    %c0_i32 = arith.constant 0 : i32
    %c0_i32_0 = arith.constant 0 : i32
    %c0_i32_1 = arith.constant 0 : i32
    return %c0_i32, %c0_i32_0 : i32, i32
  }
  func.func @transform_5(%arg0: i32) -> (i32, i32) {
    %c0_i32 = arith.constant 0 : i32
    %c0_i32_0 = arith.constant 0 : i32
    %c0_i32_1 = arith.constant 0 : i32
    return %c0_i32, %c0_i32_0 : i32, i32
  }
  func.func @transform_6(%arg0: i32) -> (i32, i32) {
    %c0_i32 = arith.constant 0 : i32
    %c0_i32_0 = arith.constant 0 : i32
    %c0_i32_1 = arith.constant 0 : i32
    return %c0_i32, %c0_i32_0 : i32, i32
  }
  func.func @transform_7(%arg0: i32) -> (i32, i32) {
    %c0_i32 = arith.constant 0 : i32
    %c0_i32_0 = arith.constant 0 : i32
    %c0_i32_1 = arith.constant 0 : i32
    return %c0_i32, %c0_i32_0 : i32, i32
  }
  func.func @transform_8(%arg0: i32) -> (i32, i32) {
    %c0_i32 = arith.constant 0 : i32
    %c0_i32_0 = arith.constant 0 : i32
    %c0_i32_1 = arith.constant 0 : i32
    return %c0_i32, %c0_i32_0 : i32, i32
  }
  func.func @transform_9(%arg0: i32) -> (i32, i32) {
    %c0_i32 = arith.constant 0 : i32
    %c0_i32_0 = arith.constant 0 : i32
    %c0_i32_1 = arith.constant 0 : i32
    return %c0_i32, %c0_i32_0 : i32, i32
  }
  func.func @transform_10(%arg0: i32) -> (i32, i32) {
    %c0_i32 = arith.constant 0 : i32
    %c0_i32_0 = arith.constant 0 : i32
    %c0_i32_1 = arith.constant 0 : i32
    return %c0_i32, %c0_i32_0 : i32, i32
  }
  func.func @transform_11(%arg0: i32) -> (i32, i32) {
    %c0_i32 = arith.constant 0 : i32
    %c0_i32_0 = arith.constant 0 : i32
    %c0_i32_1 = arith.constant 0 : i32
    return %c0_i32, %c0_i32_0 : i32, i32
  }
  func.func @transform_12(%arg0: i32) -> (i32, i32) {
    %c0_i32 = arith.constant 0 : i32
    %c0_i32_0 = arith.constant 0 : i32
    %c0_i32_1 = arith.constant 0 : i32
    return %c0_i32, %c0_i32_0 : i32, i32
  }
  func.func @transform_13(%arg0: i32) -> (i32, i32) {
    %c0_i32 = arith.constant 0 : i32
    %c0_i32_0 = arith.constant 0 : i32
    %c0_i32_1 = arith.constant 0 : i32
    return %c0_i32, %c0_i32_0 : i32, i32
  }
  func.func @transform_14(%arg0: i32) -> (i32, i32) {
    %c0_i32 = arith.constant 0 : i32
    %c0_i32_0 = arith.constant 0 : i32
    %c0_i32_1 = arith.constant 0 : i32
    return %c0_i32, %c0_i32_0 : i32, i32
  }
  func.func @transform_15(%arg0: i32) -> (i32, i32) {
    %c0_i32 = arith.constant 0 : i32
    %c0_i32_0 = arith.constant 0 : i32
    %c0_i32_1 = arith.constant 0 : i32
    return %c0_i32, %c0_i32_0 : i32, i32
  }
  func.func @transform_16(%arg0: i32) -> (i32, i32) {
    %c0_i32 = arith.constant 0 : i32
    %c0_i32_0 = arith.constant 0 : i32
    %c0_i32_1 = arith.constant 0 : i32
    return %c0_i32, %c0_i32_0 : i32, i32
  }
  func.func @transform_17(%arg0: i32) -> (i32, i32) {
    %c0_i32 = arith.constant 0 : i32
    %c0_i32_0 = arith.constant 0 : i32
    %c0_i32_1 = arith.constant 0 : i32
    return %c0_i32, %c0_i32_0 : i32, i32
  }
  func.func @transform_18(%arg0: i32) -> (i32, i32, i32) {
    %c0_i32 = arith.constant 0 : i32
    %c0_i32_0 = arith.constant 0 : i32
    %c0_i32_1 = arith.constant 0 : i32
    return %arg0, %c0_i32, %c0_i32_0 : i32, i32, i32
  }
}

</mosaic_0001>

<bundles_post_ra>
// kernel: forward.1
= control target key start
LH: loop header
LB: loop body
LE: loop exit
PB: predicated region body
PF: predicated region fallthrough
CT: control target
= control target key end

     0   :  { %s5193_s29 = smov 0   ;;  %s6710_s0 = inlined_call_operand.vmem [shape: f32[2,4,128,8], index: 0, kind: input, shape index: {}]   ;;  %s6711_s1 = inlined_call_operand.vmem [shape: f32[8,64], index: 1, kind: input, shape index: {}]   ;;  %s6712_s2 = inlined_call_operand.vmem [shape: f32[1,64], index: 2, kind: input, shape index: {}]   ;;  %s6713_s3 = inlined_call_operand.vmem [shape: f32[1,64], index: 3, kind: input, shape index: {}]   ;;  %s6714_s4 = inlined_call_operand.vmem [shape: bf16[512,128], index: 4, kind: input, shape index: {}]   ;;  %s6715_s5 = inlined_call_operand.vmem [shape: f32[1,128], index: 5, kind: input, shape index: {}]   ;;  %s6716_s6 = inlined_call_operand.vmem [shape: f32[1,128], index: 6, kind: input, shape index: {}]   ;;  %s6717_s7 = inlined_call_operand.vmem [shape: bf16[1024,256], index: 7, kind: input, shape index: {}]   ;;  %s6718_s8 = inlined_call_operand.vmem [shape: f32[1,256], index: 8, kind: input, shape index: {}]   ;;  %s6719_s9 = inlined_call_operand.vmem [shape: f32[1,256], index: 9, kind: input, shape index: {}]   ;;  %s6720_s10 = inlined_call_operand.vmem [shape: f32[256,192], index: 10, kind: input, shape index: {}]   ;;  %s6721_s11 = inlined_call_operand.vmem [shape: f32[1,192], index: 11, kind: input, shape index: {}]   ;;  %s6722_s12 = inlined_call_operand.vmem [shape: f32[128,64], index: 12, kind: input, shape index: {}]   ;;  %s6723_s13 = inlined_call_operand.vmem [shape: f32[1,64], index: 13, kind: input, shape index: {}]   ;;  %s6724_s14 = inlined_call_operand.vmem [shape: f32[64,7], index: 14, kind: input, shape index: {}]   ;;  %s6725_s15 = inlined_call_operand.vmem [shape: f32[1,7], index: 15, kind: input, shape index: {}]   ;;  %s6726_s16 = inlined_call_operand.vmem [shape: f32[64,1], index: 16, kind: input, shape index: {}]   ;;  %s6727_s17 = inlined_call_operand.<no memory space> [shape: f32[1,1], index: 17, kind: input, shape index: {}]   ;;  %s6728_s18 = inlined_call_operand.vmem [shape: f32[2,8,128], index: 18, kind: output, shape index: {}]  }
   0x1   :  { %6732 = sst [smem:[#allocation8_spill]] %s6710_s0  ;;  %v23_v0 = vstv %s6727_s17 }
   0x2   :  { %6733 = sst [smem:[#allocation9_spill]] %s6711_s1  ;;  %24 = vst [vmem:[#allocation4] sm:$0x1] %v23_v0 }
   0x3   :  { %6734 = sst [smem:[#allocation10_spill]] %s6712_s2 }
   0x4 LB: > { %s4032_s30 = sadd.s32 4294967295, %s5089_s29   ;;  %p4036_p0 = scmp.ge.s32.totalorder %s5089_s29, 1  ;;  %s5089_s29 = sphi %s5193_s29, %s30_s29  }
   0x5   : > { %p514_p1 = scmp.lt.s32.totalorder %s5089_s29, 3 }
   0x7   : > { %p515_p2 = pnand %p4036_p0, %p514_p1 }
   0x9   : > { %518 = sbr.rel (%p515_p2) target bundleno = 1945 (0x799), region = 92 }
   0xe   : > { %s6735_s1 = sld [smem:[#allocation9_spill]]  ;;  %p567_p3 = scmp.lt.s32.totalorder %s4032_s30, 1  ;;  %vm596_vm0 = vcmask 64512   ;;  %vm1672_vm1 = vcmask 523264   ;;  %vm3528_vm2 = vcmask 1040384   ;;  %vm5093_vm3 = vmmov 0  }
   0xf   : > { %s6736_s22 = sld [smem:[#allocation8_spill]]  ;;  %vm3867_vm4 = vcmask 49152   ;;  %s5094_s20 = smov 7   ;;  %vm3971_vm5 = vcmask 56320  }
  0x10   : > { %s6749_s30 = smov (!%p567_p3, %s4032_s30), 1 }
  0x11   : > { %s4320_s17 = sshll.u32 %s6749_s30, 9  ;;  %s4039_s21 = sshll.u32 %s6749_s30, 3 }
  0x12   : > { %s575_s23 = scalar_lea.vmem %s6728_s18, %s4039_s21 }
  0x14   : > { %v577_v1 = vld [vmem:[%s6735_s1] sm:$0xff] }
  0x15   : > { %4600 = vmatprep.subr.mxu0 %v577_v1  ;;  %4626 = vmatprep.subr.mxu1 %v577_v1  ;;  %s5210_s2 = scalar_lea.vmem %s6736_s22, %s4320_s17  ;;  %s6740_s22 = sld [smem:[#allocation10_spill]] }
  0x16   : > { %4601 = vmatpush3.msra.mxu0 %v577_v1  ;;  %4627 = vmatpush3.msra.mxu1 %v577_v1  ;;  %v580_v2 = vld [vmem:[%s5210_s2] sm:$0xff]  ;;  %v581_v4 = vld [vmem:[%s5210_s2 + $0x8] sm:$0xff]  ;;  %v582_v6 = vld [vmem:[%s5210_s2 + $0x10] sm:$0xff] }
  0x17   : > { %4652 = vmatprep.subr.mxu0 %v577_v1  ;;  %4678 = vmatprep.subr.mxu1 %v577_v1  ;;  %v4058_v3 = vld [vmem:[%s5210_s2 + $0x80] sm:$0xff]  ;;  %v4059_v5 = vld [vmem:[%s5210_s2 + $0x88] sm:$0xff]  ;;  %v4060_v7 = vld [vmem:[%s5210_s2 + $0x90] sm:$0xff] }
  0x18   : > { %4602 = vmatprep.mubr.msk.f32.mxu0 %vm596_vm0, %v580_v2  ;;  %4628 = vmatprep.mubr.msk.f32.mxu1 %vm596_vm0, %v4058_v3  ;;  %v583_v8 = vld [vmem:[%s5210_s2 + $0x18] sm:$0xff]  ;;  %v584_v10 = vld [vmem:[%s5210_s2 + $0x20] sm:$0xff]  ;;  %v585_v12 = vld [vmem:[%s5210_s2 + $0x28] sm:$0xff]  ;;  %v5091_v2 = vmov 0.0  }
  0x19   : > { %4603 = vmatmul.mubr.msk.f32.vlgmr.msra.gmra.mxu0 %vm596_vm0, %v581_v4  ;;  %4629 = vmatmul.mubr.msk.f32.vlgmr.msra.gmra.mxu1 %vm596_vm0, %v4059_v5  ;;  %v4061_v9 = vld [vmem:[%s5210_s2 + $0x98] sm:$0xff]  ;;  %v4062_v11 = vld [vmem:[%s5210_s2 + $0xa0] sm:$0xff]  ;;  %v4063_v13 = vld [vmem:[%s5210_s2 + $0xa8] sm:$0xff]  ;;  %1673 = vst.msk [vmem:[#allocation2] sm:$0xff] %vm1672_vm1, %v5091_v2 }
  0x1a   : > { %4653 = vmatpush3.msra.mxu0 %v577_v1  ;;  %4679 = vmatpush3.msra.mxu1 %v577_v1  ;;  %v586_v14 = vld [vmem:[%s5210_s2 + $0x30] sm:$0xff]  ;;  %v587_v16 = vld [vmem:[%s5210_s2 + $0x38] sm:$0xff]  ;;  %v588_v18 = vld [vmem:[%s5210_s2 + $0x40] sm:$0xff]  ;;  %1690 = vst.msk [vmem:[#allocation2 + $0x88] sm:$0xff] %vm1672_vm1, %v5091_v2 }
  0x1b   : > { %4605 = vmatprep.mubr.msk.f32.mxu0 %vm596_vm0, %v582_v6  ;;  %4631 = vmatprep.mubr.msk.f32.mxu1 %vm596_vm0, %v4060_v7  ;;  %v4064_v15 = vld [vmem:[%s5210_s2 + $0xb0] sm:$0xff]  ;;  %v4065_v17 = vld [vmem:[%s5210_s2 + $0xb8] sm:$0xff]  ;;  %v4066_v19 = vld [vmem:[%s5210_s2 + $0xc0] sm:$0xff]  ;;  %2508 = vst [vmem:[#allocation3] sm:$0xff] %v5091_v2 }
  0x1c   : > { %v589_v20 = vld [vmem:[%s5210_s2 + $0x48] sm:$0xff]  ;;  %v590_v22 = vld [vmem:[%s5210_s2 + $0x50] sm:$0xff]  ;;  %v591_v24 = vld [vmem:[%s5210_s2 + $0x58] sm:$0xff]  ;;  %2511 = vst [vmem:[#allocation3 + $0x18] sm:$0xff] %v5091_v2 }
  0x1d   : > { %4606 = vmatmul.mubr.msk.f32.gmra.mxu0 %vm596_vm0, %v583_v8  ;;  %4632 = vmatmul.mubr.msk.f32.gmra.mxu1 %vm596_vm0, %v4061_v9  ;;  %v4067_v21 = vld [vmem:[%s5210_s2 + $0xc8] sm:$0xff]  ;;  %v4068_v23 = vld [vmem:[%s5210_s2 + $0xd0] sm:$0xff]  ;;  %v4069_v25 = vld [vmem:[%s5210_s2 + $0xd8] sm:$0xff] }
  0x1e   : > { %4608 = vmatprep.mubr.msk.f32.mxu0 %vm596_vm0, %v584_v10  ;;  %4634 = vmatprep.mubr.msk.f32.mxu1 %vm596_vm0, %v4062_v11  ;;  %v592_v26 = vld [vmem:[%s5210_s2 + $0x60] sm:$0xff]  ;;  %v593_v28 = vld [vmem:[%s5210_s2 + $0x68] sm:$0xff]  ;;  %v594_v30 = vld [vmem:[%s5210_s2 + $0x70] sm:$0xff] }
  0x1f   : > { %v4070_v27 = vld [vmem:[%s5210_s2 + $0xe0] sm:$0xff]  ;;  %v4071_v29 = vld [vmem:[%s5210_s2 + $0xe8] sm:$0xff]  ;;  %v4072_v31 = vld [vmem:[%s5210_s2 + $0xf0] sm:$0xff] }
  0x20   : > { %v595_v32 = vld [vmem:[%s5210_s2 + $0x78] sm:$0xff]  ;;  %v4090_v34 = vld [vmem:[%s5210_s2 + $0x100] sm:$0xff]  ;;  %v4091_v36 = vld [vmem:[%s5210_s2 + $0x108] sm:$0xff] }
  0x21   : > { %4609 = vmatmul.mubr.msk.f32.gmra.mxu0 %vm596_vm0, %v585_v12  ;;  %4635 = vmatmul.mubr.msk.f32.gmra.mxu1 %vm596_vm0, %v4063_v13  ;;  %v4073_v33 = vld [vmem:[%s5210_s2 + $0xf8] sm:$0xff]  ;;  %v4122_v35 = vld [vmem:[%s5210_s2 + $0x180] sm:$0xff]  ;;  %v4123_v37 = vld [vmem:[%s5210_s2 + $0x188] sm:$0xff] }
  0x22   : > { %4611 = vmatprep.mubr.msk.f32.mxu0 %vm596_vm0, %v586_v14  ;;  %4637 = vmatprep.mubr.msk.f32.mxu1 %vm596_vm0, %v4064_v15  ;;  %v4092_v38 = vld [vmem:[%s5210_s2 + $0x110] sm:$0xff]  ;;  %v4093_v40 = vld [vmem:[%s5210_s2 + $0x118] sm:$0xff]  ;;  %v4094_v42 = vld [vmem:[%s5210_s2 + $0x120] sm:$0xff] }
  0x23   : > { %v4124_v39 = vld [vmem:[%s5210_s2 + $0x190] sm:$0xff]  ;;  %v4125_v41 = vld [vmem:[%s5210_s2 + $0x198] sm:$0xff]  ;;  %v4126_v43 = vld [vmem:[%s5210_s2 + $0x1a0] sm:$0xff] }
  0x24   : > { %v4095_v44 = vld [vmem:[%s5210_s2 + $0x128] sm:$0xff]  ;;  %v4096_v46 = vld [vmem:[%s5210_s2 + $0x130] sm:$0xff]  ;;  %v4097_v48 = vld [vmem:[%s5210_s2 + $0x138] sm:$0xff] }
  0x25   : > { %4612 = vmatmul.mubr.msk.f32.gmra.mxu0 %vm596_vm0, %v587_v16  ;;  %4638 = vmatmul.mubr.msk.f32.gmra.mxu1 %vm596_vm0, %v4065_v17  ;;  %v4127_v45 = vld [vmem:[%s5210_s2 + $0x1a8] sm:$0xff]  ;;  %v4128_v47 = vld [vmem:[%s5210_s2 + $0x1b0] sm:$0xff]  ;;  %v4129_v49 = vld [vmem:[%s5210_s2 + $0x1b8] sm:$0xff] }
  0x26   : > { %4614 = vmatprep.mubr.msk.f32.mxu0 %vm596_vm0, %v588_v18  ;;  %4640 = vmatprep.mubr.msk.f32.mxu1 %vm596_vm0, %v4066_v19  ;;  %v4098_v50 = vld [vmem:[%s5210_s2 + $0x140] sm:$0xff]  ;;  %v4099_v52 = vld [vmem:[%s5210_s2 + $0x148] sm:$0xff]  ;;  %v4100_v54 = vld [vmem:[%s5210_s2 + $0x150] sm:$0xff] }
  0x27   : > { %v4130_v51 = vld [vmem:[%s5210_s2 + $0x1c0] sm:$0xff]  ;;  %v4131_v53 = vld [vmem:[%s5210_s2 + $0x1c8] sm:$0xff]  ;;  %v4132_v55 = vld [vmem:[%s5210_s2 + $0x1d0] sm:$0xff] }
  0x28   : > { %v4101_v56 = vld [vmem:[%s5210_s2 + $0x158] sm:$0xff]  ;;  %v4102_v58 = vld [vmem:[%s5210_s2 + $0x160] sm:$0xff]  ;;  %v4103_v60 = vld [vmem:[%s5210_s2 + $0x168] sm:$0xff] }
  0x29   : > { %4615 = vmatmul.mubr.msk.f32.gmra.mxu0 %vm596_vm0, %v589_v20  ;;  %4641 = vmatmul.mubr.msk.f32.gmra.mxu1 %vm596_vm0, %v4067_v21  ;;  %v4133_v57 = vld [vmem:[%s5210_s2 + $0x1d8] sm:$0xff]  ;;  %v4134_v59 = vld [vmem:[%s5210_s2 + $0x1e0] sm:$0xff]  ;;  %v4135_v61 = vld [vmem:[%s5210_s2 + $0x1e8] sm:$0xff] }
  0x2a   : > { %4617 = vmatprep.mubr.msk.f32.mxu0 %vm596_vm0, %v590_v22  ;;  %4643 = vmatprep.mubr.msk.f32.mxu1 %vm596_vm0, %v4068_v23  ;;  %v4104_v62 = vld [vmem:[%s5210_s2 + $0x170] sm:$0xff]  ;;  %v4105_v0 = vld [vmem:[%s5210_s2 + $0x178] sm:$0xff]  ;;  %v5385_v10 = vld [vmem:[%s6714_s4 + $0x68] sm:$0xff]  }
  0x2b   : > { %v4136_v63 = vld [vmem:[%s5210_s2 + $0x1f0] sm:$0xff]  ;;  %v4137_v1 = vld [vmem:[%s5210_s2 + $0x1f8] sm:$0xff]  ;;  %v5396_v12 = vld [vmem:[%s6714_s4 + $0xe8] sm:$0xff]   ;;  %s5092_s2 = smov 64  }
  0x2c   : > { %v5345_v3 = vld [vmem:[%s6714_s4 + $0x78] sm:$0xff]   ;;  %v5355_v5 = vld [vmem:[%s6714_s4 + $0x70] sm:$0xff]   ;;  %v5402_v13 = vld [vmem:[%s6714_s4 + $0x28] sm:$0xff]  }
  0x2d   : > { %4618 = vmatmul.mubr.msk.f32.gmra.mxu0 %vm596_vm0, %v591_v24  ;;  %4644 = vmatmul.mubr.msk.f32.gmra.mxu1 %vm596_vm0, %v4069_v25  ;;  %v5350_v4 = vld [vmem:[%s6714_s4 + $0x38] sm:$0xff]   ;;  %v5371_v8 = vld [vmem:[%s6714_s4 + $0xf0] sm:$0xff]   ;;  %v5409_v14 = vld [vmem:[%s6714_s4 + $0x60] sm:$0xff]  }
  0x2e   : > { %4620 = vmatprep.mubr.msk.f32.mxu0 %vm596_vm0, %v592_v26  ;;  %4646 = vmatprep.mubr.msk.f32.mxu1 %vm596_vm0, %v4070_v27  ;;  %v5360_v6 = vld [vmem:[%s6714_s4 + $0xf8] sm:$0xff]   ;;  %v5378_v9 = vld [vmem:[%s6714_s4 + $0x30] sm:$0xff]   ;;  %v5414_v15 = vld [vmem:[%s6714_s4 + $0xa8] sm:$0xff]  }
  0x2f   : > { %v5365_v7 = vld [vmem:[%s6714_s4 + $0xb8] sm:$0xff]   ;;  %4389 = vmatprep.subr.bf16.mxu0 %v5345_v3  ;;  %4411 = vmatprep.subr.bf16.mxu1 %v5360_v6  ;;  %v5390_v11 = vld [vmem:[%s6714_s4 + $0xb0] sm:$0xff]   ;;  %v5420_v16 = vld [vmem:[%s6714_s4 + $0xe0] sm:$0xff]  }
  0x30   : > { %v5426_v17 = vld [vmem:[%s6714_s4 + $0x20] sm:$0xff]   ;;  %v5433_v18 = vld [vmem:[%s6714_s4 + $0x58] sm:$0xff]   ;;  %v5457_v22 = vld [vmem:[%s6714_s4 + $0x50] sm:$0xff]  }
  0x31   : > { %4621 = vmatmul.mubr.msk.f32.gmra.mxu0 %vm596_vm0, %v593_v28  ;;  %4647 = vmatmul.mubr.msk.f32.gmra.mxu1 %vm596_vm0, %v4071_v29  ;;  %v5438_v19 = vld [vmem:[%s6714_s4 + $0xa0] sm:$0xff]   ;;  %v5444_v20 = vld [vmem:[%s6714_s4 + $0xd8] sm:$0xff]   ;;  %v5468_v24 = vld [vmem:[%s6714_s4 + $0xd0] sm:$0xff]  }
  0x32   : > { %4623 = vmatprep.mubr.msk.f32.mxu0 %vm596_vm0, %v594_v30  ;;  %4649 = vmatprep.mubr.msk.f32.mxu1 %vm596_vm0, %v4072_v31  ;;  %v5450_v21 = vld [vmem:[%s6714_s4 + $0x18] sm:$0xff]   ;;  %6737 = vst [vmem:[#allocation5_spill] sm:$0xff] %v5468_v24  ;;  %v5474_v25 = vld [vmem:[%s6714_s4 + $0x10] sm:$0xff]   ;;  %v5481_v26 = vld [vmem:[%s6714_s4 + $0x48] sm:$0xff]  }
  0x33   : > { %v5462_v23 = vld [vmem:[%s6714_s4 + $0x98] sm:$0xff]   ;;  %v5486_v27 = vld [vmem:[%s6714_s4 + $0x90] sm:$0xff]   ;;  %v5493_v28 = vld [vmem:[%s6714_s4 + $0x8] sm:$0xff]  }
  0x34   : > { %6738 = vst [vmem:[#allocation6_spill] sm:$0xff] %v5486_v27  ;;  %6739 = vst [vmem:[#allocation7_spill] sm:$0xff] %v5493_v28 }
  0x35   : > { %4624 = vmatmul.mubr.msk.f32.gmra.mxu0 %vm596_vm0, %v595_v32  ;;  %4650 = vmatmul.mubr.msk.f32.gmra.mxu1 %vm596_vm0, %v4073_v33  ;;  %v5501_v33 = vld [vmem:[%s6740_s22] ss:$0 sm:$0xff] }
  0x36   : > { %4654 = vmatprep.mubr.msk.f32.mxu0 %vm596_vm0, %v4090_v34  ;;  %4680 = vmatprep.mubr.msk.f32.mxu1 %vm596_vm0, %v4122_v35 }
  0x39   : > { %4655 = vmatmul.mubr.msk.f32.vlgmr.msra.gmra.mxu0 %vm596_vm0, %v4091_v36  ;;  %4681 = vmatmul.mubr.msk.f32.vlgmr.msra.gmra.mxu1 %vm596_vm0, %v4123_v37 }
  0x3a   : > { %4657 = vmatprep.mubr.msk.f32.mxu0 %vm596_vm0, %v4092_v38  ;;  %4683 = vmatprep.mubr.msk.f32.mxu1 %vm596_vm0, %v4124_v39 }
  0x3b   : > { %4390 = vmatpush3.bf16.msra.mxu0 %v5350_v4  ;;  %4412 = vmatpush3.bf16.msra.mxu1 %v5365_v7 }
  0x3c   : > { %4391 = vmatprep.subr.bf16.mxu0 %v5355_v5  ;;  %4413 = vmatprep.subr.bf16.mxu1 %v5371_v8 }
  0x3d   : > { %4658 = vmatmul.mubr.msk.f32.gmra.mxu0 %vm596_vm0, %v4093_v40  ;;  %4684 = vmatmul.mubr.msk.f32.gmra.mxu1 %vm596_vm0, %v4125_v41  ;;  %v5508_v40 = vld [vmem:[%s6713_s3] ss:$0 sm:$0xff] }
  0x3e   : > { %4660 = vmatprep.mubr.msk.f32.mxu0 %vm596_vm0, %v4094_v42  ;;  %4686 = vmatprep.mubr.msk.f32.mxu1 %vm596_vm0, %v4126_v43 }
  0x3f   : > { %4392 = vmatpush3.bf16.msra.mxu0 %v5378_v9  ;;  %4414 = vmatpush3.bf16.msra.mxu1 %v5390_v11 }
  0x40   : > { %4393 = vmatprep.subr.bf16.mxu0 %v5385_v10  ;;  %4415 = vmatprep.subr.bf16.mxu1 %v5396_v12 }
  0x41   : > { %4661 = vmatmul.mubr.msk.f32.gmra.mxu0 %vm596_vm0, %v4095_v44  ;;  %4687 = vmatmul.mubr.msk.f32.gmra.mxu1 %vm596_vm0, %v4127_v45 }
  0x42   : > { %4663 = vmatprep.mubr.msk.f32.mxu0 %vm596_vm0, %v4096_v46  ;;  %4689 = vmatprep.mubr.msk.f32.mxu1 %vm596_vm0, %v4128_v47 }
  0x43   : > { %4394 = vmatpush3.bf16.msra.mxu0 %v5402_v13  ;;  %4416 = vmatpush3.bf16.msra.mxu1 %v5414_v15 }
  0x44   : > { %4395 = vmatprep.subr.bf16.mxu0 %v5409_v14  ;;  %4417 = vmatprep.subr.bf16.mxu1 %v5420_v16 }
  0x45   : > { %4664 = vmatmul.mubr.msk.f32.gmra.mxu0 %vm596_vm0, %v4097_v48  ;;  %4690 = vmatmul.mubr.msk.f32.gmra.mxu1 %vm596_vm0, %v4129_v49 }
  0x46   : > { %4666 = vmatprep.mubr.msk.f32.mxu0 %vm596_vm0, %v4098_v50  ;;  %4692 = vmatprep.mubr.msk.f32.mxu1 %vm596_vm0, %v4130_v51 }
  0x47   : > { %4396 = vmatpush3.bf16.msra.mxu0 %v5426_v17  ;;  %4418 = vmatpush3.bf16.msra.mxu1 %v5438_v19 }
  0x48   : > { %4397 = vmatprep.subr.bf16.mxu0 %v5433_v18  ;;  %4419 = vmatprep.subr.bf16.mxu1 %v5444_v20 }
  0x49   : > { %4667 = vmatmul.mubr.msk.f32.gmra.mxu0 %vm596_vm0, %v4099_v52  ;;  %4693 = vmatmul.mubr.msk.f32.gmra.mxu1 %vm596_vm0, %v4131_v53 }
  0x4a   : > { %4669 = vmatprep.mubr.msk.f32.mxu0 %vm596_vm0, %v4100_v54  ;;  %4695 = vmatprep.mubr.msk.f32.mxu1 %vm596_vm0, %v4132_v55 }
  0x4b   : > { %4398 = vmatpush3.bf16.msra.mxu0 %v5450_v21  ;;  %4420 = vmatpush3.bf16.msra.mxu1 %v5462_v23 }
  0x4c   : > { %4399 = vmatprep.subr.bf16.mxu0 %v5457_v22  ;;  %4421 = vmatprep.subr.bf16.mxu1 %v5468_v24 }
  0x4d   : > { %4670 = vmatmul.mubr.msk.f32.gmra.mxu0 %vm596_vm0, %v4101_v56  ;;  %4696 = vmatmul.mubr.msk.f32.gmra.mxu1 %vm596_vm0, %v4133_v57 }
  0x4e   : > { %4672 = vmatprep.mubr.msk.f32.mxu0 %vm596_vm0, %v4102_v58  ;;  %4698 = vmatprep.mubr.msk.f32.mxu1 %vm596_vm0, %v4134_v59 }
  0x4f   : > { %4400 = vmatpush3.bf16.msra.mxu0 %v5474_v25  ;;  %4422 = vmatpush3.bf16.msra.mxu1 %v5486_v27 }
  0x50   : > { %4401 = vmatprep.subr.bf16.mxu0 %v5481_v26 }
  0x51   : > { %4673 = vmatmul.mubr.msk.f32.gmra.mxu0 %vm596_vm0, %v4103_v60  ;;  %4699 = vmatmul.mubr.msk.f32.gmra.mxu1 %vm596_vm0, %v4135_v61 }
  0x52   : > { %4675 = vmatprep.mubr.msk.f32.mxu0 %vm596_vm0, %v4104_v62  ;;  %4701 = vmatprep.mubr.msk.f32.mxu1 %vm596_vm0, %v4136_v63 }
  0x53   : > { %4402 = vmatpush3.bf16.msra.mxu0 %v5493_v28 }
  0x55   : > { %4676 = vmatmul.mubr.msk.f32.gmra.mxu0 %vm596_vm0, %v4105_v0  ;;  %4702 = vmatmul.mubr.msk.f32.gmra.mxu1 %vm596_vm0, %v4137_v1 }
  0xd9   : > { %v4604_v29 = vpop.f32.mrf.mxu0  ;;  %v4630_v30 = vpop.f32.mrf.mxu1 }
  0xda   : > { %v797_v36 = vmul.f32 %v4604_v29, %v5501_v33  ;;  %v1061_v37 = vmul.f32 %v4630_v30, %v5501_v33 }
  0xdb   : > { %v711_v31 = vpop.f32.mrf.mxu0  ;;  %v981_v32 = vpop.f32.mrf.mxu1 }
  0xdc   : > { %v796_v41 = vmul.f32 %v5501_v33, %v711_v31  ;;  %v1060_v42 = vmul.f32 %v5501_v33, %v981_v32  ;;  %v819_v51 = vadd.f32 %v5508_v40, %v797_v36  ;;  %v1077_v52 = vadd.f32 %v5508_v40, %v1061_v37 }
  0xdd   : > { %v4607_v34 = vpop.f32.mrf.mxu0  ;;  %v4633_v35 = vpop.f32.mrf.mxu1 }
  0xde   : > { %v799_v43 = vmul.f32 %v4607_v34, %v5501_v33  ;;  %v1063_v44 = vmul.f32 %v4633_v35, %v5501_v33  ;;  %v818_v55 = vadd.f32 %v5508_v40, %v796_v41  ;;  %v1076_v57 = vadd.f32 %v5508_v40, %v1060_v42 }
  0xdf   : > { %v721_v38 = vpop.f32.mrf.mxu0  ;;  %v991_v39 = vpop.f32.mrf.mxu1  ;;  %v835_v29 = vmax.f32 %v819_v51, 0.0  ;;  %v1093_v30 = vmax.f32 %v1077_v52, 0.0 }
  0xe0   : > { %v798_v47 = vmul.f32 %v5501_v33, %v721_v38  ;;  %v1062_v48 = vmul.f32 %v5501_v33, %v991_v39  ;;  %v821_v58 = vadd.f32 %v5508_v40, %v799_v43  ;;  %v1079_v59 = vadd.f32 %v5508_v40, %v1063_v44 }
  0xe1   : > { %v4610_v45 = vpop.f32.mrf.mxu0  ;;  %v4636_v46 = vpop.f32.mrf.mxu1  ;;  %v834_v39 = vmax.f32 %v818_v55, 0.0  ;;  %v1092_v41 = vmax.f32 %v1076_v57, 0.0 }
  0xe2   : > { %v801_v49 = vmul.f32 %v4610_v45, %v5501_v33  ;;  %v1065_v50 = vmul.f32 %v4636_v46, %v5501_v33  ;;  %v820_v63 = vadd.f32 %v5508_v40, %v798_v47  ;;  %v1078_v0 = vadd.f32 %v5508_v40, %v1062_v48 }
  0xe3   : > { %v731_v53 = vpop.f32.mrf.mxu0  ;;  %v1001_v54 = vpop.f32.mrf.mxu1  ;;  %v837_v42 = vmax.f32 %v821_v58, 0.0  ;;  %v1095_v43 = vmax.f32 %v1079_v59, 0.0 }
  0xe4   : > { %v800_v56 = vmul.f32 %v5501_v33, %v731_v53  ;;  %v1064_v60 = vmul.f32 %v5501_v33, %v1001_v54  ;;  %v823_v1 = vadd.f32 %v5508_v40, %v801_v49  ;;  %v1081_v2 = vadd.f32 %v5508_v40, %v1065_v50 }
  0xe5   : > { %v4613_v61 = vpop.f32.mrf.mxu0  ;;  %v4639_v62 = vpop.f32.mrf.mxu1  ;;  %v836_v46 = vmax.f32 %v820_v63, 0.0  ;;  %v1094_v47 = vmax.f32 %v1078_v0, 0.0  ;;  %v5535_v50 = vmax.f32 %v835_v29, %v1093_v30 }
  0xe6   : > { %v803_v31 = vmul.f32 %v4613_v61, %v5501_v33  ;;  %v1067_v32 = vmul.f32 %v4639_v62, %v5501_v33  ;;  %v822_v36 = vadd.f32 %v5508_v40, %v800_v56  ;;  %v1080_v37 = vadd.f32 %v5508_v40, %v1064_v60 }
  0xe7   : > { %v741_v34 = vpop.f32.mrf.mxu0  ;;  %v1011_v35 = vpop.f32.mrf.mxu1  ;;  %v839_v48 = vmax.f32 %v823_v1, 0.0  ;;  %v1097_v49 = vmax.f32 %v1081_v2, 0.0  ;;  %v5542_v60 = vmax.f32 %v834_v39, %v1092_v41  ;;  %v5547_v2 = vmax.f32 %v837_v42, %v1095_v43 }
  0xe8   : > { %v802_v38 = vmul.f32 %v5501_v33, %v741_v34  ;;  %v825_v51 = vadd.f32 %v5508_v40, %v803_v31  ;;  %v1083_v52 = vadd.f32 %v5508_v40, %v1067_v32  ;;  %v1066_v53 = vmul.f32 %v5501_v33, %v1011_v35 }
  0xe9   : > { %v4616_v44 = vpop.f32.mrf.mxu0  ;;  %v4642_v45 = vpop.f32.mrf.mxu1  ;;  %v838_v55 = vmax.f32 %v822_v36, 0.0  ;;  %v1096_v57 = vmax.f32 %v1080_v37, 0.0  ;;  %v5549_v29 = vmax.f32 %v836_v46, %v1094_v47  ;;  %v5551_v30 = vmax.f32 %v839_v48, %v1097_v49 }
  0xea   : > { %v824_v58 = vadd.f32 %v5508_v40, %v802_v38  ;;  %v805_v59 = vmul.f32 %v4616_v44, %v5501_v33  ;;  %v1069_v61 = vmul.f32 %v4642_v45, %v5501_v33  ;;  %v841_v32 = vmax.f32 %v825_v51, 0.0 }
  0xeb   : > { %v751_v54 = vpop.f32.mrf.mxu0  ;;  %v1021_v56 = vpop.f32.mrf.mxu1  ;;  %v1099_v34 = vmax.f32 %v1083_v52, 0.0  ;;  %v1082_v35 = vadd.f32 %v5508_v40, %v1066_v53  ;;  %v5556_v39 = vmax.f32 %v838_v55, %v1096_v57 }
  0xec   : > { %v804_v62 = vmul.f32 %v5501_v33, %v751_v54  ;;  %v1068_v63 = vmul.f32 %v5501_v33, %v1021_v56  ;;  %v840_v41 = vmax.f32 %v824_v58, 0.0  ;;  %v827_v42 = vadd.f32 %v5508_v40, %v805_v59 }
  0xed   : > { %v4619_v0 = vpop.f32.mrf.mxu0  ;;  %v4645_v1 = vpop.f32.mrf.mxu1  ;;  %v1085_v44 = vadd.f32 %v5508_v40, %v1069_v61  ;;  %v5568_v56 = vmax.f32 %v841_v32, %v1099_v34  ;;  %v1098_v55 = vmax.f32 %v1082_v35, 0.0 }
  0xee   : > { %v807_v31 = vmul.f32 %v4619_v0, %v5501_v33  ;;  %v1071_v36 = vmul.f32 %v4645_v1, %v5501_v33  ;;  %v826_v45 = vadd.f32 %v5508_v40, %v804_v62  ;;  %v1084_v46 = vadd.f32 %v5508_v40, %v1068_v63 }
  0xef   : > { %v761_v37 = vpop.f32.mrf.mxu0  ;;  %v1031_v38 = vpop.f32.mrf.mxu1  ;;  %v843_v62 = vmax.f32 %v827_v42, 0.0 }
  0xf0   : > { %v806_v43 = vmul.f32 %v5501_v33, %v761_v37  ;;  %v1070_v47 = vmul.f32 %v5501_v33, %v1031_v38  ;;  %v829_v51 = vadd.f32 %v5508_v40, %v807_v31  ;;  %v1087_v52 = vadd.f32 %v5508_v40, %v1071_v36 }
  0xf1   : > { %v4622_v48 = vpop.f32.mrf.mxu0  ;;  %v4648_v49 = vpop.f32.mrf.mxu1  ;;  %v1101_v31 = vmax.f32 %v1085_v44, 0.0  ;;  %v842_v36 = vmax.f32 %v826_v45, 0.0  ;;  %v1100_v37 = vmax.f32 %v1084_v46, 0.0  ;;  %v5580_v45 = vmax.f32 %v840_v41, %v1098_v55 }
  0xf2   : > { %v809_v53 = vmul.f32 %v4622_v48, %v5501_v33  ;;  %v1073_v54 = vmul.f32 %v4648_v49, %v5501_v33  ;;  %v828_v57 = vadd.f32 %v5508_v40, %v806_v43  ;;  %v1086_v58 = vadd.f32 %v5508_v40, %v1070_v47 }
  0xf3   : > { %v771_v59 = vpop.f32.mrf.mxu0  ;;  %v1041_v61 = vpop.f32.mrf.mxu1  ;;  %v845_v38 = vmax.f32 %v829_v51, 0.0  ;;  %v1103_v43 = vmax.f32 %v1087_v52, 0.0 }
  0xf4   : > { %v831_v63 = vadd.f32 %v5508_v40, %v809_v53  ;;  %v1089_v0 = vadd.f32 %v5508_v40, %v1073_v54  ;;  %v808_v1 = vmul.f32 %v5501_v33, %v771_v59  ;;  %v1072_v32 = vmul.f32 %v5501_v33, %v1041_v61 }
  0xf5   : > { %v4625_v34 = vpop.f32.mrf.mxu0  ;;  %v4651_v35 = vpop.f32.mrf.mxu1  ;;  %v844_v42 = vmax.f32 %v828_v57, 0.0  ;;  %v1102_v49 = vmax.f32 %v1086_v58, 0.0 }
  0xf6   : > { %v830_v47 = vadd.f32 %v5508_v40, %v808_v1  ;;  %v811_v48 = vmul.f32 %v4625_v34, %v5501_v33  ;;  %v1088_v53 = vadd.f32 %v5508_v40, %v1072_v32  ;;  %v1075_v54 = vmul.f32 %v4651_v35, %v5501_v33 }
  0xf7   : > { %v781_v59 = vpop.f32.mrf.mxu0  ;;  %v1051_v44 = vpop.f32.mrf.mxu1  ;;  %v847_v46 = vmax.f32 %v831_v63, 0.0  ;;  %v1105_v61 = vmax.f32 %v1089_v0, 0.0  ;;  %v5587_v32 = vmax.f32 %v843_v62, %v1101_v31  ;;  %v5589_v35 = vmax.f32 %v842_v36, %v1100_v37 }
  0xf8   : > { %v810_v27 = vmul.f32 %v5501_v33, %v781_v59  ;;  %v846_v51 = vmax.f32 %v830_v47, 0.0  ;;  %v1104_v52 = vmax.f32 %v1088_v53, 0.0  ;;  %v5584_v1 = vadd.f32 %v5508_v40, %v811_v48 }
  0xf9   : > { %v1074_v57 = vmul.f32 %v5501_v33, %v1051_v44  ;;  %v4656_v58 = vpop.f32.mrf.mxu0  ;;  %v4682_v34 = vpop.f32.mrf.mxu1  ;;  %v5593_v63 = vmax.f32 %v845_v38, %v1103_v43  ;;  %v5595_v0 = vmax.f32 %v844_v42, %v1102_v49  ;;  %v5598_v47 = vadd.f32 %v5508_v40, %v1075_v54 }
  0xfa   : > { %v1335_v41 = vmul.f32 %v4656_v58, %v5501_v33  ;;  %v1609_v55 = vmul.f32 %v4682_v34, %v5501_v33  ;;  %v5601_v48 = vadd.f32 %v5508_v40, %v810_v27  ;;  %v5603_v62 = vmax.f32 %v847_v46, %v1105_v61 }
  0xfb   : > { %v1255_v53 = vpop.f32.mrf.mxu0  ;;  %v1529_v59 = vpop.f32.mrf.mxu1  ;;  %v5608_v38 = vmax.f32 %v846_v51, %v1104_v52  ;;  %v5612_v42 = vadd.f32 %v5508_v40, %v1074_v57 }
  0xfc   : > { %v1351_v31 = vadd.f32 %v5508_v40, %v1335_v41  ;;  %v1625_v36 = vadd.f32 %v5508_v40, %v1609_v55  ;;  %v1334_v37 = vmul.f32 %v5501_v33, %v1255_v53  ;;  %v1608_v27 = vmul.f32 %v5501_v33, %v1529_v59 }
  0xfd   : > { %v4659_v49 = vpop.f32.mrf.mxu0  ;;  %v4685_v54 = vpop.f32.mrf.mxu1 }
  0xfe   : > { %v1367_v44 = vmax.f32 %v1351_v31, 0.0  ;;  %v1641_v46 = vmax.f32 %v1625_v36, 0.0  ;;  %v1350_v61 = vadd.f32 %v5508_v40, %v1334_v37  ;;  %v1337_v58 = vmul.f32 %v4659_v49, %v5501_v33 }
  0xff   : > { %v1624_v52 = vadd.f32 %v5508_v40, %v1608_v27  ;;  %v1611_v41 = vmul.f32 %v4685_v54, %v5501_v33  ;;  %v1265_v57 = vpop.f32.mrf.mxu0  ;;  %v1539_v55 = vpop.f32.mrf.mxu1 }
 0x100   : > { %v1383_v53 = vmax.f32 %v5535_v50, %v1367_v44  ;;  %v1366_v59 = vmax.f32 %v1350_v61, 0.0  ;;  %v1353_v31 = vadd.f32 %v5508_v40, %v1337_v58  ;;  %v1336_v36 = vmul.f32 %v5501_v33, %v1265_v57 }
 0x101   : > { %v1640_v49 = vmax.f32 %v1624_v52, 0.0  ;;  %v1627_v43 = vadd.f32 %v5508_v40, %v1611_v41  ;;  %v1610_v51 = vmul.f32 %v5501_v33, %v1539_v55  ;;  %v4662_v34 = vpop.f32.mrf.mxu0  ;;  %v4688_v27 = vpop.f32.mrf.mxu1 }
 0x102   : > { %v1657_v28 = vmax.f32 %v1383_v53, %v1641_v46  ;;  %v1382_v54 = vmax.f32 %v5542_v60, %v1366_v59  ;;  %v1369_v24 = vmax.f32 %v1353_v31, 0.0  ;;  %v1352_v50 = vadd.f32 %v5508_v40, %v1336_v36 }
 0x103   : > { %v1643_v44 = vmax.f32 %v1627_v43, 0.0  ;;  %v1626_v61 = vadd.f32 %v5508_v40, %v1610_v51  ;;  %v1339_v58 = vmul.f32 %v4662_v34, %v5501_v33  ;;  %v1613_v57 = vmul.f32 %v4688_v27, %v5501_v33  ;;  %v1275_v52 = vpop.f32.mrf.mxu0  ;;  %v1549_v37 = vpop.f32.mrf.mxu1 }
 0x104   : > { %1675 = vst.msk [vmem:[#allocation2 + $0x10] sm:$0xff] %vm1672_vm1, %v1657_v28  ;;  %v1656_v41 = vmax.f32 %v1382_v54, %v1640_v49  ;;  %v1385_v55 = vmax.f32 %v5547_v2, %v1369_v24  ;;  %v1368_v46 = vmax.f32 %v1352_v50, 0.0  ;;  %v1338_v60 = vmul.f32 %v5501_v33, %v1275_v52 }
 0x105   : > { %v1642_v53 = vmax.f32 %v1626_v61, 0.0  ;;  %v1355_v59 = vadd.f32 %v5508_v40, %v1339_v58  ;;  %v1629_v43 = vadd.f32 %v5508_v40, %v1613_v57  ;;  %v1612_v51 = vmul.f32 %v5501_v33, %v1549_v37  ;;  %v4665_v34 = vpop.f32.mrf.mxu0  ;;  %v4691_v31 = vpop.f32.mrf.mxu1 }
 0x106   : > { %1674 = vst.msk [vmem:[#allocation2 + $0x8] sm:$0xff] %vm1672_vm1, %v1656_v41  ;;  %v1659_v36 = vmax.f32 %v1385_v55, %v1643_v44  ;;  %v1384_v28 = vmax.f32 %v5549_v29, %v1368_v46  ;;  %v1354_v49 = vadd.f32 %v5508_v40, %v1338_v60  ;;  %v1341_v24 = vmul.f32 %v4665_v34, %v5501_v33 }
 0x107   : > { %v1371_v2 = vmax.f32 %v1355_v59, 0.0  ;;  %v1645_v27 = vmax.f32 %v1629_v43, 0.0  ;;  %v1628_v54 = vadd.f32 %v5508_v40, %v1612_v51  ;;  %v1615_v50 = vmul.f32 %v4691_v31, %v5501_v33  ;;  %v1285_v61 = vpop.f32.mrf.mxu0  ;;  %v1559_v58 = vpop.f32.mrf.mxu1 }
 0x108   : > { %1677 = vst.msk [vmem:[#allocation2 + $0x20] sm:$0xff] %vm1672_vm1, %v1659_v36  ;;  %v1658_v37 = vmax.f32 %v1384_v28, %v1642_v53  ;;  %v1370_v57 = vmax.f32 %v1354_v49, 0.0  ;;  %v1357_v44 = vadd.f32 %v5508_v40, %v1341_v24  ;;  %v1340_v29 = vmul.f32 %v5501_v33, %v1285_v61 }
 0x109   : > { %v1387_v52 = vmax.f32 %v5551_v30, %v1371_v2  ;;  %v1644_v41 = vmax.f32 %v1628_v54, 0.0  ;;  %v1631_v55 = vadd.f32 %v5508_v40, %v1615_v50  ;;  %v1614_v46 = vmul.f32 %v5501_v33, %v1559_v58  ;;  %v4668_v60 = vpop.f32.mrf.mxu0  ;;  %v4694_v59 = vpop.f32.mrf.mxu1 }
 0x10a   : > { %1676 = vst.msk [vmem:[#allocation2 + $0x18] sm:$0xff] %vm1672_vm1, %v1658_v37  ;;  %v1386_v43 = vmax.f32 %v5556_v39, %v1370_v57  ;;  %v1373_v51 = vmax.f32 %v1357_v44, 0.0  ;;  %v1356_v53 = vadd.f32 %v5508_v40, %v1340_v29  ;;  %v1343_v34 = vmul.f32 %v4668_v60, %v5501_v33 }
 0x10b   : > { %v1661_v31 = vmax.f32 %v1387_v52, %v1645_v27  ;;  %v1647_v36 = vmax.f32 %v1631_v55, 0.0  ;;  %v1630_v30 = vadd.f32 %v5508_v40, %v1614_v46  ;;  %v1617_v28 = vmul.f32 %v4694_v59, %v5501_v33  ;;  %v1295_v49 = vpop.f32.mrf.mxu0  ;;  %v1569_v24 = vpop.f32.mrf.mxu1 }
 0x10c   : > { %v1660_v2 = vmax.f32 %v1386_v43, %v1644_v41  ;;  %v1389_v54 = vmax.f32 %v5568_v56, %v1373_v51  ;;  %v1372_v50 = vmax.f32 %v1356_v53, 0.0  ;;  %v1359_v61 = vadd.f32 %v5508_v40, %v1343_v34 }
 0x10d   : > { %1679 = vst.msk [vmem:[#allocation2 + $0x30] sm:$0xff] %vm1672_vm1, %v1661_v31  ;;  %v1646_v39 = vmax.f32 %v1630_v30, 0.0  ;;  %v1633_v58 = vadd.f32 %v5508_v40, %v1617_v28  ;;  %v1342_v27 = vmul.f32 %v5501_v33, %v1295_v49  ;;  %v1616_v37 = vmul.f32 %v5501_v33, %v1569_v24  ;;  %v4671_v57 = vpop.f32.mrf.mxu0  ;;  %v4697_v44 = vpop.f32.mrf.mxu1 }
 0x10e   : > { %1678 = vst.msk [vmem:[#allocation2 + $0x28] sm:$0xff] %vm1672_vm1, %v1660_v2  ;;  %v1663_v29 = vmax.f32 %v1389_v54, %v1647_v36  ;;  %v1388_v52 = vmax.f32 %v5580_v45, %v1372_v50  ;;  %v1375_v56 = vmax.f32 %v1359_v61, 0.0  ;;  %v1345_v41 = vmul.f32 %v4671_v57, %v5501_v33 }
 0x10f   : > { %v1649_v55 = vmax.f32 %v1633_v58, 0.0  ;;  %v1358_v46 = vadd.f32 %v5508_v40, %v1342_v27  ;;  %v1632_v60 = vadd.f32 %v5508_v40, %v1616_v37  ;;  %v1619_v59 = vmul.f32 %v4697_v44, %v5501_v33  ;;  %v1305_v43 = vpop.f32.mrf.mxu0  ;;  %v1579_v51 = vpop.f32.mrf.mxu1 }
 0x110   : > { %1681 = vst.msk [vmem:[#allocation2 + $0x40] sm:$0xff] %vm1672_vm1, %v1663_v29  ;;  %v1662_v53 = vmax.f32 %v1388_v52, %v1646_v39  ;;  %v1391_v34 = vmax.f32 %v5587_v32, %v1375_v56  ;;  %v1361_v31 = vadd.f32 %v5508_v40, %v1345_v41  ;;  %v1344_v45 = vmul.f32 %v5501_v33, %v1305_v43 }
 0x111   : > { %v1374_v36 = vmax.f32 %v1358_v46, 0.0  ;;  %v1648_v30 = vmax.f32 %v1632_v60, 0.0  ;;  %v1635_v28 = vadd.f32 %v5508_v40, %v1619_v59  ;;  %v1618_v49 = vmul.f32 %v5501_v33, %v1579_v51  ;;  %v4674_v24 = vpop.f32.mrf.mxu0  ;;  %v4700_v2 = vpop.f32.mrf.mxu1 }
 0x112   : > { %1680 = vst.msk [vmem:[#allocation2 + $0x38] sm:$0xff] %vm1672_vm1, %v1662_v53  ;;  %v1665_v54 = vmax.f32 %v1391_v34, %v1649_v55  ;;  %v1377_v50 = vmax.f32 %v1361_v31, 0.0  ;;  %v1360_v61 = vadd.f32 %v5508_v40, %v1344_v45  ;;  %v1347_v32 = vmul.f32 %v4674_v24, %v5501_v33 }
 0x113   : > { %v1390_v39 = vmax.f32 %v5589_v35, %v1374_v36  ;;  %v1651_v58 = vmax.f32 %v1635_v28, 0.0  ;;  %v1634_v27 = vadd.f32 %v5508_v40, %v1618_v49  ;;  %v1621_v37 = vmul.f32 %v4700_v2, %v5501_v33  ;;  %v1315_v57 = vpop.f32.mrf.mxu0  ;;  %v1589_v44 = vpop.f32.mrf.mxu1 }
 0x114   : > { %1683 = vst.msk [vmem:[#allocation2 + $0x50] sm:$0xff] %vm1672_vm1, %v1665_v54  ;;  %v1393_v29 = vmax.f32 %v5593_v63, %v1377_v50  ;;  %v1376_v52 = vmax.f32 %v1360_v61, 0.0  ;;  %v1363_v56 = vadd.f32 %v5508_v40, %v1347_v32  ;;  %v1346_v41 = vmul.f32 %v5501_v33, %v1315_v57 }
 0x115   : > { %v1664_v55 = vmax.f32 %v1390_v39, %v1648_v30  ;;  %v1650_v46 = vmax.f32 %v1634_v27, 0.0  ;;  %v1637_v35 = vadd.f32 %v5508_v40, %v1621_v37  ;;  %v1620_v60 = vmul.f32 %v5501_v33, %v1589_v44  ;;  %v4677_v59 = vpop.f32.mrf.mxu0  ;;  %v4703_v43 = vpop.f32.mrf.mxu1 }
 0x116   : > { %v1667_v51 = vmax.f32 %v1393_v29, %v1651_v58  ;;  %v1392_v53 = vmax.f32 %v5595_v0, %v1376_v52  ;;  %v1379_v34 = vmax.f32 %v1363_v56, 0.0  ;;  %v1362_v31 = vadd.f32 %v5508_v40, %v1346_v41 }
 0x117   : > { %1682 = vst.msk [vmem:[#allocation2 + $0x48] sm:$0xff] %vm1672_vm1, %v1664_v55  ;;  %v1653_v63 = vmax.f32 %v1637_v35, 0.0  ;;  %v1636_v45 = vadd.f32 %v5508_v40, %v1620_v60  ;;  %v1349_v36 = vmul.f32 %v4677_v59, %v5501_v33  ;;  %v1623_v30 = vmul.f32 %v4703_v43, %v5501_v33  ;;  %v1325_v28 = vpop.f32.mrf.mxu0  ;;  %v1599_v49 = vpop.f32.mrf.mxu1  ;;  %v5732_v43 = vld [vmem:[%s6714_s4 + $0x88] sm:$0xff]  }
 0x118   : > { %1685 = vst.msk [vmem:[#allocation2 + $0x60] sm:$0xff] %vm1672_vm1, %v1667_v51  ;;  %v1666_v24 = vmax.f32 %v1392_v53, %v1650_v46  ;;  %v1395_v2 = vmax.f32 %v5603_v62, %v1379_v34  ;;  %v1378_v0 = vmax.f32 %v1362_v31, 0.0  ;;  %v1348_v54 = vmul.f32 %v5501_v33, %v1325_v28  ;;  %v1782_v53 = vld [vmem:[#allocation2 + $0x7] ss:$8 sm:$0xf] }
 0x119   : > { %v1365_v50 = vadd.f32 %v5508_v40, %v1349_v36  ;;  %v1639_v61 = vadd.f32 %v5508_v40, %v1623_v30  ;;  %v1622_v32 = vmul.f32 %v5501_v33, %v1599_v49  ;;  %v1652_v27 = vmax.f32 %v1636_v45, 0.0  ;;  %v1783_v51 = vld [vmem:[#allocation2 + $0x7] ss:$8 sm:$0xf0] }
 0x11a   : > { %1684 = vst.msk [vmem:[#allocation2 + $0x58] sm:$0xff] %vm1672_vm1, %v1666_v24  ;;  %v1669_v39 = vmax.f32 %v1395_v2, %v1653_v63  ;;  %v1394_v58 = vmax.f32 %v5608_v38, %v1378_v0  ;;  %v1364_v37 = vadd.f32 %v5508_v40, %v1348_v54  ;;  %v6741_v57 = vmax.f32 %v5598_v47, 0.0  ;;  %v1766_v31 = vld [vmem:[#allocation2 + $0x5] ss:$8 sm:$0xf] }
 0x11b   : > { %v6742_v62 = vmax.f32 %v5584_v1, 0.0  ;;  %v1381_v29 = vmax.f32 %v1365_v50, 0.0  ;;  %v1655_v52 = vmax.f32 %v1639_v61, 0.0  ;;  %v1638_v56 = vadd.f32 %v5508_v40, %v1622_v32  ;;  %v5717_v40 = vld [vmem:[%s6714_s4 + $0x40] sm:$0xff]  }
 0x11c   : > { %v6743_v41 = vmax.f32 %v5612_v42, 0.0  ;;  %v6744_v33 = vmax.f32 %v5601_v48, 0.0  ;;  %1687 = vst.msk [vmem:[#allocation2 + $0x70] sm:$0xff] %vm1672_vm1, %v1669_v39  ;;  %v1668_v38 = vmax.f32 %v1394_v58, %v1652_v27  ;;  %v1380_v46 = vmax.f32 %v1364_v37, 0.0  ;;  %v5722_v48 = vld [vmem:[%s6714_s4 + $0xc8] sm:$0xff]   ;;  %v5727_v42 = vld [vmem:[%s6714_s4] sm:$0xff]   ;;  %4403 = vmatprep.subr.bf16.mxu0 %v5717_v40 }
 0x11d   : > { %v1123_v44 = vmax.f32 %v6742_v62, %v6741_v57  ;;  %v1654_v60 = vmax.f32 %v1638_v56, 0.0  ;;  %4423 = vmatprep.subr.bf16.mxu1 %v5722_v48  ;;  %v1767_v63 = vld [vmem:[#allocation2 + $0x5] ss:$8 sm:$0xf0]  ;;  %4404 = vmatpush3.bf16.msra.mxu0 %v5727_v42  ;;  %v1784_v0 = vor.u32 %v1783_v51, %v1782_v53 }
 0x11e   : > { %v1122_v55 = vmax.f32 %v6744_v33, %v6743_v41  ;;  %1686 = vst.msk [vmem:[#allocation2 + $0x68] sm:$0xff] %vm1672_vm1, %v1668_v38  ;;  %4424 = vmatpush3.bf16.msra.mxu1 %v5732_v43  ;;  %v5741_v36 = vld [vmem:[%s6714_s4 + $0xc0] sm:$0xff]   ;;  %4433 = vmatprep.subr.bf16.mxu0 %v5345_v3  ;;  %v1768_v50 = vor.u32 %v1767_v63, %v1766_v31 }
 0x11f   : > { %v1397_v35 = vmax.f32 %v1123_v44, %v1381_v29  ;;  %v5747_v30 = vld [vmem:[%s6714_s4 + $0x80] sm:$0xff]   ;;  %4425 = vmatprep.subr.bf16.mxu1 %v5741_v36 }
 0x120   : > { %v1396_v47 = vmax.f32 %v1122_v55, %v1380_v46  ;;  %v1815_v24 = vld [vmem:[#allocation2 + $0xb] ss:$8 sm:$0xf0]  ;;  %v1799_v2 = vld [vmem:[#allocation2 + $0x9] ss:$8 sm:$0xf0] }
 0x121   : > { %v1671_v1 = vmax.f32 %v1397_v35, %v1655_v52  ;;  %v1786_v34 = vld [vmem:[#allocation2 + $0x47] ss:$8 sm:$0xf]  ;;  %v1770_v45 = vld [vmem:[#allocation2 + $0x45] ss:$8 sm:$0xf] }
 0x122   : > { %v1670_v59 = vmax.f32 %v1396_v47, %v1654_v60  ;;  %v1818_v58 = vld [vmem:[#allocation2 + $0x4b] ss:$8 sm:$0xf]  ;;  %v1802_v27 = vld [vmem:[#allocation2 + $0x49] ss:$8 sm:$0xf]  ;;  %4426 = vmatpush3.bf16.msra.mxu1 %v5747_v30 }
 0x123   : > { %1689 = vst.msk [vmem:[#allocation2 + $0x80] sm:$0xff] %vm1672_vm1, %v1671_v1  ;;  %v1814_v57 = vld [vmem:[#allocation2 + $0xb] ss:$8 sm:$0xf]  ;;  %4455 = vmatprep.subr.bf16.mxu1 %v5360_v6 }
 0x124   : > { %1688 = vst.msk [vmem:[#allocation2 + $0x78] sm:$0xff] %vm1672_vm1, %v1670_v59  ;;  %v1798_v44 = vld [vmem:[#allocation2 + $0x9] ss:$8 sm:$0xf]  ;;  %v1816_v41 = vor.u32 %v1815_v24, %v1814_v57 }
 0x125   : > { %v1800_v33 = vor.u32 %v1799_v2, %v1798_v44  ;;  %v2167_v55 = vld [vmem:[#allocation2 + $0xd] ss:$8 sm:$0xf0]  ;;  %v2284_v38 = vld [vmem:[#allocation2 + $0xf] ss:$8 sm:$0xf0] }
 0x126   : > { %v2170_v46 = vld [vmem:[#allocation2 + $0x4d] ss:$8 sm:$0xf]  ;;  %v2287_v35 = vld [vmem:[#allocation2 + $0x4f] ss:$8 sm:$0xf] }
 0x127   : > { %v2166_v1 = vld [vmem:[#allocation2 + $0xd] ss:$8 sm:$0xf]  ;;  %v2283_v53 = vld [vmem:[#allocation2 + $0xf] ss:$8 sm:$0xf] }
 0x128   : > { %v2168_v6 = vor.u32 %v2167_v55, %v2166_v1  ;;  %v2285_v31 = vor.u32 %v2284_v38, %v2283_v53  ;;  %v2401_v63 = vld [vmem:[#allocation2 + $0x11] ss:$8 sm:$0xf0]  ;;  %v1778_v57 = vld [vmem:[#allocation2 + $0x46] ss:$8 sm:$0xf] }
 0x129   : > { %v2400_v2 = vld [vmem:[#allocation2 + $0x11] ss:$8 sm:$0xf]  ;;  %v1790_v38 = vld [vmem:[#allocation2 + $0x8] ss:$8 sm:$0xf] }
 0x12b   : > { %v1787_v28 = vld [vmem:[#allocation2 + $0x47] ss:$8 sm:$0xf0]  ;;  %v1771_v49 = vld [vmem:[#allocation2 + $0x45] ss:$8 sm:$0xf0] }
 0x12c   : > { %v1788_v54 = vor.u32 %v1787_v28, %v1786_v34  ;;  %v1772_v61 = vor.u32 %v1771_v49, %v1770_v45  ;;  %v1819_v32 = vld [vmem:[#allocation2 + $0x4b] ss:$8 sm:$0xf0]  ;;  %v1803_v39 = vld [vmem:[#allocation2 + $0x49] ss:$8 sm:$0xf0] }
 0x12d   : > { %v1820_v62 = vor.u32 %v1819_v32, %v1818_v58  ;;  %v1804_v29 = vor.u32 %v1803_v39, %v1802_v27  ;;  %v2171_v52 = vld [vmem:[#allocation2 + $0x4d] ss:$8 sm:$0xf0]  ;;  %v2288_v56 = vld [vmem:[#allocation2 + $0x4f] ss:$8 sm:$0xf0] }
 0x12e   : > { %v4789_v3 = vpack.i.bf16 %v1788_v54, %v1784_v0  ;;  %v4799_v37 = vpack.i.bf16 %v1772_v61, %v1768_v50  ;;  %v2172_v59 = vor.u32 %v2171_v52, %v2170_v46  ;;  %v2289_v51 = vor.u32 %v2288_v56, %v2287_v35  ;;  %v2405_v34 = vld [vmem:[#allocation2 + $0x51] ss:$8 sm:$0xf0]  ;;  %v1759_v50 = vld [vmem:[#allocation2 + $0x4] ss:$8 sm:$0xf0] }
 0x12f   : > { %v4794_v47 = vpack.i.bf16 %v1820_v62, %v1816_v41  ;;  %v4804_v60 = vpack.i.bf16 %v1804_v29, %v1800_v33  ;;  %v2404_v45 = vld [vmem:[#allocation2 + $0x51] ss:$8 sm:$0xf]  ;;  %v2402_v0 = vor.u32 %v2401_v63, %v2400_v2  ;;  %v1775_v61 = vld [vmem:[#allocation2 + $0x6] ss:$8 sm:$0xf0] }
 0x130   : > { %4790 = vrot.lane.b32.xlu0 %v4789_v3, %s5092_s2  ;;  %4800 = vrot.lane.b32.xlu1 %v4799_v37, %s5092_s2  ;;  %v4809_v28 = vpack.i.bf16 %v2172_v59, %v2168_v6  ;;  %v4814_v49 = vpack.i.bf16 %v2289_v51, %v2285_v31  ;;  %v2406_v24 = vor.u32 %v2405_v34, %v2404_v45  ;;  %v1758_v32 = vld [vmem:[#allocation2 + $0x4] ss:$8 sm:$0xf]  ;;  %v1807_v58 = vld [vmem:[#allocation2 + $0xa] ss:$8 sm:$0xf0] }
 0x131   : > { %v1763_v39 = vld [vmem:[#allocation2 + $0x44] ss:$8 sm:$0xf0]  ;;  %v1779_v27 = vld [vmem:[#allocation2 + $0x46] ss:$8 sm:$0xf0]  ;;  %v1760_v29 = vor.u32 %v1759_v50, %v1758_v32 }
 0x132   : > { %v4819_v54 = vpack.i.bf16 %v2406_v24, %v2402_v0  ;;  %v1762_v3 = vld [vmem:[#allocation2 + $0x44] ss:$8 sm:$0xf]  ;;  %v1774_v37 = vld [vmem:[#allocation2 + $0x6] ss:$8 sm:$0xf]  ;;  %v1780_v55 = vor.u32 %v1779_v27, %v1778_v57 }
 0x133   : > { %v1791_v62 = vld [vmem:[#allocation2 + $0x8] ss:$8 sm:$0xf0]  ;;  %v1764_v56 = vor.u32 %v1763_v39, %v1762_v3  ;;  %v1806_v41 = vld [vmem:[#allocation2 + $0xa] ss:$8 sm:$0xf]  ;;  %v1776_v33 = vor.u32 %v1775_v61, %v1774_v37 }
 0x134   : > { %4795 = vrot.lane.b32.xlu0 %v4794_v47, %s5092_s2  ;;  %4805 = vrot.lane.b32.xlu1 %v4804_v60, %s5092_s2  ;;  %v1811_v1 = vld [vmem:[#allocation2 + $0x4a] ss:$8 sm:$0xf0]  ;;  %v1795_v59 = vld [vmem:[#allocation2 + $0x48] ss:$8 sm:$0xf0]  ;;  %v1808_v51 = vor.u32 %v1807_v58, %v1806_v41  ;;  %v1792_v53 = vor.u32 %v1791_v62, %v1790_v38 }
 0x135   : > { %v1810_v31 = vld [vmem:[#allocation2 + $0x4a] ss:$8 sm:$0xf]  ;;  %v2159_v27 = vld [vmem:[#allocation2 + $0xc] ss:$8 sm:$0xf0] }
 0x136   : > { %v1812_v24 = vor.u32 %v1811_v1, %v1810_v31  ;;  %v2163_v3 = vld [vmem:[#allocation2 + $0x4c] ss:$8 sm:$0xf0] }
 0x137   : > { %v2158_v41 = vld [vmem:[#allocation2 + $0xc] ss:$8 sm:$0xf] }
 0x138   : > { %4810 = vrot.lane.b32.xlu0 %v4809_v28, %s5092_s2  ;;  %4815 = vrot.lane.b32.xlu1 %v4814_v49, %s5092_s2  ;;  %v1794_v28 = vld [vmem:[#allocation2 + $0x48] ss:$8 sm:$0xf] }
 0x139   : > { %v1796_v50 = vor.u32 %v1795_v59, %v1794_v28  ;;  %v5845_v1 = vld [vmem:[%s6714_s4 + $0xb8] sm:$0xff]   ;;  %v5852_v59 = vld [vmem:[%s6714_s4 + $0x68] sm:$0xff]  }
 0x13a   : > { %v5067_v31 = vld [vmem:[%s6714_s4 + $0xe8] sm:$0xff]   ;;  %v5070_v28 = vld [vmem:[%s6714_s4 + $0x58] sm:$0xff]  }
 0x13c   : > { %4820 = vrot.lane.b32.xlu0 %v4819_v54, %s5092_s2 }
 0x1a2   : > { %v4791_v44 = vpop.permute.xlu0 %4790  ;;  %v4801_v52 = vpop.permute.xlu1 %4800 }
 0x1a3   : > { %v4793_v46 = vunpack.i.h.bf16 %v4791_v44  ;;  %v4792_v35 = vunpack.i.l.bf16 %v4791_v44  ;;  %v4803_v47 = vunpack.i.h.bf16 %v4801_v52  ;;  %v4802_v60 = vunpack.i.l.bf16 %v4801_v52 }
 0x1a5   : > { %v1853_v34 = vsel %vm1672_vm1, %v1760_v29, %v4802_v60  ;;  %v1854_v6 = vsel %vm1672_vm1, %v1764_v56, %v4803_v47  ;;  %v1855_v63 = vsel %vm1672_vm1, %v1776_v33, %v4792_v35  ;;  %v1856_v45 = vsel %vm1672_vm1, %v1780_v55, %v4793_v46  ;;  %v2162_v33 = vld [vmem:[#allocation2 + $0x4c] ss:$8 sm:$0xf] }
 0x1a6   : > { %v1861_v49 = vpack.c.bf16 %v1854_v6, %v1853_v34  ;;  %v4796_v2 = vpop.permute.xlu0 %4795  ;;  %v4806_v0 = vpop.permute.xlu1 %4805  ;;  %v5756_v54 = vpack.c.bf16 %v1856_v45, %v1855_v63  ;;  %v2160_v46 = vor.u32 %v2159_v27, %v2158_v41  ;;  %v2164_v35 = vor.u32 %v2163_v3, %v2162_v33  ;;  %v5870_v34 = vld [vmem:[%s6714_s4 + $0xb0] sm:$0xff]   ;;  %v5876_v6 = vld [vmem:[%s6714_s4 + $0x60] sm:$0xff]   ;;  %v5069_v45 = vld [vmem:[%s6714_s4 + $0xa8] sm:$0xff]  }
 0x1a7   : > { %v4798_v61 = vunpack.i.h.bf16 %v4796_v2  ;;  %v4797_v32 = vunpack.i.l.bf16 %v4796_v2  ;;  %v4808_v39 = vunpack.i.h.bf16 %v4806_v0  ;;  %v4807_v58 = vunpack.i.l.bf16 %v4806_v0  ;;  %v5068_v63 = vld [vmem:[%s6714_s4 + $0x20] sm:$0xff]   ;;  %v5074_v0 = vld [vmem:[%s6714_s4 + $0x50] sm:$0xff]  }
 0x1a8   : > { %2089 = vmatprep.mubr.bf16.mxu0 %v5756_v54  ;;  %v5073_v2 = vld [vmem:[%s6714_s4 + $0xa0] sm:$0xff]   ;;  %v5081_v27 = vld [vmem:[%s6714_s4 + $0x90] sm:$0xff]  }
 0x1a9   : > { %v1860_v37 = vsel %vm1672_vm1, %v1812_v24, %v4798_v61  ;;  %v1859_v57 = vsel %vm1672_vm1, %v1808_v51, %v4797_v32  ;;  %2090 = vmatmul.mubr.bf16.vlgmr.msra.gmra.mxu0 %v1861_v49  ;;  %v1857_v62 = vsel %vm1672_vm1, %v1792_v53, %v4807_v58  ;;  %v1858_v44 = vsel %vm1672_vm1, %v1796_v50, %v4808_v39  ;;  %v5858_v51 = vld [vmem:[%s6714_s4 + $0xf0] sm:$0xff]   ;;  %v5864_v53 = vld [vmem:[%s6714_s4 + $0x28] sm:$0xff]   ;;  %v5071_v49 = vld [vmem:[%s6714_s4 + $0xe0] sm:$0xff]  }
 0x1aa   : > { %v5763_v29 = vpack.c.bf16 %v1860_v37, %v1859_v57  ;;  %4434 = vmatpush3.bf16.msra.mxu0 %v5350_v4  ;;  %v4811_v52 = vpop.permute.xlu0 %4810  ;;  %v5766_v56 = vpack.c.bf16 %v1858_v44, %v1857_v62  ;;  %v5072_v24 = vld [vmem:[%s6714_s4 + $0x18] sm:$0xff]   ;;  %v5076_v50 = vld [vmem:[%s6714_s4 + $0x10] sm:$0xff]   ;;  %v5078_v32 = vld [vmem:[%s6714_s4 + $0x48] sm:$0xff]  }
 0x1ab   : > { %v4813_v55 = vunpack.i.h.bf16 %v4811_v52  ;;  %v4812_v38 = vunpack.i.l.bf16 %v4811_v52  ;;  %4435 = vmatprep.subr.bf16.mxu0 %v5355_v5  ;;  %v6745_v5 = vld [vmem:[#allocation5_spill] sm:$0xff]  ;;  %v5080_v58 = vld [vmem:[%s6714_s4 + $0x8] sm:$0xff]  }
 0x1ac   : > { %2130 = vmatprep.mubr.bf16.mxu1 %v5763_v29  ;;  %2216 = vmatprep.mubr.bf16.mxu0 %v5766_v56  ;;  %v5077_v61 = vld [vmem:[%s6714_s4 + $0x98] sm:$0xff]   ;;  %v5079_v39 = vld [vmem:[%s6714_s4 + $0xd0] sm:$0xff]  }
 0x1ad   : > { %2131 = vmatmul.mubr.bf16.vlgmr.msra.gmra.mxu1 %v5766_v56  ;;  %v2181_v47 = vsel %vm1672_vm1, %v2160_v46, %v4812_v38  ;;  %v2182_v4 = vsel %vm1672_vm1, %v2164_v35, %v4813_v55  ;;  %v2393_v37 = vld [vmem:[#allocation2 + $0x10] ss:$8 sm:$0xf0] }
 0x1ae   : > { %4436 = vmatpush3.bf16.msra.mxu0 %v5378_v9  ;;  %4456 = vmatpush3.bf16.msra.mxu1 %v5365_v7  ;;  %v5776_v60 = vpack.c.bf16 %v2182_v4, %v2181_v47  ;;  %v6746_v7 = vld [vmem:[#allocation7_spill] sm:$0xff]  ;;  %v4816_v9 = vpop.permute.xlu1 %4815  ;;  %v4821_v3 = vpop.permute.xlu0 %4820  ;;  %v4868_v47 = vld [vmem:[%s6717_s7 + $0x50] ss:$8 sps:$4 sm:$0xff]   ;;  %v4870_v4 = vld [vmem:[%s6717_s7 + $0x54] ss:$8 sps:$4 sm:$0xff]  }
 0x1af   : > { %4437 = vmatprep.subr.bf16.mxu0 %v5385_v10  ;;  %4457 = vmatprep.subr.bf16.mxu1 %v5371_v8  ;;  %v6747_v8 = vld [vmem:[#allocation6_spill] sm:$0xff]  ;;  %v4823_v62 = vunpack.i.h.bf16 %v4821_v3  ;;  %v4822_v44 = vunpack.i.l.bf16 %v4821_v3  ;;  %v4936_v3 = vld [vmem:[%s6717_s7 + $0xa4] ss:$8 sps:$4 sm:$0xff]  }
 0x1b0   : > { %2257 = vmatprep.mubr.bf16.mxu1 %v5776_v60  ;;  %v2276_v10 = vld [vmem:[#allocation2 + $0xe] ss:$8 sm:$0xf0]  ;;  %v2397_v57 = vld [vmem:[#allocation2 + $0x50] ss:$8 sm:$0xf0] }
 0x1b1   : > { %v2392_v52 = vld [vmem:[#allocation2 + $0x10] ss:$8 sm:$0xf] }
 0x1b2   : > { %4438 = vmatpush3.bf16.msra.mxu0 %v5402_v13  ;;  %4458 = vmatpush3.bf16.msra.mxu1 %v5390_v11  ;;  %v2280_v11 = vld [vmem:[#allocation2 + $0x4e] ss:$8 sm:$0xf0]  ;;  %v4817_v13 = vunpack.i.l.bf16 %v4816_v9  ;;  %v2396_v41 = vld [vmem:[#allocation2 + $0x50] ss:$8 sm:$0xf]  ;;  %v2394_v33 = vor.u32 %v2393_v37, %v2392_v52 }
 0x1b3   : > { %4439 = vmatprep.subr.bf16.mxu0 %v5409_v14  ;;  %4459 = vmatprep.subr.bf16.mxu1 %v5396_v12  ;;  %v4818_v12 = vunpack.i.h.bf16 %v4816_v9  ;;  %v5807_v14 = vld [vmem:[%s6714_s4 + $0x78] sm:$0xff]   ;;  %v2398_v55 = vor.u32 %v2397_v57, %v2396_v41  ;;  %v4877_v9 = vld [vmem:[%s6717_s7 + $0x140] ss:$8 sps:$4 sm:$0xff]   ;;  %v4939_v37 = vld [vmem:[%s6717_s7 + $0x1a4] ss:$8 sps:$4 sm:$0xff]  }
 0x1b4   : > { %v2415_v38 = vsel %vm1672_vm1, %v2394_v33, %v4822_v44  ;;  %v4934_v57 = vld [vmem:[%s6717_s7 + $0xa0] ss:$8 sps:$4 sm:$0xff]   ;;  %v4942_v44 = vld [vmem:[%s6717_s7 + $0x94] ss:$8 sps:$4 sm:$0xff]   ;;  %v4940_v41 = vld [vmem:[%s6717_s7 + $0x90] ss:$8 sps:$4 sm:$0xff]  }
 0x1b5   : > { %v2416_v46 = vsel %vm1672_vm1, %v2398_v55, %v4823_v62  ;;  %v4937_v62 = vld [vmem:[%s6717_s7 + $0x1a0] ss:$8 sps:$4 sm:$0xff]   ;;  %v4945_v52 = vld [vmem:[%s6717_s7 + $0x194] ss:$8 sps:$4 sm:$0xff]   ;;  %v4943_v33 = vld [vmem:[%s6717_s7 + $0x190] ss:$8 sps:$4 sm:$0xff]  }
 0x1b6   : > { %4440 = vmatpush3.bf16.msra.mxu0 %v5426_v17  ;;  %4460 = vmatpush3.bf16.msra.mxu1 %v5414_v15  ;;  %v2275_v15 = vld [vmem:[#allocation2 + $0xe] ss:$8 sm:$0xf]  ;;  %v2417_v35 = vpack.c.bf16 %v2416_v46, %v2415_v38  ;;  %v4946_v46 = vld [vmem:[%s6717_s7 + $0x80] ss:$8 sps:$4 sm:$0xff]  }
 0x1b7   : > { %4441 = vmatprep.subr.bf16.mxu0 %v5433_v18  ;;  %4461 = vmatprep.subr.bf16.mxu1 %v5420_v16  ;;  %v2279_v16 = vld [vmem:[#allocation2 + $0x4e] ss:$8 sm:$0xf]  ;;  %v2277_v17 = vor.u32 %v2276_v10, %v2275_v15 }
 0x1b8   : > { %v2281_v18 = vor.u32 %v2280_v11, %v2279_v16  ;;  %v4879_v10 = vld [vmem:[%s6717_s7 + $0x144] ss:$8 sps:$4 sm:$0xff]   ;;  %v4882_v11 = vld [vmem:[%s6717_s7 + $0x34] ss:$8 sps:$4 sm:$0xff]  }
 0x1b9   : > { %v4888_v15 = vld [vmem:[%s6717_s7 + $0x24] ss:$8 sps:$4 sm:$0xff]  }
 0x1ba   : > { %4442 = vmatpush3.bf16.msra.mxu0 %v5450_v21  ;;  %4462 = vmatpush3.bf16.msra.mxu1 %v5438_v19  ;;  %v5815_v19 = vld [vmem:[%s6714_s4 + $0x38] sm:$0xff]   ;;  %v2299_v21 = vsel %vm1672_vm1, %v2281_v18, %v4818_v12  ;;  %v4891_v16 = vld [vmem:[%s6717_s7 + $0x124] ss:$8 sps:$4 sm:$0xff]   ;;  %v4889_v18 = vld [vmem:[%s6717_s7 + $0x120] ss:$8 sps:$4 sm:$0xff]  }
 0x1bb   : > { %4443 = vmatprep.subr.bf16.mxu0 %v5457_v22  ;;  %4463 = vmatprep.subr.bf16.mxu1 %v5444_v20  ;;  %v2298_v20 = vsel %vm1672_vm1, %v2277_v17, %v4817_v13  ;;  %v5824_v22 = vld [vmem:[%s6714_s4 + $0x70] sm:$0xff]   ;;  %v4886_v17 = vld [vmem:[%s6717_s7 + $0x20] ss:$8 sps:$4 sm:$0xff]   ;;  %v4948_v55 = vld [vmem:[%s6717_s7 + $0x84] ss:$8 sps:$4 sm:$0xff]  }
 0x1bc   : > { %v4885_v12 = vld [vmem:[%s6717_s7 + $0x134] ss:$8 sps:$4 sm:$0xff]   ;;  %v4880_v13 = vld [vmem:[%s6717_s7 + $0x30] ss:$8 sps:$4 sm:$0xff]   ;;  %v4951_v38 = vld [vmem:[%s6717_s7 + $0x184] ss:$8 sps:$4 sm:$0xff]  }
 0x1be   : > { %4444 = vmatpush3.bf16.msra.mxu0 %v5474_v25  ;;  %4464 = vmatpush3.bf16.msra.mxu1 %v5462_v23  ;;  %v5830_v23 = vld [vmem:[%s6714_s4 + $0xf8] sm:$0xff]   ;;  %v5834_v25 = vpack.c.bf16 %v2299_v21, %v2298_v20 }
 0x1bf   : > { %4445 = vmatprep.subr.bf16.mxu0 %v5481_v26  ;;  %4465 = vmatprep.subr.bf16.mxu1 %v6745_v5  ;;  %v5839_v26 = vld [vmem:[%s6714_s4 + $0x30] sm:$0xff]  }
 0x1c0   : > { %v4873_v5 = vld [vmem:[%s6717_s7 + $0x154] ss:$8 sps:$4 sm:$0xff]   ;;  %v4892_v21 = vld [vmem:[%s6717_s7 + $0x10] ss:$8 sps:$4 sm:$0xff]  }
 0x1c1   : > { %v4897_v20 = vld [vmem:[%s6717_s7 + $0x114] ss:$8 sps:$4 sm:$0xff]  }
 0x1c2   : > { %4446 = vmatpush3.bf16.msra.mxu0 %v6746_v7  ;;  %4466 = vmatpush3.bf16.msra.mxu1 %v6747_v8  ;;  %v4874_v7 = vld [vmem:[%s6717_s7 + $0x40] ss:$8 sps:$4 sm:$0xff]   ;;  %v4876_v8 = vld [vmem:[%s6717_s7 + $0x44] ss:$8 sps:$4 sm:$0xff]  }
 0x1c3   : > { %4447 = vmatprep.subr.bf16.mxu0 %v5717_v40  ;;  %4467 = vmatprep.subr.bf16.mxu1 %v5722_v48 }
 0x1c6   : > { %4448 = vmatpush3.bf16.msra.mxu0 %v5727_v42  ;;  %4468 = vmatpush3.bf16.msra.mxu1 %v5732_v43 }
 0x1c7   : > { %4469 = vmatprep.subr.bf16.mxu1 %v5741_v36  ;;  %4477 = vmatprep.subr.bf16.mxu0 %v5807_v14 }
 0x1c9   : > { %2217 = vmatmul.mubr.bf16.vlgmr.msra.gmra.mxu0 %v5756_v54  ;;  %v5075_v54 = vld [vmem:[%s6714_s4 + $0xd8] sm:$0xff]  }
 0x1ca   : > { %4470 = vmatpush3.bf16.msra.mxu1 %v5747_v30  ;;  %4478 = vmatpush3.bf16.msra.mxu0 %v5815_v19 }
 0x1cb   : > { %2333 = vmatprep.mubr.bf16.mxu0 %v5763_v29  ;;  %4479 = vmatprep.subr.bf16.mxu0 %v5824_v22 }
 0x1cc   : > { %4499 = vmatprep.subr.bf16.mxu1 %v5830_v23 }
 0x1cd   : > { %2258 = vmatmul.mubr.bf16.vlgmr.msra.gmra.mxu1 %v5763_v29 }
 0x1ce   : > { %4480 = vmatpush3.bf16.msra.mxu0 %v5839_v26  ;;  %4500 = vmatpush3.bf16.msra.mxu1 %v5845_v1 }
 0x1cf   : > { %2374 = vmatprep.mubr.bf16.mxu1 %v5834_v25  ;;  %4481 = vmatprep.subr.bf16.mxu0 %v5852_v59 }
 0x1d0   : > { %4501 = vmatprep.subr.bf16.mxu1 %v5858_v51 }
 0x1d2   : > { %4482 = vmatpush3.bf16.msra.mxu0 %v5864_v53  ;;  %4502 = vmatpush3.bf16.msra.mxu1 %v5870_v34 }
 0x1d3   : > { %4483 = vmatprep.subr.bf16.mxu0 %v5876_v6  ;;  %4503 = vmatprep.subr.bf16.mxu1 %v5067_v31 }
 0x1d6   : > { %4484 = vmatpush3.bf16.msra.mxu0 %v5068_v63  ;;  %4504 = vmatpush3.bf16.msra.mxu1 %v5069_v45 }
 0x1d7   : > { %4485 = vmatprep.subr.bf16.mxu0 %v5070_v28  ;;  %4505 = vmatprep.subr.bf16.mxu1 %v5071_v49 }
 0x1da   : > { %4486 = vmatpush3.bf16.msra.mxu0 %v5072_v24  ;;  %4506 = vmatpush3.bf16.msra.mxu1 %v5073_v2 }
 0x1db   : > { %4487 = vmatprep.subr.bf16.mxu0 %v5074_v0  ;;  %4507 = vmatprep.subr.bf16.mxu1 %v5075_v54 }
 0x1de   : > { %4488 = vmatpush3.bf16.msra.mxu0 %v5076_v50  ;;  %4508 = vmatpush3.bf16.msra.mxu1 %v5077_v61 }
 0x1df   : > { %4489 = vmatprep.subr.bf16.mxu0 %v5078_v32  ;;  %4509 = vmatprep.subr.bf16.mxu1 %v5079_v39 }
 0x1e2   : > { %4490 = vmatpush3.bf16.msra.mxu0 %v5080_v58  ;;  %4510 = vmatpush3.bf16.msra.mxu1 %v5081_v27 }
 0x1e3   : > { %4491 = vmatprep.subr.bf16.mxu0 %v5717_v40  ;;  %4511 = vmatprep.subr.bf16.mxu1 %v5722_v48 }
 0x1e6   : > { %4492 = vmatpush3.bf16.msra.mxu0 %v5727_v42  ;;  %4512 = vmatpush3.bf16.msra.mxu1 %v5732_v43 }
 0x1e7   : > { %4513 = vmatprep.subr.bf16.mxu1 %v5741_v36  ;;  %4521 = vmatprep.subr.bf16.mxu0 %v5807_v14  ;;  %v4883_v14 = vld [vmem:[%s6717_s7 + $0x130] ss:$8 sps:$4 sm:$0xff]  }
 0x1e9   : > { %2334 = vmatmul.mubr.bf16.vlgmr.msra.gmra.mxu0 %v5766_v56  ;;  %v4856_v56 = vld [vmem:[%s6717_s7 + $0x70] ss:$8 sps:$4 sm:$0xff]  }
 0x1ea   : > { %4514 = vmatpush3.bf16.msra.mxu1 %v5747_v30  ;;  %4522 = vmatpush3.bf16.msra.mxu0 %v5815_v19  ;;  %v4894_v19 = vld [vmem:[%s6717_s7 + $0x14] ss:$8 sps:$4 sm:$0xff]  }
 0x1eb   : > { %2450 = vmatprep.mubr.bf16.mxu0 %v5776_v60  ;;  %4523 = vmatprep.subr.bf16.mxu0 %v5824_v22  ;;  %v4895_v22 = vld [vmem:[%s6717_s7 + $0x110] ss:$8 sps:$4 sm:$0xff]  }
 0x1ec   : > { %4543 = vmatprep.subr.bf16.mxu1 %v5830_v23  ;;  %v4900_v23 = vld [vmem:[%s6717_s7 + $0x4] ss:$8 sps:$4 sm:$0xff]  }
 0x1ed   : > { %2375 = vmatmul.mubr.bf16.vlgmr.msra.gmra.mxu1 %v5776_v60  ;;  %v4871_v60 = vld [vmem:[%s6717_s7 + $0x150] ss:$8 sps:$4 sm:$0xff]  }
 0x1ee   : > { %4524 = vmatpush3.bf16.msra.mxu0 %v5839_v26  ;;  %4544 = vmatpush3.bf16.msra.mxu1 %v5845_v1  ;;  %v4898_v26 = vld [vmem:[%s6717_s7] ss:$8 sps:$4 sm:$0xff]  }
 0x1ef   : > { %2491 = vmatprep.mubr.bf16.mxu1 %v2417_v35  ;;  %4525 = vmatprep.subr.bf16.mxu0 %v5852_v59  ;;  %v4901_v1 = vld [vmem:[%s6717_s7 + $0x100] ss:$8 sps:$4 sm:$0xff]   ;;  %v4906_v59 = vld [vmem:[%s6717_s7 + $0xf4] ss:$8 sps:$4 sm:$0xff]  }
 0x1f0   : > { %4545 = vmatprep.subr.bf16.mxu1 %v5858_v51  ;;  %v4909_v51 = vld [vmem:[%s6717_s7 + $0x1f4] ss:$8 sps:$4 sm:$0xff]   ;;  %v4949_v35 = vld [vmem:[%s6717_s7 + $0x180] ss:$8 sps:$4 sm:$0xff]  }
 0x1f2   : > { %4526 = vmatpush3.bf16.msra.mxu0 %v5864_v53  ;;  %4546 = vmatpush3.bf16.msra.mxu1 %v5870_v34  ;;  %v4904_v53 = vld [vmem:[%s6717_s7 + $0xf0] ss:$8 sps:$4 sm:$0xff]  }
 0x1f3   : > { %4527 = vmatprep.subr.bf16.mxu0 %v5876_v6  ;;  %4547 = vmatprep.subr.bf16.mxu1 %v5067_v31  ;;  %v4907_v34 = vld [vmem:[%s6717_s7 + $0x1f0] ss:$8 sps:$4 sm:$0xff]   ;;  %v4912_v6 = vld [vmem:[%s6717_s7 + $0xe4] ss:$8 sps:$4 sm:$0xff]  }
 0x1f4   : > { %v4915_v31 = vld [vmem:[%s6717_s7 + $0x1e4] ss:$8 sps:$4 sm:$0xff]  }
 0x1f6   : > { %4528 = vmatpush3.bf16.msra.mxu0 %v5068_v63  ;;  %4548 = vmatpush3.bf16.msra.mxu1 %v5069_v45  ;;  %v4910_v63 = vld [vmem:[%s6717_s7 + $0xe0] ss:$8 sps:$4 sm:$0xff]  }
 0x1f7   : > { %4529 = vmatprep.subr.bf16.mxu0 %v5070_v28  ;;  %4549 = vmatprep.subr.bf16.mxu1 %v5071_v49  ;;  %v4913_v45 = vld [vmem:[%s6717_s7 + $0x1e0] ss:$8 sps:$4 sm:$0xff]   ;;  %v4916_v28 = vld [vmem:[%s6717_s7 + $0xd0] ss:$8 sps:$4 sm:$0xff]   ;;  %v4918_v49 = vld [vmem:[%s6717_s7 + $0xd4] ss:$8 sps:$4 sm:$0xff]  }
 0x1fa   : > { %4530 = vmatpush3.bf16.msra.mxu0 %v5072_v24  ;;  %4550 = vmatpush3.bf16.msra.mxu1 %v5073_v2  ;;  %v4919_v24 = vld [vmem:[%s6717_s7 + $0x1d0] ss:$8 sps:$4 sm:$0xff]   ;;  %v4921_v2 = vld [vmem:[%s6717_s7 + $0x1d4] ss:$8 sps:$4 sm:$0xff]  }
 0x1fb   : > { %4531 = vmatprep.subr.bf16.mxu0 %v5074_v0  ;;  %4551 = vmatprep.subr.bf16.mxu1 %v5075_v54  ;;  %v4922_v0 = vld [vmem:[%s6717_s7 + $0xc0] ss:$8 sps:$4 sm:$0xff]   ;;  %v4924_v54 = vld [vmem:[%s6717_s7 + $0xc4] ss:$8 sps:$4 sm:$0xff]  }
 0x1fe   : > { %4532 = vmatpush3.bf16.msra.mxu0 %v5076_v50  ;;  %4552 = vmatpush3.bf16.msra.mxu1 %v5077_v61  ;;  %v4925_v50 = vld [vmem:[%s6717_s7 + $0x1c0] ss:$8 sps:$4 sm:$0xff]   ;;  %v4927_v61 = vld [vmem:[%s6717_s7 + $0x1c4] ss:$8 sps:$4 sm:$0xff]  }
 0x1ff   : > { %4533 = vmatprep.subr.bf16.mxu0 %v5078_v32  ;;  %4553 = vmatprep.subr.bf16.mxu1 %v5079_v39  ;;  %v4930_v32 = vld [vmem:[%s6717_s7 + $0xb4] ss:$8 sps:$4 sm:$0xff]  }
 0x200   : > { %v4933_v39 = vld [vmem:[%s6717_s7 + $0x1b4] ss:$8 sps:$4 sm:$0xff]  }
 0x202   : > { %4534 = vmatpush3.bf16.msra.mxu0 %v5080_v58  ;;  %4554 = vmatpush3.bf16.msra.mxu1 %v5081_v27  ;;  %v4928_v58 = vld [vmem:[%s6717_s7 + $0xb0] ss:$8 sps:$4 sm:$0xff]  }
 0x203   : > { %4535 = vmatprep.subr.bf16.mxu0 %v5717_v40  ;;  %4555 = vmatprep.subr.bf16.mxu1 %v5722_v48  ;;  %v4858_v40 = vld [vmem:[%s6717_s7 + $0x74] ss:$8 sps:$4 sm:$0xff]   ;;  %v4859_v48 = vld [vmem:[%s6717_s7 + $0x170] ss:$8 sps:$4 sm:$0xff]  }
 0x204   : > { %v4931_v27 = vld [vmem:[%s6717_s7 + $0x1b0] ss:$8 sps:$4 sm:$0xff]  }
 0x206   : > { %4536 = vmatpush3.bf16.msra.mxu0 %v5727_v42  ;;  %4556 = vmatpush3.bf16.msra.mxu1 %v5732_v43  ;;  %v4861_v42 = vld [vmem:[%s6717_s7 + $0x174] ss:$8 sps:$4 sm:$0xff]   ;;  %v4862_v43 = vld [vmem:[%s6717_s7 + $0x60] ss:$8 sps:$4 sm:$0xff]  }
 0x207   : > { %4557 = vmatprep.subr.bf16.mxu1 %v5741_v36  ;;  %3320 = vmatprep.subr.bf16.mxu0 %v4858_v40  ;;  %v4864_v36 = vld [vmem:[%s6717_s7 + $0x64] ss:$8 sps:$4 sm:$0xff]   ;;  %v4957_v40 = vld [vmem:[%s6717_s7 + $0x374] ss:$8 sps:$4 sm:$0xff]  }
 0x209   : > { %2451 = vmatmul.mubr.bf16.vlgmr.msra.gmra.mxu0 %v5763_v29  ;;  %v4867_v29 = vld [vmem:[%s6717_s7 + $0x164] ss:$8 sps:$4 sm:$0xff]  }
 0x20a   : > { %4558 = vmatpush3.bf16.msra.mxu1 %v5747_v30  ;;  %3321 = vmatpush1.bf16.msra.mxu0 %v4856_v56  ;;  %v4865_v30 = vld [vmem:[%s6717_s7 + $0x160] ss:$8 sps:$4 sm:$0xff]   ;;  %v4954_v56 = vld [vmem:[%s6717_s7 + $0x274] ss:$8 sps:$4 sm:$0xff]  }
 0x20b   : > { %3363 = vmatprep.subr.bf16.mxu1 %v4861_v42  ;;  %3322 = vmatprep.subr.bf16.mxu0 %v4864_v36 }
 0x20d   : > { %2492 = vmatmul.mubr.bf16.vlgmr.msra.gmra.mxu1 %v5834_v25  ;;  %v4903_v25 = vld [vmem:[%s6717_s7 + $0x104] ss:$8 sps:$4 sm:$0xff]  }
 0x20e   : > { %3364 = vmatpush1.bf16.msra.mxu1 %v4859_v48  ;;  %3323 = vmatpush1.bf16.msra.mxu0 %v4862_v43 }
 0x20f   : > { %3365 = vmatprep.subr.bf16.mxu1 %v4867_v29  ;;  %3324 = vmatprep.subr.bf16.mxu0 %v4870_v4 }
 0x212   : > { %3366 = vmatpush1.bf16.msra.mxu1 %v4865_v30  ;;  %3325 = vmatpush1.bf16.msra.mxu0 %v4868_v47 }
 0x213   : > { %3367 = vmatprep.subr.bf16.mxu1 %v4873_v5  ;;  %3326 = vmatprep.subr.bf16.mxu0 %v4876_v8 }
 0x216   : > { %3368 = vmatpush1.bf16.msra.mxu1 %v4871_v60  ;;  %3327 = vmatpush1.bf16.msra.mxu0 %v4874_v7 }
 0x217   : > { %3369 = vmatprep.subr.bf16.mxu1 %v4879_v10  ;;  %3328 = vmatprep.subr.bf16.mxu0 %v4882_v11 }
 0x21a   : > { %3370 = vmatpush1.bf16.msra.mxu1 %v4877_v9  ;;  %3329 = vmatpush1.bf16.msra.mxu0 %v4880_v13 }
 0x21b   : > { %3371 = vmatprep.subr.bf16.mxu1 %v4885_v12  ;;  %3330 = vmatprep.subr.bf16.mxu0 %v4888_v15 }
 0x21e   : > { %3372 = vmatpush1.bf16.msra.mxu1 %v4883_v14  ;;  %3331 = vmatpush1.bf16.msra.mxu0 %v4886_v17 }
 0x21f   : > { %3373 = vmatprep.subr.bf16.mxu1 %v4891_v16  ;;  %3332 = vmatprep.subr.bf16.mxu0 %v4894_v19 }
 0x222   : > { %3374 = vmatpush1.bf16.msra.mxu1 %v4889_v18  ;;  %3333 = vmatpush1.bf16.msra.mxu0 %v4892_v21 }
 0x223   : > { %3375 = vmatprep.subr.bf16.mxu1 %v4897_v20  ;;  %3334 = vmatprep.subr.bf16.mxu0 %v4900_v23 }
 0x226   : > { %3376 = vmatpush1.bf16.msra.mxu1 %v4895_v22  ;;  %3335 = vmatpush1.bf16.msra.mxu0 %v4898_v26 }
 0x227   : > { %3377 = vmatprep.subr.bf16.mxu1 %v4903_v25  ;;  %3336 = vmatprep.subr.bf16.mxu0 %v4906_v59 }
 0x22a   : > { %3378 = vmatpush1.bf16.msra.mxu1 %v4901_v1  ;;  %3337 = vmatpush2.bf16.msra.mxu0 %v4904_v53 }
 0x22b   : > { %3379 = vmatprep.subr.bf16.mxu1 %v4909_v51  ;;  %3338 = vmatprep.subr.bf16.mxu0 %v4912_v6 }
 0x22e   : > { %3380 = vmatpush2.bf16.msra.mxu1 %v4907_v34  ;;  %3339 = vmatpush2.bf16.msra.mxu0 %v4910_v63 }
 0x22f   : > { %3381 = vmatprep.subr.bf16.mxu1 %v4915_v31  ;;  %3340 = vmatprep.subr.bf16.mxu0 %v4918_v49  ;;  %v4186_v31 = vld [vmem:[%s6715_s5] ss:$0 sm:$0xff] }
 0x232   : > { %3382 = vmatpush2.bf16.msra.mxu1 %v4913_v45  ;;  %3341 = vmatpush2.bf16.msra.mxu0 %v4916_v28 }
 0x233   : > { %3383 = vmatprep.subr.bf16.mxu1 %v4921_v2  ;;  %3342 = vmatprep.subr.bf16.mxu0 %v4924_v54 }
 0x236   : > { %3384 = vmatpush2.bf16.msra.mxu1 %v4919_v24  ;;  %3343 = vmatpush2.bf16.msra.mxu0 %v4922_v0 }
 0x237   : > { %3385 = vmatprep.subr.bf16.mxu1 %v4927_v61  ;;  %3344 = vmatprep.subr.bf16.mxu0 %v4930_v32 }
 0x23a   : > { %3386 = vmatpush2.bf16.msra.mxu1 %v4925_v50  ;;  %3345 = vmatpush2.bf16.msra.mxu0 %v4928_v58 }
 0x23b   : > { %3387 = vmatprep.subr.bf16.mxu1 %v4933_v39  ;;  %3346 = vmatprep.subr.bf16.mxu0 %v4936_v3  ;;  %v4187_v39 = vld [vmem:[%s6716_s6] ss:$0 sm:$0xff] }
 0x23e   : > { %3388 = vmatpush2.bf16.msra.mxu1 %v4931_v27  ;;  %3347 = vmatpush2.bf16.msra.mxu0 %v4934_v57 }
 0x23f   : > { %3389 = vmatprep.subr.bf16.mxu1 %v4939_v37  ;;  %3348 = vmatprep.subr.bf16.mxu0 %v4942_v44 }
 0x242   : > { %3390 = vmatpush2.bf16.msra.mxu1 %v4937_v62  ;;  %3349 = vmatpush2.bf16.msra.mxu0 %v4940_v41 }
 0x243   : > { %3391 = vmatprep.subr.bf16.mxu1 %v4945_v52  ;;  %3350 = vmatprep.subr.bf16.mxu0 %v4948_v55 }
 0x246   : > { %3392 = vmatpush2.bf16.msra.mxu1 %v4943_v33  ;;  %3351 = vmatpush2.bf16.msra.mxu0 %v4946_v46 }
 0x247   : > { %3393 = vmatprep.subr.bf16.mxu1 %v4951_v38  ;;  %3406 = vmatprep.subr.bf16.mxu0 %v4954_v56 }
 0x24a   : > { %3394 = vmatpush2.bf16.msra.mxu1 %v4949_v35 }
 0x24b   : > { %3449 = vmatprep.subr.bf16.mxu1 %v4957_v40 }
 0x269   : > { %v4405_v42 = vpop.f32.mrf.mxu0 }
 0x26b   : > { %v4406_v36 = vpop.f32.mrf.mxu0 }
 0x26c   : > { %v4407_v23 = vadd.f32 %v4406_v36, %v4405_v42 }
 0x26d   : > { %v4427_v48 = vpop.f32.mrf.mxu1  ;;  %v4408_v29 = vpop.f32.mrf.mxu0 }
 0x26f   : > { %v4428_v43 = vpop.f32.mrf.mxu1  ;;  %v4409_v4 = vpop.f32.mrf.mxu0 }
 0x270   : > { %v4429_v19 = vadd.f32 %v4428_v43, %v4427_v48  ;;  %v4410_v28 = vadd.f32 %v4409_v4, %v4408_v29 }
 0x271   : > { %v4430_v30 = vpop.f32.mrf.mxu1 }
 0x272   : > { %v2133_v51 = vadd.f32 %v4429_v19, %v4407_v23  ;;  %v4952_v23 = vld [vmem:[%s6717_s7 + $0x270] ss:$8 sps:$4 sm:$0xff]  }
 0x273   : > { %v4431_v47 = vpop.f32.mrf.mxu1 }
 0x274   : > { %v4432_v53 = vadd.f32 %v4431_v47, %v4430_v30  ;;  %v2145_v54 = vmul.f32 %v4186_v31, %v2133_v51  ;;  %v4955_v51 = vld [vmem:[%s6717_s7 + $0x370] ss:$8 sps:$4 sm:$0xff]  }
 0x276   : > { %v2136_v50 = vadd.f32 %v4432_v53, %v4410_v28  ;;  %v2153_v62 = vadd.f32 %v4187_v39, %v2145_v54  ;;  %v2543_v53 = vld [vmem:[#allocation3 + $0x1b] ss:$2 sm:$0x1] }
 0x278   : > { %v2146_v44 = vmul.f32 %v4186_v31, %v2136_v50  ;;  %v2155_v42 = vmax.f32 %v2153_v62, 0.0  ;;  %v4963_v50 = vld [vmem:[%s6717_s7 + $0x364] ss:$8 sps:$4 sm:$0xff]  }
 0x279   : > { %v4975_v62 = vld [vmem:[%s6717_s7 + $0x344] ss:$8 sps:$4 sm:$0xff]  }
 0x27a   : > { %v2154_v43 = vadd.f32 %v4187_v39, %v2146_v44  ;;  %v4970_v44 = vld [vmem:[%s6717_s7 + $0x240] ss:$8 sps:$4 sm:$0xff]  }
 0x289   : > { %v4449_v5 = vpop.f32.mrf.mxu0 }
 0x28b   : > { %v4450_v8 = vpop.f32.mrf.mxu0 }
 0x28c   : > { %v4451_v22 = vadd.f32 %v4450_v8, %v4449_v5 }
 0x28d   : > { %v4471_v60 = vpop.f32.mrf.mxu1  ;;  %v4452_v10 = vpop.f32.mrf.mxu0 }
 0x28f   : > { %v4472_v7 = vpop.f32.mrf.mxu1  ;;  %v4453_v12 = vpop.f32.mrf.mxu0 }
 0x290   : > { %v4473_v18 = vadd.f32 %v4472_v7, %v4471_v60  ;;  %v4454_v63 = vadd.f32 %v4453_v12, %v4452_v10  ;;  %v2156_v10 = vmax.f32 %v2154_v43, 0.0  ;;  %v4988_v43 = vld [vmem:[%s6717_s7 + $0x210] ss:$8 sps:$4 sm:$0xff]  }
 0x291   : > { %v4474_v9 = vpop.f32.mrf.mxu1 }
 0x292   : > { %v2260_v1 = vadd.f32 %v4473_v18, %v4451_v22 }
 0x293   : > { %v4475_v11 = vpop.f32.mrf.mxu1 }
 0x294   : > { %v4476_v59 = vadd.f32 %v4475_v11, %v4474_v9  ;;  %v2266_v24 = vmul.f32 %v4186_v31, %v2260_v1 }
 0x296   : > { %v2263_v2 = vadd.f32 %v4476_v59, %v4454_v63  ;;  %v2268_v37 = vadd.f32 %v4187_v39, %v2266_v24 }
 0x298   : > { %v2267_v57 = vmul.f32 %v4186_v31, %v2263_v2  ;;  %v2270_v56 = vmax.f32 %v2268_v37, 0.0  ;;  %v4967_v37 = vld [vmem:[%s6717_s7 + $0x350] ss:$8 sps:$4 sm:$0xff]  }
 0x29a   : > { %v2269_v40 = vadd.f32 %v4187_v39, %v2267_v57  ;;  %v2272_v5 = vmax.f32 %v2155_v42, %v2270_v56  ;;  %v4972_v57 = vld [vmem:[%s6717_s7 + $0x244] ss:$8 sps:$4 sm:$0xff]   ;;  %v4982_v56 = vld [vmem:[%s6717_s7 + $0x220] ss:$8 sps:$4 sm:$0xff]   ;;  %v4993_v42 = vld [vmem:[%s6717_s7 + $0x314] ss:$8 sps:$4 sm:$0xff]  }
 0x29c   : > { %v2271_v7 = vmax.f32 %v2269_v40, 0.0  ;;  %v4985_v40 = vld [vmem:[%s6717_s7 + $0x320] ss:$8 sps:$4 sm:$0xff]  }
 0x2a9   : > { %v4493_v14 = vpop.f32.mrf.mxu0 }
 0x2ab   : > { %v4494_v16 = vpop.f32.mrf.mxu0 }
 0x2ac   : > { %v4495_v25 = vadd.f32 %v4494_v16, %v4493_v14 }
 0x2ad   : > { %v4515_v13 = vpop.f32.mrf.mxu1  ;;  %v4496_v20 = vpop.f32.mrf.mxu0 }
 0x2af   : > { %v4516_v15 = vpop.f32.mrf.mxu1  ;;  %v4497_v34 = vpop.f32.mrf.mxu0 }
 0x2b0   : > { %v4517_v21 = vadd.f32 %v4516_v15, %v4515_v13  ;;  %v4498_v0 = vadd.f32 %v4497_v34, %v4496_v20  ;;  %v2273_v15 = vmax.f32 %v2156_v10, %v2271_v7  ;;  %v5000_v7 = vld [vmem:[%s6717_s7 + $0x2f0] ss:$8 sps:$4 sm:$0xff]   ;;  %v5011_v10 = vld [vmem:[%s6717_s7 + $0x3e4] ss:$8 sps:$4 sm:$0xff]  }
 0x2b1   : > { %v4518_v17 = vpop.f32.mrf.mxu1 }
 0x2b2   : > { %v2377_v6 = vadd.f32 %v4517_v21, %v4495_v25  ;;  %v2535_v25 = vld [vmem:[#allocation3 + $0x19] ss:$2 sm:$0x1] }
 0x2b3   : > { %v4519_v26 = vpop.f32.mrf.mxu1 }
 0x2b4   : > { %v4520_v45 = vadd.f32 %v4519_v26, %v4518_v17  ;;  %v2383_v61 = vmul.f32 %v4186_v31, %v2377_v6 }
 0x2b6   : > { %v2380_v58 = vadd.f32 %v4520_v45, %v4498_v0  ;;  %v2385_v52 = vadd.f32 %v4187_v39, %v2383_v61  ;;  %v4960_v0 = vld [vmem:[%s6717_s7 + $0x264] ss:$8 sps:$4 sm:$0xff]  }
 0x2b8   : > { %v2384_v33 = vmul.f32 %v4186_v31, %v2380_v58  ;;  %v2387_v36 = vmax.f32 %v2385_v52, 0.0  ;;  %v4966_v58 = vld [vmem:[%s6717_s7 + $0x254] ss:$8 sps:$4 sm:$0xff]   ;;  %v4973_v52 = vld [vmem:[%s6717_s7 + $0x340] ss:$8 sps:$4 sm:$0xff]  }
 0x2ba   : > { %v2386_v29 = vadd.f32 %v4187_v39, %v2384_v33  ;;  %v2389_v11 = vmax.f32 %v2272_v5, %v2387_v36  ;;  %v4981_v33 = vld [vmem:[%s6717_s7 + $0x334] ss:$8 sps:$4 sm:$0xff]   ;;  %v4991_v36 = vld [vmem:[%s6717_s7 + $0x310] ss:$8 sps:$4 sm:$0xff]  }
 0x2bb   : > { %v5005_v5 = vld [vmem:[%s6717_s7 + $0x3f4] ss:$8 sps:$4 sm:$0xff]  }
 0x2bc   : > { %v2388_v12 = vmax.f32 %v2386_v29, 0.0  ;;  %v4999_v29 = vld [vmem:[%s6717_s7 + $0x304] ss:$8 sps:$4 sm:$0xff]  }
 0x2be   : > { %v2390_v18 = vmax.f32 %v2273_v15, %v2388_v12  ;;  %v5009_v12 = vld [vmem:[%s6717_s7 + $0x3e0] ss:$8 sps:$4 sm:$0xff]   ;;  %v5012_v15 = vld [vmem:[%s6717_s7 + $0x2d0] ss:$8 sps:$4 sm:$0xff]  }
 0x2c9   : > { %v4537_v49 = vpop.f32.mrf.mxu0 }
 0x2cb   : > { %v4538_v32 = vpop.f32.mrf.mxu0 }
 0x2cc   : > { %v4539_v55 = vadd.f32 %v4538_v32, %v4537_v49  ;;  %v4958_v32 = vld [vmem:[%s6717_s7 + $0x260] ss:$8 sps:$4 sm:$0xff]  }
 0x2cd   : > { %v4540_v27 = vpop.f32.mrf.mxu0  ;;  %v4559_v3 = vpop.f32.mrf.mxu1 }
 0x2cf   : > { %v4560_v41 = vpop.f32.mrf.mxu1  ;;  %v4541_v46 = vpop.f32.mrf.mxu0 }
 0x2d0   : > { %v4561_v38 = vadd.f32 %v4560_v41, %v4559_v3  ;;  %v4542_v47 = vadd.f32 %v4541_v46, %v4540_v27  ;;  %v4969_v27 = vld [vmem:[%s6717_s7 + $0x354] ss:$8 sps:$4 sm:$0xff]   ;;  %v4964_v3 = vld [vmem:[%s6717_s7 + $0x250] ss:$8 sps:$4 sm:$0xff]   ;;  %v4984_v46 = vld [vmem:[%s6717_s7 + $0x224] ss:$8 sps:$4 sm:$0xff]  }
 0x2d1   : > { %v4562_v35 = vpop.f32.mrf.mxu1  ;;  %v4978_v41 = vld [vmem:[%s6717_s7 + $0x234] ss:$8 sps:$4 sm:$0xff]  }
 0x2d2   : > { %v2494_v48 = vadd.f32 %v4561_v38, %v4539_v55  ;;  %v4976_v55 = vld [vmem:[%s6717_s7 + $0x230] ss:$8 sps:$4 sm:$0xff]  }
 0x2d3   : > { %v4563_v30 = vpop.f32.mrf.mxu1  ;;  %v4979_v38 = vld [vmem:[%s6717_s7 + $0x330] ss:$8 sps:$4 sm:$0xff]  }
 0x2d4   : > { %v2500_v4 = vmul.f32 %v4186_v31, %v2494_v48  ;;  %v4564_v60 = vadd.f32 %v4563_v30, %v4562_v35  ;;  %v4987_v35 = vld [vmem:[%s6717_s7 + $0x324] ss:$8 sps:$4 sm:$0xff]   ;;  %v4990_v48 = vld [vmem:[%s6717_s7 + $0x214] ss:$8 sps:$4 sm:$0xff]  }
 0x2d5   : > { %v4996_v30 = vld [vmem:[%s6717_s7 + $0x204] ss:$8 sps:$4 sm:$0xff]  }
 0x2d6   : > { %v2502_v8 = vadd.f32 %v4187_v39, %v2500_v4  ;;  %v2497_v9 = vadd.f32 %v4564_v60, %v4542_v47  ;;  %v4994_v47 = vld [vmem:[%s6717_s7 + $0x200] ss:$8 sps:$4 sm:$0xff]   ;;  %v5002_v60 = vld [vmem:[%s6717_s7 + $0x2f4] ss:$8 sps:$4 sm:$0xff]  }
 0x2d7   : > { %v4997_v4 = vld [vmem:[%s6717_s7 + $0x300] ss:$8 sps:$4 sm:$0xff]  }
 0x2d8   : > { %v2504_v13 = vmax.f32 %v2502_v8, 0.0  ;;  %v2501_v14 = vmul.f32 %v4186_v31, %v2497_v9  ;;  %v5003_v8 = vld [vmem:[%s6717_s7 + $0x3f0] ss:$8 sps:$4 sm:$0xff]   ;;  %v5008_v9 = vld [vmem:[%s6717_s7 + $0x2e4] ss:$8 sps:$4 sm:$0xff]  }
 0x2da   : > { %v2506_v16 = vmax.f32 %v2389_v11, %v2504_v13  ;;  %v2503_v17 = vadd.f32 %v4187_v39, %v2501_v14  ;;  %v4961_v39 = vld [vmem:[%s6717_s7 + $0x360] ss:$8 sps:$4 sm:$0xff]   ;;  %v5014_v13 = vld [vmem:[%s6717_s7 + $0x2d4] ss:$8 sps:$4 sm:$0xff]  }
 0x2db   : > { %v5006_v11 = vld [vmem:[%s6717_s7 + $0x2e0] ss:$8 sps:$4 sm:$0xff]   ;;  %v5017_v14 = vld [vmem:[%s6717_s7 + $0x3d4] ss:$8 sps:$4 sm:$0xff]  }
 0x2dc   : > { %2509 = vst [vmem:[#allocation3 + $0x8] sm:$0xff] %v2506_v16  ;;  %v2505_v19 = vmax.f32 %v2503_v17, 0.0  ;;  %v5015_v16 = vld [vmem:[%s6717_s7 + $0x3d0] ss:$8 sps:$4 sm:$0xff]   ;;  %v5020_v17 = vld [vmem:[%s6717_s7 + $0x2c4] ss:$8 sps:$4 sm:$0xff]  }
 0x2de   : > { %v2507_v20 = vmax.f32 %v2390_v18, %v2505_v19  ;;  %v5023_v18 = vld [vmem:[%s6717_s7 + $0x3c4] ss:$8 sps:$4 sm:$0xff]   ;;  %v5018_v19 = vld [vmem:[%s6717_s7 + $0x2c0] ss:$8 sps:$4 sm:$0xff]  }
 0x2e0   : > { %2510 = vst [vmem:[#allocation3 + $0x10] sm:$0xff] %v2507_v20  ;;  %v5021_v20 = vld [vmem:[%s6717_s7 + $0x3c0] ss:$8 sps:$4 sm:$0xff]  }
 0x2e7   : > { %v2517_v21 = vld [vmem:[#allocation3 + $0x5] ss:$2 sm:$0xff]  ;;  %v2519_v22 = vld [vmem:[#allocation3 + $0x15] ss:$2 sm:$0x1] }
 0x2e8   : > { %v2545_v26 = vpack.c.bf16 %v2519_v22, %v2517_v21  ;;  %v2525_v1 = vld [vmem:[#allocation3 + $0x7] ss:$2 sm:$0xff]  ;;  %v2527_v59 = vld [vmem:[#allocation3 + $0x17] ss:$2 sm:$0x1] }
 0x2e9   : > { %v2547_v34 = vpack.c.bf16 %v2527_v59, %v2525_v1  ;;  %v2513_v6 = vld [vmem:[#allocation3 + $0x4] ss:$2 sm:$0xff]  ;;  %v2515_v31 = vld [vmem:[#allocation3 + $0x14] ss:$2 sm:$0x1] }
 0x2ea   : > { %3352 = vmatprep.mubr.bf16.mxu0 %v2545_v26  ;;  %v2544_v63 = vpack.c.bf16 %v2515_v31, %v2513_v6  ;;  %v2521_v45 = vld [vmem:[#allocation3 + $0x6] ss:$2 sm:$0xff]  ;;  %v2523_v28 = vld [vmem:[#allocation3 + $0x16] ss:$2 sm:$0x1] }
 0x2eb   : > { %3395 = vmatprep.mubr.bf16.mxu1 %v2547_v34  ;;  %v2546_v49 = vpack.c.bf16 %v2523_v28, %v2521_v45  ;;  %v2533_v24 = vld [vmem:[#allocation3 + $0x9] ss:$2 sm:$0xff] }
 0x2ec   : > { %v2541_v2 = vld [vmem:[#allocation3 + $0xb] ss:$2 sm:$0xff]  ;;  %3353 = vmatmul.mubr.bf16.vlgmr.msra.gmra.mxu0 %v2544_v63  ;;  %v2549_v54 = vpack.c.bf16 %v2535_v25, %v2533_v24  ;;  %v2529_v24 = vld [vmem:[#allocation3 + $0x8] ss:$2 sm:$0xff] }
 0x2ed   : > { %3396 = vmatmul.mubr.bf16.vlgmr.msra.gmra.mxu1 %v2546_v49  ;;  %3407 = vmatpush1.bf16.msra.mxu0 %v4952_v23  ;;  %v2551_v61 = vpack.c.bf16 %v2543_v53, %v2541_v2  ;;  %v5026_v21 = vld [vmem:[%s6717_s7 + $0x2b4] ss:$8 sps:$4 sm:$0xff]   ;;  %v5024_v23 = vld [vmem:[%s6717_s7 + $0x2b0] ss:$8 sps:$4 sm:$0xff]   ;;  %v5032_v26 = vld [vmem:[%s6717_s7 + $0x2a4] ss:$8 sps:$4 sm:$0xff]  }
 0x2ee   : > { %3450 = vmatpush1.bf16.msra.mxu1 %v4955_v51  ;;  %3438 = vmatprep.mubr.bf16.mxu0 %v2549_v54  ;;  %v5029_v22 = vld [vmem:[%s6717_s7 + $0x3b4] ss:$8 sps:$4 sm:$0xff]   ;;  %v5027_v25 = vld [vmem:[%s6717_s7 + $0x3b0] ss:$8 sps:$4 sm:$0xff]   ;;  %v5035_v1 = vld [vmem:[%s6717_s7 + $0x3a4] ss:$8 sps:$4 sm:$0xff]  }
 0x2ef   : > { %3481 = vmatprep.mubr.bf16.mxu1 %v2551_v61  ;;  %3408 = vmatprep.subr.bf16.mxu0 %v4960_v0  ;;  %v5030_v59 = vld [vmem:[%s6717_s7 + $0x2a0] ss:$8 sps:$4 sm:$0xff]   ;;  %v5038_v53 = vld [vmem:[%s6717_s7 + $0x294] ss:$8 sps:$4 sm:$0xff]   ;;  %v5036_v6 = vld [vmem:[%s6717_s7 + $0x290] ss:$8 sps:$4 sm:$0xff]  }
 0x2f0   : > { %3451 = vmatprep.subr.bf16.mxu1 %v4963_v50  ;;  %v5033_v51 = vld [vmem:[%s6717_s7 + $0x3a0] ss:$8 sps:$4 sm:$0xff]   ;;  %v5041_v34 = vld [vmem:[%s6717_s7 + $0x394] ss:$8 sps:$4 sm:$0xff]   ;;  %v5039_v31 = vld [vmem:[%s6717_s7 + $0x390] ss:$8 sps:$4 sm:$0xff]  }
 0x2f1   : > { %3409 = vmatpush1.bf16.msra.mxu0 %v4958_v32  ;;  %v5044_v63 = vld [vmem:[%s6717_s7 + $0x284] ss:$8 sps:$4 sm:$0xff]   ;;  %v5042_v28 = vld [vmem:[%s6717_s7 + $0x280] ss:$8 sps:$4 sm:$0xff]   ;;  %v6344_v32 = vld [vmem:[#allocation3] sm:$0xff] }
 0x2f2   : > { %3452 = vmatpush1.bf16.msra.mxu1 %v4961_v39  ;;  %3410 = vmatprep.subr.bf16.mxu0 %v4966_v58  ;;  %v5047_v45 = vld [vmem:[%s6717_s7 + $0x384] ss:$8 sps:$4 sm:$0xff]   ;;  %v5045_v49 = vld [vmem:[%s6717_s7 + $0x380] ss:$8 sps:$4 sm:$0xff]   ;;  %v3579_v39 = vld [vmem:[%s6720_s10 + $0xf8] sm:$0xff] }
 0x2f3   : > { %3453 = vmatprep.subr.bf16.mxu1 %v4969_v27  ;;  %v2531_v2 = vld [vmem:[#allocation3 + $0x18] ss:$2 sm:$0x1]  ;;  %v2539_v54 = vld [vmem:[#allocation3 + $0x1a] ss:$2 sm:$0x1] }
 0x2f4   : > { %v2537_v0 = vld [vmem:[#allocation3 + $0xa] ss:$2 sm:$0xff]  ;;  %v2548_v50 = vpack.c.bf16 %v2531_v2, %v2529_v24  ;;  %v3578_v58 = vld [vmem:[%s6720_s10 + $0xf0] sm:$0xff] }
 0x2f5   : > { %3411 = vmatpush1.bf16.msra.mxu0 %v4964_v3  ;;  %v2550_v61 = vpack.c.bf16 %v2539_v54, %v2537_v0  ;;  %v3577_v27 = vld [vmem:[%s6720_s10 + $0xe8] sm:$0xff]  ;;  %v3576_v3 = vld [vmem:[%s6720_s10 + $0xe0] sm:$0xff]  ;;  %v3587_v54 = vld [vmem:[%s6720_s10 + $0x138] sm:$0xff] }
 0x2f6   : > { %3454 = vmatpush1.bf16.msra.mxu1 %v4967_v37  ;;  %3412 = vmatprep.subr.bf16.mxu0 %v4972_v57  ;;  %v3575_v37 = vld [vmem:[%s6720_s10 + $0xd8] sm:$0xff]  ;;  %v3574_v57 = vld [vmem:[%s6720_s10 + $0xd0] sm:$0xff]  ;;  %v3589_v24 = vld [vmem:[%s6720_s10 + $0x148] sm:$0xff] }
 0x2f7   : > { %3455 = vmatprep.subr.bf16.mxu1 %v4975_v62  ;;  %v3573_v62 = vld [vmem:[%s6720_s10 + $0xc8] sm:$0xff]  ;;  %v3709_v2 = vld [vmem:[%s6722_s12 + $0x60] sm:$0xff] }
 0x2f8   : > { %v3588_v0 = vld [vmem:[%s6720_s10 + $0x140] sm:$0xff] }
 0x2f9   : > { %3413 = vmatpush1.bf16.msra.mxu0 %v4970_v44  ;;  %v3572_v44 = vld [vmem:[%s6720_s10 + $0xc0] sm:$0xff] }
 0x2fa   : > { %3456 = vmatpush1.bf16.msra.mxu1 %v4973_v52  ;;  %3414 = vmatprep.subr.bf16.mxu0 %v4978_v41  ;;  %v3571_v52 = vld [vmem:[%s6720_s10 + $0xb8] sm:$0xff]  ;;  %v3570_v41 = vld [vmem:[%s6720_s10 + $0xb0] sm:$0xff] }
 0x2fb   : > { %3457 = vmatprep.subr.bf16.mxu1 %v4981_v33  ;;  %v3569_v33 = vld [vmem:[%s6720_s10 + $0xa8] sm:$0xff] }
 0x2fd   : > { %3415 = vmatpush1.bf16.msra.mxu0 %v4976_v55  ;;  %v3568_v55 = vld [vmem:[%s6720_s10 + $0xa0] sm:$0xff] }
 0x2fe   : > { %3458 = vmatpush1.bf16.msra.mxu1 %v4979_v38  ;;  %3416 = vmatprep.subr.bf16.mxu0 %v4984_v46  ;;  %v3567_v38 = vld [vmem:[%s6720_s10 + $0x98] sm:$0xff]  ;;  %v3566_v46 = vld [vmem:[%s6720_s10 + $0x90] sm:$0xff] }
 0x2ff   : > { %3459 = vmatprep.subr.bf16.mxu1 %v4987_v35  ;;  %v3565_v35 = vld [vmem:[%s6720_s10 + $0x88] sm:$0xff] }
 0x301   : > { %3417 = vmatpush1.bf16.msra.mxu0 %v4982_v56  ;;  %v3564_v56 = vld [vmem:[%s6720_s10 + $0x80] sm:$0xff] }
 0x302   : > { %3460 = vmatpush1.bf16.msra.mxu1 %v4985_v40  ;;  %3418 = vmatprep.subr.bf16.mxu0 %v4990_v48  ;;  %v3563_v40 = vld [vmem:[%s6720_s10 + $0x78] sm:$0xff]  ;;  %v3562_v48 = vld [vmem:[%s6720_s10 + $0x70] sm:$0xff] }
 0x303   : > { %3461 = vmatprep.subr.bf16.mxu1 %v4993_v42  ;;  %v3561_v42 = vld [vmem:[%s6720_s10 + $0x68] sm:$0xff] }
 0x305   : > { %3419 = vmatpush1.bf16.msra.mxu0 %v4988_v43  ;;  %v3560_v43 = vld [vmem:[%s6720_s10 + $0x60] sm:$0xff] }
 0x306   : > { %3462 = vmatpush1.bf16.msra.mxu1 %v4991_v36  ;;  %3420 = vmatprep.subr.bf16.mxu0 %v4996_v30  ;;  %v3559_v36 = vld [vmem:[%s6720_s10 + $0x58] sm:$0xff]  ;;  %v3558_v30 = vld [vmem:[%s6720_s10 + $0x50] sm:$0xff] }
 0x307   : > { %3463 = vmatprep.subr.bf16.mxu1 %v4999_v29  ;;  %v3557_v29 = vld [vmem:[%s6720_s10 + $0x48] sm:$0xff] }
 0x309   : > { %3421 = vmatpush1.bf16.msra.mxu0 %v4994_v47  ;;  %v3556_v47 = vld [vmem:[%s6720_s10 + $0x40] sm:$0xff] }
 0x30a   : > { %3464 = vmatpush1.bf16.msra.mxu1 %v4997_v4  ;;  %3422 = vmatprep.subr.bf16.mxu0 %v5002_v60  ;;  %v3555_v4 = vld [vmem:[%s6720_s10 + $0x38] sm:$0xff]  ;;  %v3554_v60 = vld [vmem:[%s6720_s10 + $0x30] sm:$0xff] }
 0x30b   : > { %3465 = vmatprep.subr.bf16.mxu1 %v5005_v5  ;;  %v3553_v5 = vld [vmem:[%s6720_s10 + $0x28] sm:$0xff] }
 0x30d   : > { %3423 = vmatpush2.bf16.msra.mxu0 %v5000_v7  ;;  %v3552_v7 = vld [vmem:[%s6720_s10 + $0x20] sm:$0xff] }
 0x30e   : > { %3466 = vmatpush2.bf16.msra.mxu1 %v5003_v8  ;;  %3424 = vmatprep.subr.bf16.mxu0 %v5008_v9  ;;  %v3551_v8 = vld [vmem:[%s6720_s10 + $0x18] sm:$0xff]  ;;  %v3550_v9 = vld [vmem:[%s6720_s10 + $0x10] sm:$0xff] }
 0x30f   : > { %3467 = vmatprep.subr.bf16.mxu1 %v5011_v10  ;;  %v3549_v10 = vld [vmem:[%s6720_s10 + $0x8] sm:$0xff] }
 0x311   : > { %3425 = vmatpush2.bf16.msra.mxu0 %v5006_v11  ;;  %v3548_v11 = vld [vmem:[%s6720_s10] sm:$0xff] }
 0x312   : > { %3468 = vmatpush2.bf16.msra.mxu1 %v5009_v12  ;;  %3426 = vmatprep.subr.bf16.mxu0 %v5014_v13  ;;  %v3611_v12 = vld [vmem:[%s6720_s10 + $0x1f8] sm:$0xff]  ;;  %v3610_v13 = vld [vmem:[%s6720_s10 + $0x1f0] sm:$0xff] }
 0x313   : > { %3469 = vmatprep.subr.bf16.mxu1 %v5017_v14  ;;  %v3609_v14 = vld [vmem:[%s6720_s10 + $0x1e8] sm:$0xff] }
 0x315   : > { %3427 = vmatpush2.bf16.msra.mxu0 %v5012_v15  ;;  %v3608_v15 = vld [vmem:[%s6720_s10 + $0x1e0] sm:$0xff] }
 0x316   : > { %3470 = vmatpush2.bf16.msra.mxu1 %v5015_v16  ;;  %3428 = vmatprep.subr.bf16.mxu0 %v5020_v17  ;;  %v3607_v16 = vld [vmem:[%s6720_s10 + $0x1d8] sm:$0xff]  ;;  %v3606_v17 = vld [vmem:[%s6720_s10 + $0x1d0] sm:$0xff] }
 0x317   : > { %3471 = vmatprep.subr.bf16.mxu1 %v5023_v18  ;;  %v3605_v18 = vld [vmem:[%s6720_s10 + $0x1c8] sm:$0xff] }
 0x319   : > { %3429 = vmatpush2.bf16.msra.mxu0 %v5018_v19  ;;  %v3604_v19 = vld [vmem:[%s6720_s10 + $0x1c0] sm:$0xff] }
 0x31a   : > { %3472 = vmatpush2.bf16.msra.mxu1 %v5021_v20  ;;  %3430 = vmatprep.subr.bf16.mxu0 %v5026_v21  ;;  %v3603_v20 = vld [vmem:[%s6720_s10 + $0x1b8] sm:$0xff]  ;;  %v3602_v21 = vld [vmem:[%s6720_s10 + $0x1b0] sm:$0xff] }
 0x31b   : > { %3473 = vmatprep.subr.bf16.mxu1 %v5029_v22  ;;  %v3601_v22 = vld [vmem:[%s6720_s10 + $0x1a8] sm:$0xff] }
 0x31d   : > { %3431 = vmatpush2.bf16.msra.mxu0 %v5024_v23  ;;  %v3600_v23 = vld [vmem:[%s6720_s10 + $0x1a0] sm:$0xff] }
 0x31e   : > { %3474 = vmatpush2.bf16.msra.mxu1 %v5027_v25  ;;  %3432 = vmatprep.subr.bf16.mxu0 %v5032_v26  ;;  %v3599_v25 = vld [vmem:[%s6720_s10 + $0x198] sm:$0xff]  ;;  %v3598_v26 = vld [vmem:[%s6720_s10 + $0x190] sm:$0xff] }
 0x31f   : > { %3475 = vmatprep.subr.bf16.mxu1 %v5035_v1  ;;  %v3597_v1 = vld [vmem:[%s6720_s10 + $0x188] sm:$0xff] }
 0x321   : > { %3433 = vmatpush2.bf16.msra.mxu0 %v5030_v59  ;;  %v3596_v59 = vld [vmem:[%s6720_s10 + $0x180] sm:$0xff] }
 0x322   : > { %3476 = vmatpush2.bf16.msra.mxu1 %v5033_v51  ;;  %3434 = vmatprep.subr.bf16.mxu0 %v5038_v53  ;;  %v3595_v51 = vld [vmem:[%s6720_s10 + $0x178] sm:$0xff]  ;;  %v3594_v53 = vld [vmem:[%s6720_s10 + $0x170] sm:$0xff] }
 0x323   : > { %3477 = vmatprep.subr.bf16.mxu1 %v5041_v34  ;;  %v3593_v34 = vld [vmem:[%s6720_s10 + $0x168] sm:$0xff] }
 0x325   : > { %3435 = vmatpush2.bf16.msra.mxu0 %v5036_v6  ;;  %v3712_v6 = vld [vmem:[%s6722_s12 + $0x78] sm:$0xff] }
 0x326   : > { %3478 = vmatpush2.bf16.msra.mxu1 %v5039_v31  ;;  %3436 = vmatprep.subr.bf16.mxu0 %v5044_v63  ;;  %v3711_v31 = vld [vmem:[%s6722_s12 + $0x70] sm:$0xff]  ;;  %v3592_v63 = vld [vmem:[%s6720_s10 + $0x160] sm:$0xff] }
 0x327   : > { %3479 = vmatprep.subr.bf16.mxu1 %v5047_v45  ;;  %v3591_v45 = vld [vmem:[%s6720_s10 + $0x158] sm:$0xff] }
 0x329   : > { %3437 = vmatpush2.bf16.msra.mxu0 %v5042_v28  ;;  %v3710_v28 = vld [vmem:[%s6722_s12 + $0x68] sm:$0xff] }
 0x32a   : > { %3480 = vmatpush2.bf16.msra.mxu1 %v5045_v49  ;;  %3624 = vmatprep.subr.mxu0 %v3579_v39  ;;  %v3590_v49 = vld [vmem:[%s6720_s10 + $0x150] sm:$0xff]  ;;  %v3585_v39 = vld [vmem:[%s6720_s10 + $0x128] sm:$0xff] }
 0x32b   : > { %4704 = vmatprep.subr.mxu1 %v6344_v32 }
 0x32c   : > { %3439 = vmatmul.mubr.bf16.vlgmr.msra.gmra.mxu0 %v2548_v50  ;;  %v3708_v50 = vld [vmem:[%s6722_s12 + $0x58] sm:$0xff] }
 0x32d   : > { %3482 = vmatmul.mubr.bf16.vlgmr.msra.gmra.mxu1 %v2550_v61  ;;  %3625 = vmatpush1.msra.mxu0 %v3578_v58  ;;  %v3586_v61 = vld [vmem:[%s6720_s10 + $0x130] sm:$0xff] }
 0x32e   : > { %3626 = vmatprep.subr.mxu0 %v3577_v27  ;;  %4705 = vmatpush3.msra.mxu1 %v3712_v6  ;;  %v3707_v58 = vld [vmem:[%s6722_s12 + $0x50] sm:$0xff]  ;;  %v3584_v27 = vld [vmem:[%s6720_s10 + $0x120] sm:$0xff] }
 0x32f   : > { %3627 = vmatpush1.msra.mxu0 %v3576_v3  ;;  %4706 = vmatprep.subr.mxu1 %v6344_v32  ;;  %v3583_v3 = vld [vmem:[%s6720_s10 + $0x118] sm:$0xff] }
 0x330   : > { %3628 = vmatprep.subr.mxu0 %v3575_v37  ;;  %4707 = vmatpush3.msra.mxu1 %v3711_v31  ;;  %v3706_v37 = vld [vmem:[%s6722_s12 + $0x48] sm:$0xff] }
 0x331   : > { %3629 = vmatpush1.msra.mxu0 %v3574_v57  ;;  %4708 = vmatprep.subr.mxu1 %v6344_v32  ;;  %v3582_v57 = vld [vmem:[%s6720_s10 + $0x110] sm:$0xff] }
 0x332   : > { %3630 = vmatprep.subr.mxu0 %v3573_v62  ;;  %4709 = vmatpush3.msra.mxu1 %v3710_v28  ;;  %v3581_v62 = vld [vmem:[%s6720_s10 + $0x108] sm:$0xff] }
 0x333   : > { %3631 = vmatpush1.msra.mxu0 %v3572_v44  ;;  %4710 = vmatprep.subr.mxu1 %v6344_v32  ;;  %v3705_v44 = vld [vmem:[%s6722_s12 + $0x40] sm:$0xff] }
 0x334   : > { %3632 = vmatprep.subr.mxu0 %v3571_v52  ;;  %4711 = vmatpush3.msra.mxu1 %v3709_v2  ;;  %v3580_v52 = vld [vmem:[%s6720_s10 + $0x100] sm:$0xff] }
 0x335   : > { %3633 = vmatpush1.msra.mxu0 %v3570_v41  ;;  %4712 = vmatprep.subr.mxu1 %v6344_v32  ;;  %v3704_v41 = vld [vmem:[%s6722_s12 + $0x38] sm:$0xff] }
 0x336   : > { %3634 = vmatprep.subr.mxu0 %v3569_v33  ;;  %4713 = vmatpush3.msra.mxu1 %v3708_v50  ;;  %v3703_v33 = vld [vmem:[%s6722_s12 + $0x30] sm:$0xff] }
 0x337   : > { %3635 = vmatpush1.msra.mxu0 %v3568_v55  ;;  %4714 = vmatprep.subr.mxu1 %v6344_v32  ;;  %v3702_v55 = vld [vmem:[%s6722_s12 + $0x28] sm:$0xff] }
 0x338   : > { %3636 = vmatprep.subr.mxu0 %v3567_v38  ;;  %4715 = vmatpush3.msra.mxu1 %v3707_v58  ;;  %v3701_v38 = vld [vmem:[%s6722_s12 + $0x20] sm:$0xff] }
 0x339   : > { %3637 = vmatpush1.msra.mxu0 %v3566_v46  ;;  %4716 = vmatprep.subr.mxu1 %v6344_v32  ;;  %v3700_v46 = vld [vmem:[%s6722_s12 + $0x18] sm:$0xff] }
 0x33a   : > { %3638 = vmatprep.subr.mxu0 %v3565_v35  ;;  %4717 = vmatpush3.msra.mxu1 %v3706_v37 }
 0x33b   : > { %3639 = vmatpush1.msra.mxu0 %v3564_v56  ;;  %4718 = vmatprep.subr.mxu1 %v6344_v32 }
 0x33c   : > { %3640 = vmatprep.subr.mxu0 %v3563_v40  ;;  %4719 = vmatpush3.msra.mxu1 %v3705_v44 }
 0x33d   : > { %3641 = vmatpush1.msra.mxu0 %v3562_v48  ;;  %4720 = vmatprep.subr.mxu1 %v6344_v32  ;;  %v3494_v48 = vlaneseq }
 0x33e   : > { %3642 = vmatprep.subr.mxu0 %v3561_v42  ;;  %4721 = vmatpush3.msra.mxu1 %v3704_v41 }
 0x33f   : > { %3643 = vmatpush1.msra.mxu0 %v3560_v43  ;;  %4722 = vmatprep.subr.mxu1 %v6344_v32 }
 0x340   : > { %3644 = vmatprep.subr.mxu0 %v3559_v36  ;;  %4723 = vmatpush3.msra.mxu1 %v3703_v33  ;;  %v3495_v36 = vshrl.u32 %v3494_v48, 7 }
 0x341   : > { %3645 = vmatpush1.msra.mxu0 %v3558_v30  ;;  %4724 = vmatprep.subr.mxu1 %v6344_v32 }
 0x342   : > { %3646 = vmatprep.subr.mxu0 %v3557_v29  ;;  %4725 = vmatpush3.msra.mxu1 %v3702_v55 }
 0x343   : > { %3647 = vmatpush1.msra.mxu0 %v3556_v47  ;;  %4726 = vmatprep.subr.mxu1 %v6344_v32  ;;  %v6591_v47 = vsub.s32 0, %v3495_v36 }
 0x344   : > { %3648 = vmatprep.subr.mxu0 %v3555_v4  ;;  %4727 = vmatpush3.msra.mxu1 %v3701_v38 }
 0x345   : > { %3649 = vmatpush1.msra.mxu0 %v3554_v60  ;;  %4728 = vmatprep.subr.mxu1 %v6344_v32 }
 0x346   : > { %3650 = vmatprep.subr.mxu0 %v3553_v5  ;;  %4729 = vmatpush3.msra.mxu1 %v3700_v46  ;;  %v3492_v5 = vld [vmem:[%s6718_s8] sm:$0x3] }
 0x347   : > { %3651 = vmatpush1.msra.mxu0 %v3552_v7  ;;  %4730 = vmatprep.subr.mxu1 %v6344_v32 }
 0x348   : > { %3652 = vmatprep.subr.mxu0 %v3551_v8  ;;  %v6596_v8 = vsub.s32 1, %v3495_v36  ;;  %v3698_v36 = vld [vmem:[%s6722_s12 + $0x8] sm:$0xff]  ;;  %4736 = vmatprep.mubr.msk.f32.mxu1 %vm5093_vm3, %v6344_v32 }
 0x349   : > { %3653 = vmatpush1.msra.mxu0 %v3550_v9 }
 0x34a   : > { %3654 = vmatprep.subr.mxu0 %v3549_v10 }
 0x34b   : > { %3655 = vmatpush1.msra.mxu0 %v3548_v11 }
 0x34c   : > { %3656 = vmatprep.subr.mxu0 %v3611_v12  ;;  %v3497_v12 = vrot.slane %v3492_v5, %v6591_v47 }
 0x34d   : > { %3657 = vmatpush2.msra.mxu0 %v3610_v13 }
 0x34e   : > { %3658 = vmatprep.subr.mxu0 %v3609_v14 }
 0x34f   : > { %3659 = vmatpush2.msra.mxu0 %v3608_v15 }
 0x350   : > { %3660 = vmatprep.subr.mxu0 %v3607_v16  ;;  %v3508_v16 = vld [vmem:[%s6719_s9] sm:$0x3] }
 0x351   : > { %3661 = vmatpush2.msra.mxu0 %v3606_v17  ;;  %v3517_v6 = vrot.slane %v3508_v16, %v6596_v8 }
 0x352   : > { %3662 = vmatprep.subr.mxu0 %v3605_v18 }
 0x353   : > { %3663 = vmatpush2.msra.mxu0 %v3604_v19  ;;  %v3501_v19 = vrot.slane %v3492_v5, %v6596_v8 }
 0x354   : > { %3664 = vmatprep.subr.mxu0 %v3603_v20 }
 0x355   : > { %3665 = vmatpush2.msra.mxu0 %v3602_v21 }
 0x356   : > { %3666 = vmatprep.subr.mxu0 %v3601_v22 }
 0x357   : > { %3667 = vmatpush2.msra.mxu0 %v3600_v23 }
 0x358   : > { %3668 = vmatprep.subr.mxu0 %v3599_v25 }
 0x359   : > { %3669 = vmatpush2.msra.mxu0 %v3598_v26 }
 0x35a   : > { %3670 = vmatprep.subr.mxu0 %v3597_v1  ;;  %v3513_v1 = vrot.slane %v3508_v16, %v6591_v47  ;;  %v3785_v16 = vld [vmem:[%s6724_s14] sm:$0xff] }
 0x35b   : > { %3671 = vmatpush2.msra.mxu0 %v3596_v59 }
 0x35c   : > { %3672 = vmatprep.subr.mxu0 %v3595_v51 }
 0x35d   : > { %3673 = vmatpush2.msra.mxu0 %v3594_v53 }
 0x35e   : > { %3674 = vmatprep.subr.mxu0 %v3593_v34 }
 0x35f   : > { %3675 = vmatpush2.msra.mxu0 %v3592_v63 }
 0x360   : > { %3676 = vmatprep.subr.mxu0 %v3591_v45 }
 0x361   : > { %3677 = vmatpush2.msra.mxu0 %v3590_v49 }
 0x362   : > { %3678 = vmatprep.subr.mxu0 %v3589_v24 }
 0x363   : > { %3679 = vmatpush2.msra.mxu0 %v3588_v0 }
 0x364   : > { %3680 = vmatprep.subr.mxu0 %v3587_v54 }
 0x365   : > { %3681 = vmatpush2.msra.mxu0 %v3586_v61 }
 0x366   : > { %3682 = vmatprep.subr.mxu0 %v3585_v39 }
 0x367   : > { %3683 = vmatpush2.msra.mxu0 %v3584_v27 }
 0x368   : > { %3684 = vmatprep.subr.mxu0 %v3583_v3 }
 0x369   : > { %3685 = vmatpush2.msra.mxu0 %v3582_v57 }
 0x36a   : > { %3686 = vmatprep.subr.mxu0 %v3581_v62 }
 0x36b   : > { %3687 = vmatpush2.msra.mxu0 %v3580_v52 }
 0x3ac   : > { %v3354_v35 = vpop.f32.mrf.mxu0 }
 0x3ad   : > { %v3397_v56 = vpop.f32.mrf.mxu1 }
 0x3ae   : > { %v3356_v40 = vpop.f32.mrf.mxu0  ;;  %v3398_v4 = vadd.f32 %v3397_v56, %v3354_v35 }
 0x3af   : > { %v3399_v42 = vpop.f32.mrf.mxu1 }
 0x3b0   : > { %v3358_v43 = vpop.f32.mrf.mxu0  ;;  %v3400_v9 = vadd.f32 %v3399_v42, %v3356_v40 }
 0x3b1   : > { %v3401_v30 = vpop.f32.mrf.mxu1 }
 0x3b2   : > { %v3360_v29 = vpop.f32.mrf.mxu0  ;;  %v3402_v14 = vadd.f32 %v3401_v30, %v3358_v43  ;;  %v3699_v43 = vld [vmem:[%s6722_s12 + $0x10] sm:$0xff]  ;;  %v3697_v30 = vld [vmem:[%s6722_s12] sm:$0xff] }
 0x3b3   : > { %v3403_v60 = vpop.f32.mrf.mxu1  ;;  %4731 = vmatpush3.msra.mxu1 %v3699_v43 }
 0x3b4   : > { %v3404_v21 = vadd.f32 %v3403_v60, %v3360_v29  ;;  %4732 = vmatprep.subr.mxu1 %v6344_v32  ;;  %v3612_v29 = vld [vmem:[%s6721_s11] sm:$0x3] }
 0x3b5   : > { %4733 = vmatpush3.msra.mxu1 %v3698_v36 }
 0x3b6   : > { %4734 = vmatprep.subr.mxu1 %v6344_v32 }
 0x3b7   : > { %4735 = vmatpush3.msra.mxu1 %v3697_v30 }
 0x3b8   : > { %4739 = vmatprep.subr.mxu1 %v6344_v32 }
 0x3ec   : > { %v3440_v7 = vpop.f32.mrf.mxu0 }
 0x3ed   : > { %v3441_v10 = vadd.f32 %v3440_v7, %v3398_v4  ;;  %v3483_v11 = vpop.f32.mrf.mxu1  ;;  %v3617_v4 = vrot.slane %v3612_v29, %v6591_v47 }
 0x3ee   : > { %v3442_v13 = vpop.f32.mrf.mxu0 }
 0x3ef   : > { %v3484_v15 = vadd.f32 %v3483_v11, %v3441_v10  ;;  %v3443_v17 = vadd.f32 %v3442_v13, %v3400_v9  ;;  %v3485_v18 = vpop.f32.mrf.mxu1  ;;  %v3792_v9 = vld [vmem:[%s6724_s14 + $0x38] sm:$0xff]  ;;  %v3791_v10 = vld [vmem:[%s6724_s14 + $0x30] sm:$0xff]  ;;  %v3790_v11 = vld [vmem:[%s6724_s14 + $0x28] sm:$0xff] }
 0x3f0   : > { %v3444_v20 = vpop.f32.mrf.mxu0  ;;  %v3788_v13 = vld [vmem:[%s6724_s14 + $0x18] sm:$0xff] }
 0x3f1   : > { %v3486_v22 = vadd.f32 %v3485_v18, %v3443_v17  ;;  %v3445_v23 = vadd.f32 %v3444_v20, %v3402_v14  ;;  %v3487_v25 = vpop.f32.mrf.mxu1  ;;  %v3504_v26 = vmul.f32 %v3497_v12, %v3484_v15  ;;  %v3787_v14 = vld [vmem:[%s6724_s14 + $0x10] sm:$0xff]  ;;  %v3786_v15 = vld [vmem:[%s6724_s14 + $0x8] sm:$0xff]  ;;  %v3713_v17 = vld [vmem:[%s6723_s13] sm:$0x1] }
 0x3f2   : > { %v3446_v59 = vpop.f32.mrf.mxu0 }
 0x3f3   : > { %v3488_v51 = vadd.f32 %v3487_v25, %v3445_v23  ;;  %v3447_v53 = vadd.f32 %v3446_v59, %v3404_v21  ;;  %v3505_v34 = vmul.f32 %v3501_v19, %v3486_v22  ;;  %v3489_v31 = vpop.f32.mrf.mxu1  ;;  %v3520_v28 = vadd.f32 %v3513_v1, %v3504_v26  ;;  %v3886_v22 = vld [vmem:[%s6726_s16 + $0x38] sm:$0xff]  ;;  %v3885_v23 = vld [vmem:[%s6726_s16 + $0x30] sm:$0xff]  ;;  %v3884_v25 = vld [vmem:[%s6726_s16 + $0x28] sm:$0xff] }
 0x3f4   : > { %v3883_v26 = vld [vmem:[%s6726_s16 + $0x20] sm:$0xff]  ;;  %v3882_v59 = vld [vmem:[%s6726_s16 + $0x18] sm:$0xff] }
 0x3f5   : > { %v3506_v63 = vmul.f32 %v3497_v12, %v3488_v51  ;;  %v3490_v45 = vadd.f32 %v3489_v31, %v3447_v53  ;;  %v3521_v2 = vadd.f32 %v3517_v6, %v3505_v34  ;;  %v3524_v50 = vmax.f32 %v3520_v28, 0.0  ;;  %v3789_v12 = vld [vmem:[%s6724_s14 + $0x20] sm:$0xff]  ;;  %v3881_v53 = vld [vmem:[%s6726_s16 + $0x10] sm:$0xff] }
 0x3f7   : > { %v3522_v49 = vadd.f32 %v3513_v1, %v3506_v63  ;;  %v3507_v24 = vmul.f32 %v3501_v19, %v3490_v45  ;;  %v3525_v58 = vmax.f32 %v3521_v2, 0.0  ;;  %v3621_v1 = vrot.slane %v3612_v29, %v6596_v8  ;;  %v3880_v8 = vld [vmem:[%s6726_s16 + $0x8] sm:$0xff]  ;;  %v3793_v63 = vld [vmem:[%s6725_s15] sm:$0x1] }
 0x3f9   : > { %v3526_v0 = vmax.f32 %v3522_v49, 0.0  ;;  %v3523_v54 = vadd.f32 %v3517_v6, %v3507_v24  ;;  %v3879_v6 = vld [vmem:[%s6726_s16] sm:$0xff] }
 0x3fb   : > { %v3529_v61 = vsel %vm3528_vm2, %v3526_v0, 0.0  ;;  %v3527_v39 = vmax.f32 %v3523_v54, 0.0  ;;  %v3887_v54 = vld [vmem:[#allocation4] sm:$0x1] }
 0x3fc   : > { %v3530_v27 = vadd.f32 %v3529_v61, %v3524_v50 }
 0x3fd   : > { %v3537_v3 = vsel %vm3528_vm2, %v3527_v39, 0.0 }
 0x3fe   : > { %v3531_v37 = vrot.slane %v3530_v27, 4  ;;  %v3538_v57 = vadd.f32 %v3537_v3, %v3525_v58 }
 0x400   : > { %v3532_v62 = vadd.f32 %v3531_v37, %v3530_v27  ;;  %v3539_v44 = vrot.slane %v3538_v57, 4 }
 0x402   : > { %v3540_v52 = vadd.f32 %v3539_v44, %v3538_v57  ;;  %v3533_v41 = vrot.slane %v3532_v62, 2 }
 0x404   : > { %v3541_v33 = vrot.slane %v3540_v52, 2  ;;  %v3534_v55 = vadd.f32 %v3533_v41, %v3532_v62 }
 0x406   : > { %v3542_v38 = vadd.f32 %v3541_v33, %v3540_v52  ;;  %v3535_v46 = vrot.slane %v3534_v55, 1 }
 0x408   : > { %v3543_v35 = vrot.slane %v3542_v38, 1  ;;  %v3536_v56 = vadd.f32 %v3535_v46, %v3534_v55 }
 0x40a   : > { %v3544_v40 = vadd.f32 %v3543_v35, %v3542_v38  ;;  %v3546_v42 = vmul.f32 0.11111111, %v3536_v56 }
 0x40c   : > { %v3547_v48 = vmul.f32 0.11111111, %v3544_v40 }
 0x40e   : > { %3688 = vmatprep.mubr.f32.mxu0 %v3547_v48 }
 0x40f   : > { %3689 = vmatmul.mubr.f32.vlgmr.msra.gmra.mxu0 %v3546_v42 }
 0x4cf   : > { %v3690_v60 = vpop.f32.mrf.mxu0 }
 0x4d0   : > { %v3691_v5 = vadd.f32 %v3690_v60, %v3617_v4 }
 0x4d1   : > { %v3692_v51 = vpop.f32.mrf.mxu0 }
 0x4d2   : > { %v3695_v7 = vmax.f32 %v3691_v5, 0.0  ;;  %v3693_v34 = vadd.f32 %v3692_v51, %v3621_v1 }
 0x4d4   : > { %4737 = vmatmul.mubr.f32.vlgmr.msra.gmra.mxu1 %v3695_v7  ;;  %v3696_v31 = vmax.f32 %v3693_v34, 0.0 }
 0x4d5   : > { %4740 = vmatpush3.msra.mxu1 %v3792_v9  ;;  %4755 = vmatprep.mubr.msk.f32.mxu1 %vm5093_vm3, %v6344_v32 }
 0x4d6   : > { %4741 = vmatprep.subr.mxu1 %v6344_v32 }
 0x4d7   : > { %4742 = vmatpush3.msra.mxu1 %v3791_v10 }
 0x4d8   : > { %4743 = vmatprep.subr.mxu1 %v6344_v32 }
 0x4d9   : > { %4744 = vmatpush3.msra.mxu1 %v3790_v11 }
 0x4da   : > { %4745 = vmatprep.subr.mxu1 %v6344_v32 }
 0x4db   : > { %4746 = vmatpush3.msra.mxu1 %v3789_v12 }
 0x4dc   : > { %4747 = vmatprep.subr.mxu1 %v6344_v32 }
 0x4dd   : > { %4748 = vmatpush3.msra.mxu1 %v3788_v13 }
 0x4de   : > { %4749 = vmatprep.subr.mxu1 %v6344_v32 }
 0x4df   : > { %4750 = vmatpush3.msra.mxu1 %v3787_v14 }
 0x4e0   : > { %4751 = vmatprep.subr.mxu1 %v6344_v32 }
 0x4e1   : > { %4752 = vmatpush3.msra.mxu1 %v3786_v15 }
 0x4e2   : > { %4753 = vmatprep.subr.mxu1 %v6344_v32 }
 0x4e3   : > { %4754 = vmatpush3.msra.mxu1 %v3785_v16 }
 0x4e4   : > { %4758 = vmatprep.subr.mxu1 %v6344_v32 }
 0x594   : > { %v3780_v18 = vpop.f32.mrf.mxu1 }
 0x595   : > { %v3781_v19 = vadd.f32 %v3780_v18, %v3713_v17 }
 0x596   : > { %v4738_v20 = vpop.f32.mrf.mxu1 }
 0x597   : > { %v3784_v21 = vmax.f32 %v3781_v19, 0.0 }
 0x599   : > { %4756 = vmatmul.mubr.msk.f32.vlgmr.msra.gmra.mxu1 %vm1672_vm1, %v3784_v21 }
 0x59a   : > { %4759 = vmatpush3.msra.mxu1 %v3886_v22  ;;  %4774 = vmatprep.mubr.msk.f32.mxu1 %vm5093_vm3, %v6344_v32 }
 0x59b   : > { %4760 = vmatprep.subr.mxu1 %v6344_v32 }
 0x59c   : > { %4761 = vmatpush3.msra.mxu1 %v3885_v23 }
 0x59d   : > { %4762 = vmatprep.subr.mxu1 %v6344_v32 }
 0x59e   : > { %4763 = vmatpush3.msra.mxu1 %v3884_v25 }
 0x59f   : > { %4764 = vmatprep.subr.mxu1 %v6344_v32 }
 0x5a0   : > { %4765 = vmatpush3.msra.mxu1 %v3883_v26 }
 0x5a1   : > { %4766 = vmatprep.subr.mxu1 %v6344_v32 }
 0x5a2   : > { %4767 = vmatpush3.msra.mxu1 %v3882_v59 }
 0x5a3   : > { %4768 = vmatprep.subr.mxu1 %v6344_v32 }
 0x5a4   : > { %4769 = vmatpush3.msra.mxu1 %v3881_v53 }
 0x5a5   : > { %4770 = vmatprep.subr.mxu1 %v6344_v32 }
 0x5a6   : > { %4771 = vmatpush3.msra.mxu1 %v3880_v8 }
 0x5a7   : > { %4772 = vmatprep.subr.mxu1 %v6344_v32 }
 0x5a8   : > { %4773 = vmatpush3.msra.mxu1 %v3879_v6 }
 0x5a9   : > { %4775 = vmatmul.mubr.msk.f32.vlgmr.msra.gmra.mxu1 %vm1672_vm1, %v3696_v31 }
 0x659   : > { %v3863_v45 = vpop.f32.mrf.mxu1 }
 0x65a   : > { %v3864_v28 = vadd.f32 %v3863_v45, %v3793_v63 }
 0x65b   : > { %v4757_v49 = vpop.f32.mrf.mxu1 }
 0x65c   : > { %v3868_v24 = vsel %vm3867_vm4, %v3864_v28, -inf }
 0x65d   : > { %3869 = vmax.xlane.f32.xlu1 %v3868_v24 }
 0x669   : > { %v3957_v2 = vpop.f32.mrf.mxu1 }
 0x66a   : > { %v3958_v50 = vadd.f32 %v3957_v2, %v3887_v54 }
 0x66b   : > { %v4776_v0 = vpop.f32.mrf.mxu1 }
 0x66c   : > { %v3961_v61 = vsub.f32 0.0, %v3958_v50 }
 0x66e   : > { %v3962_v27 = vmul.f32 1.442695, %v3961_v61 }
 0x6e6   : > { %v3870_v32 = vpop.xlane.xlu1 %3869 }
 0x6e7   : > { %v3871_v39 = vsub.f32 %v3864_v28, %v3870_v32 }
 0x6e9   : > { %v3872_v58 = vmul.f32 1.442695, %v3871_v39 }
 0x6eb   : > { %5048 = vpow2.f32 %v3872_v58 }
 0x6ec   : > { %5050 = vpow2.f32 %v3962_v27 }
 0x6f8   : > { %v5049_v3 = vpop.eup %5048 }
 0x6f9   : > { %v3874_v37 = vsel %vm3867_vm4, %v5049_v3, 0.0  ;;  %v5051_v57 = vpop.eup %5050 }
 0x6fa   : > { %3875 = vadd.xlane.f32.xlu0 %v3874_v37  ;;  %v3964_v62 = vadd.f32 1.0, %v5051_v57 }
 0x6fc   : > { %5052 = vrcp.f32 %v3964_v62 }
 0x709   : > { %v5053_v44 = vpop.eup %5052 }
 0x710   : > { %3968 = vrot.lane.b32.xlu0 %v5053_v44, %s5094_s20 }
 0x783   : > { %v3876_v52 = vpop.xlane.xlu0 %3875 }
 0x784   : > { %5054 = vrcp.f32 %v3876_v52 }
 0x787   : > { %v3969_v55 = vpop.permute.xlu0 %3968 }
 0x791   : > { %v5055_v41 = vpop.eup %5054 }
 0x792   : > { %v3878_v33 = vmul.f32 %v5055_v41, %v5049_v3 }
 0x794   : > { %v3972_v38 = vsel %vm3971_vm5, %v3878_v33, %v3969_v55 }
 0x795   : > { %v3973_v46 = vsel %vm596_vm0, %v3972_v38, 0.0 }
 0x796   : > { %v3977_v35 = vrot.slane %v3973_v46, %v6591_v47 }
 0x798   : > { %3978 = vst [vmem:[%s575_s23] sm:$0xff] %v3977_v35 }
 0x799 PF: > { %s30_s29 = sadd.s32 1, %s5089_s29  }
 0x79a   : > { %p27_p4 = scmp.ge.s32.totalorder %s30_s29, 4  }
 0x79c   :  { %29 = sbr.rel (!%p27_p4) target bundleno = 4 (0x4), region = 169 }

</bundles_post_ra>
